<compile_context>
chip_gen: v5e
topology: v5e:2x2
jax: 0.10.0
libtpu: 0.0.40
codegen_flags: <defaults>
</compile_context>

<pallas_src>
import functools

import jax
import jax.numpy as jnp
from jax import lax
from jax.experimental import pallas as pl
from jax.experimental.pallas import tpu as pltpu


# ----------------------------- helpers -----------------------------

def _round_up(x, m):
    return (x + m - 1) // m * m


# Gate order [i|f|g|o]; 0.5 scale folded into i/f/o so that
# sigmoid(z) = 0.5 * tanh(0.5 * z) + 0.5 becomes 0.5 * tanh(z_scaled) + 0.5.
_GATE_SCALE = (0.5, 0.5, 1.0, 0.5)


def _pad_gate_w(w, H, Hp):
    """(H, 4H) gate-ordered weights -> (Hp, 4Hp) with each gate slab starting
    at a lane-aligned offset k*Hp; i/f/o slabs pre-scaled by 0.5.  Padded
    rows/cols are zero so padded hidden units stay exactly 0."""
    out = jnp.zeros((Hp, 4 * Hp), jnp.float32)
    for k in range(4):
        out = out.at[:H, k * Hp:k * Hp + H].set(
            _GATE_SCALE[k] * w[:, k * H:(k + 1) * H])
    return out


def _pad_gate_b(b, H, Hp):
    out = jnp.zeros((1, 4 * Hp), jnp.float32)
    for k in range(4):
        out = out.at[:, k * Hp:k * Hp + H].set(
            _GATE_SCALE[k] * b[:, k * H:(k + 1) * H])
    return out


def _vmem_limit(tsteps, Bp, Hp, Cp, wbytes):
    """Scoped VMEM limit: real byte estimate + margin, capped per chip."""
    need = (2 * tsteps * Bp * Hp * wbytes            # x chunk, double-buffered
            + 2 * 2 * Hp * (4 * Hp) * wbytes         # wih + whh (<=2 buffers)
            + 2 * (4 * Hp) * 4                       # bias (f32)
            + 2 * Hp * Cp * wbytes                   # wfc
            + 2 * Bp * Cp * 4                        # output block (f32)
            + (2 * 2 * Bp * Hp + tsteps * Bp * 4 * Hp) * 4)  # scratch (f32)
    try:
        cap = int(pltpu.get_tpu_info().vmem_capacity_bytes)
    except Exception:
        cap = 64 * 1024 * 1024
    return int(min(int(cap * 0.9), max(2 * need, 16 * 1024 * 1024)))


# ----------------------------- Pallas kernel -----------------------------

def _bilstm_kernel(x_ref,                    # (tsteps, Bp, Hp) time chunk (mm dtype)
                   wih_ref, whh_ref, b_ref,  # (Hp,4Hp) mm, (Hp,4Hp) mm, (1,4Hp) f32
                   wfc_ref,                  # (Hp, Cp) FC slab for this direction
                   out_ref,                  # (Bp, Cp) partial FC output (f32)
                   h_sc, c_sc, xw_sc,        # (2,Bp,Hp), (2,Bp,Hp), (tsteps,Bp,4Hp)
                   *, tsteps, t_total, needs_mask, unroll):
    d = pl.program_id(0)             # 0 = forward, 1 = backward
    tc = pl.program_id(1)            # time-chunk index (this direction's order)
    n_chunks = pl.num_programs(1)

    _, Bp, Hp = h_sc.shape
    G = 4 * Hp

    @pl.when(tc == 0)
    def _():
        h_sc[d] = jnp.zeros((Bp, Hp), jnp.float32)
        c_sc[d] = jnp.zeros((Bp, Hp), jnp.float32)
        out_ref[...] = jnp.zeros_like(out_ref)

    # Hoisted input projection: one large MXU matmul per chunk, bias folded in.
    x2d = x_ref[...].reshape(tsteps * Bp, Hp)
    xw = jnp.dot(x2d, wih_ref[...],
                 preferred_element_type=jnp.float32) + b_ref[...]
    xw_sc[...] = xw.reshape(tsteps, Bp, G)

    # Position of this chunk in original (forward) time.
    c_orig = tc + d * (n_chunks - 1 - 2 * tc)   # d==0: tc ; d==1: n_chunks-1-tc
    base_t = c_orig * tsteps

    h0 = h_sc[d]
    c0 = c_sc[d]

    def step(s, carry):
        h, c = carry
        # Within-chunk order: forward for d==0, reversed for d==1.
        t = s + d * (tsteps - 1 - 2 * s)
        gates = xw_sc[t] + jnp.dot(h.astype(whh_ref.dtype), whh_ref[...],
                                   preferred_element_type=jnp.float32)
        act = jnp.tanh(gates)                       # one EUP stream over 4Hp
        i_g = act[:, 0 * Hp:1 * Hp] * 0.5 + 0.5     # sigmoid (0.5 folded in W)
        f_g = act[:, 1 * Hp:2 * Hp] * 0.5 + 0.5
        g_g = act[:, 2 * Hp:3 * Hp]
        o_g = act[:, 3 * Hp:4 * Hp] * 0.5 + 0.5
        c_new = f_g * c + i_g * g_g
        h_new = o_g * jnp.tanh(c_new)
        if needs_mask:  # zero-padded timesteps (only if T % tsteps != 0)
            valid = (base_t + t) < t_total
            c_new = jnp.where(valid, c_new, c)
            h_new = jnp.where(valid, h_new, h)
        return (h_new, c_new)

    h, c = lax.fori_loop(0, tsteps, step, (h0, c0), unroll=unroll)
    h_sc[d] = h
    c_sc[d] = c

    # At this direction's last chunk, emit its partial FC projection.
    @pl.when(tc == n_chunks - 1)
    def _():
        out_ref[...] = jnp.dot(h.astype(wfc_ref.dtype), wfc_ref[...],
                               preferred_element_type=jnp.float32)


def bilstm_fc_pallas(x_tbh, params, *, tsteps=32, matmul_dtype=jnp.bfloat16):
    """Bidirectional LSTM final hidden states projected per direction.

    x_tbh: (T, B, H) f32, time-major embedded text.
    Returns (2, B, C) where slot d = h_d @ W_fc_d (no bias / dep term).
    """
    T, B, H = x_tbh.shape
    C = params["b_fc"].shape[-1]

    tsteps = int(max(1, min(tsteps, T)))
    Hp = _round_up(H, 128)      # lane-aligned gate slabs
    Bp = _round_up(B, 8)        # sublane-aligned batch (bigger real batch rides free)
    Cp = _round_up(C, 128)      # lane-dense output store
    Tp = _round_up(T, tsteps)
    n_chunks = Tp // tsteps

    wih = jnp.stack([_pad_gate_w(params["wih_f"], H, Hp),
                     _pad_gate_w(params["wih_b"], H, Hp)]).astype(matmul_dtype)
    whh = jnp.stack([_pad_gate_w(params["whh_f"], H, Hp),
                     _pad_gate_w(params["whh_b"], H, Hp)]).astype(matmul_dtype)
    b = jnp.stack([_pad_gate_b(params["b_f"], H, Hp),
                   _pad_gate_b(params["b_b"], H, Hp)])          # (2, 1, 4Hp) f32
    wfc = jnp.stack(
        [jnp.pad(params["wfc_f"], ((0, Hp - H), (0, Cp - C))),
         jnp.pad(params["wfc_b"], ((0, Hp - H), (0, Cp - C)))]).astype(matmul_dtype)

    x = jnp.pad(x_tbh, ((0, Tp - T), (0, Bp - B), (0, Hp - H)))  # (Tp, Bp, Hp)
    x = x.astype(matmul_dtype)

    unroll = 8 if tsteps > 16 else True
    kernel = functools.partial(_bilstm_kernel, tsteps=tsteps, t_total=T,
                               needs_mask=(Tp != T), unroll=unroll)

    wbytes = jnp.dtype(matmul_dtype).itemsize
    vmem_limit = _vmem_limit(tsteps, Bp, Hp, Cp, wbytes)

    def build_and_run(weight_pipeline_mode):
        wkw = ({} if weight_pipeline_mode is None
               else {"pipeline_mode": weight_pipeline_mode})
        in_specs = [
            # x: per-direction time chunk (reversed chunk order for bwd).
            pl.BlockSpec((tsteps, Bp, Hp),
                         lambda d, c: (c + d * (n_chunks - 1 - 2 * c), 0, 0)),
            pl.BlockSpec((None, Hp, 4 * Hp), lambda d, c: (d, 0, 0), **wkw),
            pl.BlockSpec((None, Hp, 4 * Hp), lambda d, c: (d, 0, 0), **wkw),
            pl.BlockSpec((None, 1, 4 * Hp), lambda d, c: (d, 0, 0), **wkw),
            pl.BlockSpec((None, Hp, Cp), lambda d, c: (d, 0, 0), **wkw),
        ]
        out = pl.pallas_call(
            kernel,
            out_shape=jax.ShapeDtypeStruct((2, Bp, Cp), jnp.float32),
            grid_spec=pltpu.PrefetchScalarGridSpec(
                num_scalar_prefetch=0,
                grid=(2, n_chunks),
                in_specs=in_specs,
                out_specs=pl.BlockSpec((None, Bp, Cp), lambda d, c: (d, 0, 0)),
                scratch_shapes=[
                    pltpu.VMEM((2, Bp, Hp), jnp.float32),             # h per dir
                    pltpu.VMEM((2, Bp, Hp), jnp.float32),             # c per dir
                    pltpu.VMEM((tsteps, Bp, 4 * Hp), jnp.float32),    # x@Wih+b
                ]),
            compiler_params=pltpu.CompilerParams(
                dimension_semantics=("parallel", "arbitrary"),
                vmem_limit_bytes=vmem_limit),
        )(x, wih, whh, b, wfc)
        return jax.block_until_ready(out)

    try:
        # Weights only change at the direction boundary: single-buffer them
        # (halves weight VMEM residency — matters on v7x's 64 MiB).
        out = build_and_run(pl.Buffered(1))
    except Exception:
        # Fallback for environments without BlockSpec pipeline_mode support.
        out = build_and_run(None)

    return out[:, :B, :C]


# ----------------------------- JAX glue -----------------------------

def featnet(dep_table, feats, feats_offsets, batch):
    """EmbeddingBag(mean) over ragged bags defined by offsets."""
    L = feats.shape[0]
    gathered = jnp.take(dep_table, feats, axis=0)               # (L, H)
    seg_ids = jnp.sum(jnp.arange(L)[:, None] >= feats_offsets[None, :],
                      axis=1) - 1                               # (L,)
    sums = jax.ops.segment_sum(gathered, seg_ids, num_segments=batch)
    counts = jax.ops.segment_sum(jnp.ones((L,), jnp.float32), seg_ids,
                                 num_segments=batch)
    return sums / jnp.maximum(counts, 1.0)[:, None]             # (B, H)


def forward(params, text, feats, feats_offsets, *,
            tsteps=32, matmul_dtype=jnp.bfloat16):
    B, T = text.shape
    x_dep = featnet(params["dep_emb"], feats, feats_offsets, B)     # (B, H)
    # Gather directly in time-major order: only the tiny int32 index array is
    # transposed, never the (T, B, H) embedded activations.
    x_tbh = jnp.take(params["emb"], text.T, axis=0)                 # (T, B, H)
    # Dropout: identity (eval mode).
    partials = bilstm_fc_pallas(x_tbh, params, tsteps=tsteps,
                                matmul_dtype=matmul_dtype)          # (2, B, C)
    return (partials[0] + partials[1]
            + x_dep @ params["wfc_d"] + params["b_fc"])             # (B, C)


# Pure-JAX reference for verification.
def reference(params, text, feats, feats_offsets):
    B, T = text.shape
    H = params["emb"].shape[1]
    x_dep = featnet(params["dep_emb"], feats, feats_offsets, B)
    x_emb = jnp.take(params["emb"], text, axis=0)          # (B, T, H)

    def run_dir(wih, whh, b, seq):
        h = jnp.zeros((B, H), jnp.float32)
        c = jnp.zeros((B, H), jnp.float32)
        for t in range(T):
            g = seq[:, t, :] @ wih + h @ whh + b
            i = jax.nn.sigmoid(g[:, :H])
            f = jax.nn.sigmoid(g[:, H:2 * H])
            gg = jnp.tanh(g[:, 2 * H:3 * H])
            o = jax.nn.sigmoid(g[:, 3 * H:])
            c = f * c + i * gg
            h = o * jnp.tanh(c)
        return h

    h_fwd = run_dir(params["wih_f"], params["whh_f"], params["b_f"], x_emb)
    h_bwd = run_dir(params["wih_b"], params["whh_b"], params["b_b"],
                    x_emb[:, ::-1, :])
    cat = jnp.concatenate([h_fwd, h_bwd, x_dep], axis=1)
    w_fc = jnp.concatenate([params["wfc_f"], params["wfc_b"], params["wfc_d"]],
                           axis=0)
    return cat @ w_fc + params["b_fc"]


# ----------------------------- setup / main -----------------------------

def init_params(key, num_words, num_dep_words, num_categories, hidden):
    ks = jax.random.split(key, 12)
    s = 0.1
    p = {
        "emb":     jax.random.normal(ks[0], (num_words, hidden), jnp.float32) * s,
        "dep_emb": jax.random.normal(ks[1], (num_dep_words, hidden), jnp.float32) * s,
        # LSTM weights stored pre-transposed: (H, 4H), gate order i,f,g,o.
        "wih_f": jax.random.normal(ks[2], (hidden, 4 * hidden), jnp.float32) * s,
        "whh_f": jax.random.normal(ks[3], (hidden, 4 * hidden), jnp.float32) * s,
        "b_f":   jax.random.normal(ks[4], (1, 4 * hidden), jnp.float32) * s,
        "wih_b": jax.random.normal(ks[5], (hidden, 4 * hidden), jnp.float32) * s,
        "whh_b": jax.random.normal(ks[6], (hidden, 4 * hidden), jnp.float32) * s,
        "b_b":   jax.random.normal(ks[7], (1, 4 * hidden), jnp.float32) * s,
        # FC weight (3H, C) split into three (H, C) slabs.
        "wfc_f": jax.random.normal(ks[8], (hidden, num_categories), jnp.float32) * s,
        "wfc_b": jax.random.normal(ks[9], (hidden, num_categories), jnp.float32) * s,
        "wfc_d": jax.random.normal(ks[10], (hidden, num_categories), jnp.float32) * s,
        "b_fc":  jax.random.normal(ks[11], (1, num_categories), jnp.float32) * s,
    }
    return p


if __name__ == "__main__":
    num_words, num_dep_words, num_categories = 100, 50, 8
    hidden = 32
    B, T, L = 2, 8, 10

    key = jax.random.PRNGKey(0)
    kp, kt, kf = jax.random.split(key, 3)
    params = init_params(kp, num_words, num_dep_words, num_categories, hidden)

    text = jax.random.randint(kt, (B, T), 0, num_words, dtype=jnp.int32)
    feats = jax.random.randint(kf, (L,), 0, num_dep_words, dtype=jnp.int32)
    feats_offsets = jnp.array([0, 5], dtype=jnp.int32)

    ref = jax.block_until_ready(reference(params, text, feats, feats_offsets))

    # Run A: exact f32 MXU path, multi-chunk streaming (2 chunks of 4 steps).
    out_f32 = jax.block_until_ready(
        forward(params, text, feats, feats_offsets,
                tsteps=4, matmul_dtype=jnp.float32))
    assert out_f32.shape == (B, num_categories)
    assert jnp.allclose(out_f32, ref, rtol=1e-3, atol=1e-3), (out_f32, ref)

    # Run B: bf16 MXU path (perf default) with ragged chunking (T=8, tsteps=3)
    # exercising the padded-timestep mask; looser tolerance for bf16 inputs.
    out_bf16 = jax.block_until_ready(
        forward(params, text, feats, feats_offsets,
                tsteps=3, matmul_dtype=jnp.bfloat16))
    assert out_bf16.shape == (B, num_categories)
    assert jnp.allclose(out_bf16, ref, rtol=3e-2, atol=3e-2), (out_bf16, ref)

    print("KERNEL_OK")
</pallas_src>

<mosaic_0001>
module attributes {stable_mosaic.version = 11 : i64} {
  func.func @_bilstm_kernel(%arg0: i32, %arg1: i32, %arg2: memref<4x8x128xf32, #tpu.memory_space<vmem>>, %arg3: memref<1x128x512xf32, #tpu.memory_space<vmem>>, %arg4: memref<1x128x512xf32, #tpu.memory_space<vmem>>, %arg5: memref<1x1x512xf32, #tpu.memory_space<vmem>>, %arg6: memref<1x128x128xf32, #tpu.memory_space<vmem>>, %arg7: memref<1x8x128xf32, #tpu.memory_space<vmem>>, %arg8: memref<2x8x128xf32, #tpu.memory_space<vmem>>, %arg9: memref<2x8x128xf32, #tpu.memory_space<vmem>>, %arg10: memref<4x8x512xf32, #tpu.memory_space<vmem>>) attributes {dimension_semantics = [#tpu.dimension_semantics<parallel>, #tpu.dimension_semantics<arbitrary>], iteration_bounds = array<i64: 2, 2>, scalar_prefetch = 0 : i64, scratch_operands = 3 : i64, tpu.core_type = #tpu.core_type<tc>, window_params = [{transform_indices = @transform_0, window_bounds = array<i64: 4, 8, 128>}, {pipeline_mode = #tpu.pipeline_mode<synchronous>, transform_indices = @transform_1, window_bounds = array<i64: 1, 128, 512>}, {pipeline_mode = #tpu.pipeline_mode<synchronous>, transform_indices = @transform_2, window_bounds = array<i64: 1, 128, 512>}, {pipeline_mode = #tpu.pipeline_mode<synchronous>, transform_indices = @transform_3, window_bounds = array<i64: 1, 1, 512>}, {pipeline_mode = #tpu.pipeline_mode<synchronous>, transform_indices = @transform_4, window_bounds = array<i64: 1, 128, 128>}, {transform_indices = @transform_5, window_bounds = array<i64: 1, 8, 128>}]} {
    %c0_i32 = arith.constant 0 : i32
    %0 = arith.cmpi eq, %arg1, %c0_i32 : i32
    %1 = arith.extui %0 : i1 to i32
    %c0_i32_0 = arith.constant 0 : i32
    %2 = arith.cmpi ne, %1, %c0_i32_0 : i32
    scf.if %2 {
      %cst_79 = arith.constant 0.000000e+00 : f32
      %163 = vector.broadcast %cst_79 : f32 to vector<8x128xf32>
      %164 = arith.index_cast %arg0 : i32 to index
      %c0_80 = arith.constant 0 : index
      %c0_81 = arith.constant 0 : index
      %165 = vector.load %arg8[%164, %c0_80, %c0_81] : memref<2x8x128xf32, #tpu.memory_space<vmem>>, vector<1x8x128xf32>
      %166 = vector.shape_cast %165 : vector<1x8x128xf32> to vector<8x128xf32>
      %167 = vector.shape_cast %163 : vector<8x128xf32> to vector<1x8x128xf32>
      tpu.vector_store %arg8[%164, %c0_80, %c0_81], %167 {strides = array<i32>} : memref<2x8x128xf32, #tpu.memory_space<vmem>>, vector<1x8x128xf32>,
      %cst_82 = arith.constant 0.000000e+00 : f32
      %168 = vector.broadcast %cst_82 : f32 to vector<8x128xf32>
      %169 = arith.index_cast %arg0 : i32 to index
      %c0_83 = arith.constant 0 : index
      %c0_84 = arith.constant 0 : index
      %170 = vector.load %arg9[%169, %c0_83, %c0_84] : memref<2x8x128xf32, #tpu.memory_space<vmem>>, vector<1x8x128xf32>
      %171 = vector.shape_cast %170 : vector<1x8x128xf32> to vector<8x128xf32>
      %172 = vector.shape_cast %168 : vector<8x128xf32> to vector<1x8x128xf32>
      tpu.vector_store %arg9[%169, %c0_83, %c0_84], %172 {strides = array<i32>} : memref<2x8x128xf32, #tpu.memory_space<vmem>>, vector<1x8x128xf32>,
      %cst_85 = arith.constant 0.000000e+00 : f32
      %173 = vector.broadcast %cst_85 : f32 to vector<8x128xf32>
      %c0_86 = arith.constant 0 : index
      %c0_87 = arith.constant 0 : index
      %c0_88 = arith.constant 0 : index
      %174 = vector.load %arg7[%c0_86, %c0_87, %c0_88] : memref<1x8x128xf32, #tpu.memory_space<vmem>>, vector<1x8x128xf32>
      %175 = vector.shape_cast %174 : vector<1x8x128xf32> to vector<8x128xf32>
      %176 = vector.shape_cast %173 : vector<8x128xf32> to vector<1x8x128xf32>
      tpu.vector_store %arg7[%c0_86, %c0_87, %c0_88], %176 {strides = array<i32>} : memref<1x8x128xf32, #tpu.memory_space<vmem>>, vector<1x8x128xf32>,
    } else {
    }
    %c0 = arith.constant 0 : index
    %c0_1 = arith.constant 0 : index
    %c0_2 = arith.constant 0 : index
    %3 = vector.load %arg2[%c0, %c0_1, %c0_2] : memref<4x8x128xf32, #tpu.memory_space<vmem>>, vector<4x8x128xf32>
    %4 = vector.shape_cast %3 : vector<4x8x128xf32> to vector<32x128xf32>
    %c0_3 = arith.constant 0 : index
    %c0_4 = arith.constant 0 : index
    %c0_5 = arith.constant 0 : index
    %5 = vector.load %arg3[%c0_3, %c0_4, %c0_5] : memref<1x128x512xf32, #tpu.memory_space<vmem>>, vector<1x128x512xf32>
    %6 = vector.shape_cast %5 : vector<1x128x512xf32> to vector<128x512xf32>
    %cst = arith.constant dense<0.000000e+00> : vector<32x512xf32>
    %7 = tpu.matmul %4, %6, %cst {dimension_numbers = #tpu.dot_dimension_numbers<[1], [0], [0], [1], [0, 0, 1, 1], [], []>} : vector<32x128xf32>, vector<128x512xf32>, vector<32x512xf32> -> vector<32x512xf32>
    %c0_6 = arith.constant 0 : index
    %c0_7 = arith.constant 0 : index
    %c0_8 = arith.constant 0 : index
    %8 = vector.load %arg5[%c0_6, %c0_7, %c0_8] : memref<1x1x512xf32, #tpu.memory_space<vmem>>, vector<1x1x512xf32>
    %9 = vector.shape_cast %8 : vector<1x1x512xf32> to vector<1x512xf32>
    %10 = vector.broadcast %9 : vector<1x512xf32> to vector<32x512xf32>
    %11 = arith.addf %7, %10 : vector<32x512xf32>
    %12 = vector.shape_cast %11 : vector<32x512xf32> to vector<4x8x512xf32>
    %c0_9 = arith.constant 0 : index
    %c0_10 = arith.constant 0 : index
    %c0_11 = arith.constant 0 : index
    %13 = vector.load %arg10[%c0_9, %c0_10, %c0_11] : memref<4x8x512xf32, #tpu.memory_space<vmem>>, vector<4x8x512xf32>
    tpu.vector_store %arg10[%c0_9, %c0_10, %c0_11], %12 {strides = array<i32>} : memref<4x8x512xf32, #tpu.memory_space<vmem>>, vector<4x8x512xf32>,
    %14 = arith.index_cast %arg0 : i32 to index
    %c0_12 = arith.constant 0 : index
    %c0_13 = arith.constant 0 : index
    %15 = vector.load %arg8[%14, %c0_12, %c0_13] : memref<2x8x128xf32, #tpu.memory_space<vmem>>, vector<1x8x128xf32>
    %16 = vector.shape_cast %15 : vector<1x8x128xf32> to vector<8x128xf32>
    %17 = arith.index_cast %arg0 : i32 to index
    %c0_14 = arith.constant 0 : index
    %c0_15 = arith.constant 0 : index
    %18 = vector.load %arg9[%17, %c0_14, %c0_15] : memref<2x8x128xf32, #tpu.memory_space<vmem>>, vector<1x8x128xf32>
    %19 = vector.shape_cast %18 : vector<1x8x128xf32> to vector<8x128xf32>
    %c0_i32_16 = arith.constant 0 : i32
    %c2_i32 = arith.constant 2 : i32
    %20 = arith.muli %c2_i32, %c0_i32_16 : i32
    %c3_i32 = arith.constant 3 : i32
    %21 = arith.subi %c3_i32, %20 : i32
    %22 = arith.muli %arg0, %21 : i32
    %23 = arith.addi %c0_i32_16, %22 : i32
    %24 = arith.index_cast %23 : i32 to index
    %c0_17 = arith.constant 0 : index
    %c0_18 = arith.constant 0 : index
    %25 = vector.load %arg10[%24, %c0_17, %c0_18] : memref<4x8x512xf32, #tpu.memory_space<vmem>>, vector<1x8x512xf32>
    %26 = vector.shape_cast %25 : vector<1x8x512xf32> to vector<8x512xf32>
    %c0_19 = arith.constant 0 : index
    %c0_20 = arith.constant 0 : index
    %c0_21 = arith.constant 0 : index
    %27 = vector.load %arg4[%c0_19, %c0_20, %c0_21] : memref<1x128x512xf32, #tpu.memory_space<vmem>>, vector<1x128x512xf32>
    %28 = vector.shape_cast %27 : vector<1x128x512xf32> to vector<128x512xf32>
    %cst_22 = arith.constant dense<0.000000e+00> : vector<8x512xf32>
    %29 = tpu.matmul %16, %28, %cst_22 {dimension_numbers = #tpu.dot_dimension_numbers<[1], [0], [0], [1], [0, 0, 1, 1], [], []>} : vector<8x128xf32>, vector<128x512xf32>, vector<8x512xf32> -> vector<8x512xf32>
    %30 = arith.addf %26, %29 : vector<8x512xf32>
    %31 = math.tanh %30 : vector<8x512xf32>
    %32 = vector.extract_strided_slice %31 {offsets = [0, 0], sizes = [8, 128], strides = [1, 1]} : vector<8x512xf32> to vector<8x128xf32>
    %cst_23 = arith.constant 5.000000e-01 : f32
    %33 = vector.broadcast %cst_23 : f32 to vector<8x128xf32>
    %34 = arith.mulf %32, %33 : vector<8x128xf32>
    %cst_24 = arith.constant 5.000000e-01 : f32
    %35 = vector.broadcast %cst_24 : f32 to vector<8x128xf32>
    %36 = arith.addf %34, %35 : vector<8x128xf32>
    %37 = vector.extract_strided_slice %31 {offsets = [0, 128], sizes = [8, 128], strides = [1, 1]} : vector<8x512xf32> to vector<8x128xf32>
    %cst_25 = arith.constant 5.000000e-01 : f32
    %38 = vector.broadcast %cst_25 : f32 to vector<8x128xf32>
    %39 = arith.mulf %37, %38 : vector<8x128xf32>
    %cst_26 = arith.constant 5.000000e-01 : f32
    %40 = vector.broadcast %cst_26 : f32 to vector<8x128xf32>
    %41 = arith.addf %39, %40 : vector<8x128xf32>
    %42 = vector.extract_strided_slice %31 {offsets = [0, 256], sizes = [8, 128], strides = [1, 1]} : vector<8x512xf32> to vector<8x128xf32>
    %43 = vector.extract_strided_slice %31 {offsets = [0, 384], sizes = [8, 128], strides = [1, 1]} : vector<8x512xf32> to vector<8x128xf32>
    %cst_27 = arith.constant 5.000000e-01 : f32
    %44 = vector.broadcast %cst_27 : f32 to vector<8x128xf32>
    %45 = arith.mulf %43, %44 : vector<8x128xf32>
    %cst_28 = arith.constant 5.000000e-01 : f32
    %46 = vector.broadcast %cst_28 : f32 to vector<8x128xf32>
    %47 = arith.addf %45, %46 : vector<8x128xf32>
    %48 = arith.mulf %41, %19 : vector<8x128xf32>
    %49 = arith.mulf %36, %42 : vector<8x128xf32>
    %50 = arith.addf %48, %49 : vector<8x128xf32>
    %51 = math.tanh %50 : vector<8x128xf32>
    %52 = arith.mulf %47, %51 : vector<8x128xf32>
    %c1_i32 = arith.constant 1 : i32
    %c2_i32_29 = arith.constant 2 : i32
    %53 = arith.muli %c2_i32_29, %c1_i32 : i32
    %c3_i32_30 = arith.constant 3 : i32
    %54 = arith.subi %c3_i32_30, %53 : i32
    %55 = arith.muli %arg0, %54 : i32
    %56 = arith.addi %c1_i32, %55 : i32
    %57 = arith.index_cast %56 : i32 to index
    %c0_31 = arith.constant 0 : index
    %c0_32 = arith.constant 0 : index
    %58 = vector.load %arg10[%57, %c0_31, %c0_32] : memref<4x8x512xf32, #tpu.memory_space<vmem>>, vector<1x8x512xf32>
    %59 = vector.shape_cast %58 : vector<1x8x512xf32> to vector<8x512xf32>
    %c0_33 = arith.constant 0 : index
    %c0_34 = arith.constant 0 : index
    %c0_35 = arith.constant 0 : index
    %60 = vector.load %arg4[%c0_33, %c0_34, %c0_35] : memref<1x128x512xf32, #tpu.memory_space<vmem>>, vector<1x128x512xf32>
    %61 = vector.shape_cast %60 : vector<1x128x512xf32> to vector<128x512xf32>
    %cst_36 = arith.constant dense<0.000000e+00> : vector<8x512xf32>
    %62 = tpu.matmul %52, %61, %cst_36 {dimension_numbers = #tpu.dot_dimension_numbers<[1], [0], [0], [1], [0, 0, 1, 1], [], []>} : vector<8x128xf32>, vector<128x512xf32>, vector<8x512xf32> -> vector<8x512xf32>
    %63 = arith.addf %59, %62 : vector<8x512xf32>
    %64 = math.tanh %63 : vector<8x512xf32>
    %65 = vector.extract_strided_slice %64 {offsets = [0, 0], sizes = [8, 128], strides = [1, 1]} : vector<8x512xf32> to vector<8x128xf32>
    %cst_37 = arith.constant 5.000000e-01 : f32
    %66 = vector.broadcast %cst_37 : f32 to vector<8x128xf32>
    %67 = arith.mulf %65, %66 : vector<8x128xf32>
    %cst_38 = arith.constant 5.000000e-01 : f32
    %68 = vector.broadcast %cst_38 : f32 to vector<8x128xf32>
    %69 = arith.addf %67, %68 : vector<8x128xf32>
    %70 = vector.extract_strided_slice %64 {offsets = [0, 128], sizes = [8, 128], strides = [1, 1]} : vector<8x512xf32> to vector<8x128xf32>
    %cst_39 = arith.constant 5.000000e-01 : f32
    %71 = vector.broadcast %cst_39 : f32 to vector<8x128xf32>
    %72 = arith.mulf %70, %71 : vector<8x128xf32>
    %cst_40 = arith.constant 5.000000e-01 : f32
    %73 = vector.broadcast %cst_40 : f32 to vector<8x128xf32>
    %74 = arith.addf %72, %73 : vector<8x128xf32>
    %75 = vector.extract_strided_slice %64 {offsets = [0, 256], sizes = [8, 128], strides = [1, 1]} : vector<8x512xf32> to vector<8x128xf32>
    %76 = vector.extract_strided_slice %64 {offsets = [0, 384], sizes = [8, 128], strides = [1, 1]} : vector<8x512xf32> to vector<8x128xf32>
    %cst_41 = arith.constant 5.000000e-01 : f32
    %77 = vector.broadcast %cst_41 : f32 to vector<8x128xf32>
    %78 = arith.mulf %76, %77 : vector<8x128xf32>
    %cst_42 = arith.constant 5.000000e-01 : f32
    %79 = vector.broadcast %cst_42 : f32 to vector<8x128xf32>
    %80 = arith.addf %78, %79 : vector<8x128xf32>
    %81 = arith.mulf %74, %50 : vector<8x128xf32>
    %82 = arith.mulf %69, %75 : vector<8x128xf32>
    %83 = arith.addf %81, %82 : vector<8x128xf32>
    %84 = math.tanh %83 : vector<8x128xf32>
    %85 = arith.mulf %80, %84 : vector<8x128xf32>
    %c2_i32_43 = arith.constant 2 : i32
    %c2_i32_44 = arith.constant 2 : i32
    %86 = arith.muli %c2_i32_44, %c2_i32_43 : i32
    %c3_i32_45 = arith.constant 3 : i32
    %87 = arith.subi %c3_i32_45, %86 : i32
    %88 = arith.muli %arg0, %87 : i32
    %89 = arith.addi %c2_i32_43, %88 : i32
    %90 = arith.index_cast %89 : i32 to index
    %c0_46 = arith.constant 0 : index
    %c0_47 = arith.constant 0 : index
    %91 = vector.load %arg10[%90, %c0_46, %c0_47] : memref<4x8x512xf32, #tpu.memory_space<vmem>>, vector<1x8x512xf32>
    %92 = vector.shape_cast %91 : vector<1x8x512xf32> to vector<8x512xf32>
    %c0_48 = arith.constant 0 : index
    %c0_49 = arith.constant 0 : index
    %c0_50 = arith.constant 0 : index
    %93 = vector.load %arg4[%c0_48, %c0_49, %c0_50] : memref<1x128x512xf32, #tpu.memory_space<vmem>>, vector<1x128x512xf32>
    %94 = vector.shape_cast %93 : vector<1x128x512xf32> to vector<128x512xf32>
    %cst_51 = arith.constant dense<0.000000e+00> : vector<8x512xf32>
    %95 = tpu.matmul %85, %94, %cst_51 {dimension_numbers = #tpu.dot_dimension_numbers<[1], [0], [0], [1], [0, 0, 1, 1], [], []>} : vector<8x128xf32>, vector<128x512xf32>, vector<8x512xf32> -> vector<8x512xf32>
    %96 = arith.addf %92, %95 : vector<8x512xf32>
    %97 = math.tanh %96 : vector<8x512xf32>
    %98 = vector.extract_strided_slice %97 {offsets = [0, 0], sizes = [8, 128], strides = [1, 1]} : vector<8x512xf32> to vector<8x128xf32>
    %cst_52 = arith.constant 5.000000e-01 : f32
    %99 = vector.broadcast %cst_52 : f32 to vector<8x128xf32>
    %100 = arith.mulf %98, %99 : vector<8x128xf32>
    %cst_53 = arith.constant 5.000000e-01 : f32
    %101 = vector.broadcast %cst_53 : f32 to vector<8x128xf32>
    %102 = arith.addf %100, %101 : vector<8x128xf32>
    %103 = vector.extract_strided_slice %97 {offsets = [0, 128], sizes = [8, 128], strides = [1, 1]} : vector<8x512xf32> to vector<8x128xf32>
    %cst_54 = arith.constant 5.000000e-01 : f32
    %104 = vector.broadcast %cst_54 : f32 to vector<8x128xf32>
    %105 = arith.mulf %103, %104 : vector<8x128xf32>
    %cst_55 = arith.constant 5.000000e-01 : f32
    %106 = vector.broadcast %cst_55 : f32 to vector<8x128xf32>
    %107 = arith.addf %105, %106 : vector<8x128xf32>
    %108 = vector.extract_strided_slice %97 {offsets = [0, 256], sizes = [8, 128], strides = [1, 1]} : vector<8x512xf32> to vector<8x128xf32>
    %109 = vector.extract_strided_slice %97 {offsets = [0, 384], sizes = [8, 128], strides = [1, 1]} : vector<8x512xf32> to vector<8x128xf32>
    %cst_56 = arith.constant 5.000000e-01 : f32
    %110 = vector.broadcast %cst_56 : f32 to vector<8x128xf32>
    %111 = arith.mulf %109, %110 : vector<8x128xf32>
    %cst_57 = arith.constant 5.000000e-01 : f32
    %112 = vector.broadcast %cst_57 : f32 to vector<8x128xf32>
    %113 = arith.addf %111, %112 : vector<8x128xf32>
    %114 = arith.mulf %107, %83 : vector<8x128xf32>
    %115 = arith.mulf %102, %108 : vector<8x128xf32>
    %116 = arith.addf %114, %115 : vector<8x128xf32>
    %117 = math.tanh %116 : vector<8x128xf32>
    %118 = arith.mulf %113, %117 : vector<8x128xf32>
    %c3_i32_58 = arith.constant 3 : i32
    %c2_i32_59 = arith.constant 2 : i32
    %119 = arith.muli %c2_i32_59, %c3_i32_58 : i32
    %c3_i32_60 = arith.constant 3 : i32
    %120 = arith.subi %c3_i32_60, %119 : i32
    %121 = arith.muli %arg0, %120 : i32
    %122 = arith.addi %c3_i32_58, %121 : i32
    %123 = arith.index_cast %122 : i32 to index
    %c0_61 = arith.constant 0 : index
    %c0_62 = arith.constant 0 : index
    %124 = vector.load %arg10[%123, %c0_61, %c0_62] : memref<4x8x512xf32, #tpu.memory_space<vmem>>, vector<1x8x512xf32>
    %125 = vector.shape_cast %124 : vector<1x8x512xf32> to vector<8x512xf32>
    %c0_63 = arith.constant 0 : index
    %c0_64 = arith.constant 0 : index
    %c0_65 = arith.constant 0 : index
    %126 = vector.load %arg4[%c0_63, %c0_64, %c0_65] : memref<1x128x512xf32, #tpu.memory_space<vmem>>, vector<1x128x512xf32>
    %127 = vector.shape_cast %126 : vector<1x128x512xf32> to vector<128x512xf32>
    %cst_66 = arith.constant dense<0.000000e+00> : vector<8x512xf32>
    %128 = tpu.matmul %118, %127, %cst_66 {dimension_numbers = #tpu.dot_dimension_numbers<[1], [0], [0], [1], [0, 0, 1, 1], [], []>} : vector<8x128xf32>, vector<128x512xf32>, vector<8x512xf32> -> vector<8x512xf32>
    %129 = arith.addf %125, %128 : vector<8x512xf32>
    %130 = math.tanh %129 : vector<8x512xf32>
    %131 = vector.extract_strided_slice %130 {offsets = [0, 0], sizes = [8, 128], strides = [1, 1]} : vector<8x512xf32> to vector<8x128xf32>
    %cst_67 = arith.constant 5.000000e-01 : f32
    %132 = vector.broadcast %cst_67 : f32 to vector<8x128xf32>
    %133 = arith.mulf %131, %132 : vector<8x128xf32>
    %cst_68 = arith.constant 5.000000e-01 : f32
    %134 = vector.broadcast %cst_68 : f32 to vector<8x128xf32>
    %135 = arith.addf %133, %134 : vector<8x128xf32>
    %136 = vector.extract_strided_slice %130 {offsets = [0, 128], sizes = [8, 128], strides = [1, 1]} : vector<8x512xf32> to vector<8x128xf32>
    %cst_69 = arith.constant 5.000000e-01 : f32
    %137 = vector.broadcast %cst_69 : f32 to vector<8x128xf32>
    %138 = arith.mulf %136, %137 : vector<8x128xf32>
    %cst_70 = arith.constant 5.000000e-01 : f32
    %139 = vector.broadcast %cst_70 : f32 to vector<8x128xf32>
    %140 = arith.addf %138, %139 : vector<8x128xf32>
    %141 = vector.extract_strided_slice %130 {offsets = [0, 256], sizes = [8, 128], strides = [1, 1]} : vector<8x512xf32> to vector<8x128xf32>
    %142 = vector.extract_strided_slice %130 {offsets = [0, 384], sizes = [8, 128], strides = [1, 1]} : vector<8x512xf32> to vector<8x128xf32>
    %cst_71 = arith.constant 5.000000e-01 : f32
    %143 = vector.broadcast %cst_71 : f32 to vector<8x128xf32>
    %144 = arith.mulf %142, %143 : vector<8x128xf32>
    %cst_72 = arith.constant 5.000000e-01 : f32
    %145 = vector.broadcast %cst_72 : f32 to vector<8x128xf32>
    %146 = arith.addf %144, %145 : vector<8x128xf32>
    %147 = arith.mulf %140, %116 : vector<8x128xf32>
    %148 = arith.mulf %135, %141 : vector<8x128xf32>
    %149 = arith.addf %147, %148 : vector<8x128xf32>
    %150 = math.tanh %149 : vector<8x128xf32>
    %151 = arith.mulf %146, %150 : vector<8x128xf32>
    %c4_i32 = arith.constant 4 : i32
    %152 = arith.index_cast %arg0 : i32 to index
    %c0_73 = arith.constant 0 : index
    %c0_74 = arith.constant 0 : index
    %153 = vector.load %arg8[%152, %c0_73, %c0_74] : memref<2x8x128xf32, #tpu.memory_space<vmem>>, vector<1x8x128xf32>
    %154 = vector.shape_cast %153 : vector<1x8x128xf32> to vector<8x128xf32>
    %155 = vector.shape_cast %151 : vector<8x128xf32> to vector<1x8x128xf32>
    tpu.vector_store %arg8[%152, %c0_73, %c0_74], %155 {strides = array<i32>} : memref<2x8x128xf32, #tpu.memory_space<vmem>>, vector<1x8x128xf32>,
    %156 = arith.index_cast %arg0 : i32 to index
    %c0_75 = arith.constant 0 : index
    %c0_76 = arith.constant 0 : index
    %157 = vector.load %arg9[%156, %c0_75, %c0_76] : memref<2x8x128xf32, #tpu.memory_space<vmem>>, vector<1x8x128xf32>
    %158 = vector.shape_cast %157 : vector<1x8x128xf32> to vector<8x128xf32>
    %159 = vector.shape_cast %149 : vector<8x128xf32> to vector<1x8x128xf32>
    tpu.vector_store %arg9[%156, %c0_75, %c0_76], %159 {strides = array<i32>} : memref<2x8x128xf32, #tpu.memory_space<vmem>>, vector<1x8x128xf32>,
    %c1_i32_77 = arith.constant 1 : i32
    %160 = arith.cmpi eq, %arg1, %c1_i32_77 : i32
    %161 = arith.extui %160 : i1 to i32
    %c0_i32_78 = arith.constant 0 : i32
    %162 = arith.cmpi ne, %161, %c0_i32_78 : i32
    scf.if %162 {
      %c0_79 = arith.constant 0 : index
      %c0_80 = arith.constant 0 : index
      %c0_81 = arith.constant 0 : index
      %163 = vector.load %arg6[%c0_79, %c0_80, %c0_81] : memref<1x128x128xf32, #tpu.memory_space<vmem>>, vector<1x128x128xf32>
      %164 = vector.shape_cast %163 : vector<1x128x128xf32> to vector<128x128xf32>
      %cst_82 = arith.constant dense<0.000000e+00> : vector<8x128xf32>
      %165 = tpu.matmul %151, %164, %cst_82 {dimension_numbers = #tpu.dot_dimension_numbers<[1], [0], [0], [1], [0, 0, 1, 1], [], []>} : vector<8x128xf32>, vector<128x128xf32>, vector<8x128xf32> -> vector<8x128xf32>
      %c0_83 = arith.constant 0 : index
      %c0_84 = arith.constant 0 : index
      %c0_85 = arith.constant 0 : index
      %166 = vector.load %arg7[%c0_83, %c0_84, %c0_85] : memref<1x8x128xf32, #tpu.memory_space<vmem>>, vector<1x8x128xf32>
      %167 = vector.shape_cast %166 : vector<1x8x128xf32> to vector<8x128xf32>
      %168 = vector.shape_cast %165 : vector<8x128xf32> to vector<1x8x128xf32>
      tpu.vector_store %arg7[%c0_83, %c0_84, %c0_85], %168 {strides = array<i32>} : memref<1x8x128xf32, #tpu.memory_space<vmem>>, vector<1x8x128xf32>,
    } else {
    }
    return
  }
  func.func @transform_0(%arg0: i32, %arg1: i32) -> (i32, i32, i32) {
    %c2_i32 = arith.constant 2 : i32
    %0 = arith.muli %c2_i32, %arg1 : i32
    %c1_i32 = arith.constant 1 : i32
    %1 = arith.subi %c1_i32, %0 : i32
    %2 = arith.muli %arg0, %1 : i32
    %3 = arith.addi %arg1, %2 : i32
    %c0_i32 = arith.constant 0 : i32
    %c0_i32_0 = arith.constant 0 : i32
    %c0_i32_1 = arith.constant 0 : i32
    return %3, %c0_i32, %c0_i32_0 : i32, i32, i32
  }
  func.func @transform_1(%arg0: i32, %arg1: i32) -> (i32, i32, i32) {
    %c0_i32 = arith.constant 0 : i32
    %c0_i32_0 = arith.constant 0 : i32
    %c0_i32_1 = arith.constant 0 : i32
    return %arg0, %c0_i32, %c0_i32_0 : i32, i32, i32
  }
  func.func @transform_2(%arg0: i32, %arg1: i32) -> (i32, i32, i32) {
    %c0_i32 = arith.constant 0 : i32
    %c0_i32_0 = arith.constant 0 : i32
    %c0_i32_1 = arith.constant 0 : i32
    return %arg0, %c0_i32, %c0_i32_0 : i32, i32, i32
  }
  func.func @transform_3(%arg0: i32, %arg1: i32) -> (i32, i32, i32) {
    %c0_i32 = arith.constant 0 : i32
    %c0_i32_0 = arith.constant 0 : i32
    %c0_i32_1 = arith.constant 0 : i32
    return %arg0, %c0_i32, %c0_i32_0 : i32, i32, i32
  }
  func.func @transform_4(%arg0: i32, %arg1: i32) -> (i32, i32, i32) {
    %c0_i32 = arith.constant 0 : i32
    %c0_i32_0 = arith.constant 0 : i32
    %c0_i32_1 = arith.constant 0 : i32
    return %arg0, %c0_i32, %c0_i32_0 : i32, i32, i32
  }
  func.func @transform_5(%arg0: i32, %arg1: i32) -> (i32, i32, i32) {
    %c0_i32 = arith.constant 0 : i32
    %c0_i32_0 = arith.constant 0 : i32
    %c0_i32_1 = arith.constant 0 : i32
    return %arg0, %c0_i32, %c0_i32_0 : i32, i32, i32
  }
}

module attributes {stable_mosaic.version = 11 : i64} {
  func.func @_bilstm_kernel(%arg0: i32, %arg1: i32, %arg2: memref<4x8x128xf32, #tpu.memory_space<vmem>>, %arg3: memref<1x128x512xf32, #tpu.memory_space<vmem>>, %arg4: memref<1x128x512xf32, #tpu.memory_space<vmem>>, %arg5: memref<1x1x512xf32, #tpu.memory_space<vmem>>, %arg6: memref<1x128x128xf32, #tpu.memory_space<vmem>>, %arg7: memref<1x8x128xf32, #tpu.memory_space<vmem>>, %arg8: memref<2x8x128xf32, #tpu.memory_space<vmem>>, %arg9: memref<2x8x128xf32, #tpu.memory_space<vmem>>, %arg10: memref<4x8x512xf32, #tpu.memory_space<vmem>>) attributes {dimension_semantics = [#tpu.dimension_semantics<parallel>, #tpu.dimension_semantics<arbitrary>], iteration_bounds = array<i64: 2, 2>, scalar_prefetch = 0 : i64, scratch_operands = 3 : i64, tpu.core_type = #tpu.core_type<tc>, window_params = [{transform_indices = @transform_0, window_bounds = array<i64: 4, 8, 128>}, {transform_indices = @transform_1, window_bounds = array<i64: 1, 128, 512>}, {transform_indices = @transform_2, window_bounds = array<i64: 1, 128, 512>}, {transform_indices = @transform_3, window_bounds = array<i64: 1, 1, 512>}, {transform_indices = @transform_4, window_bounds = array<i64: 1, 128, 128>}, {transform_indices = @transform_5, window_bounds = array<i64: 1, 8, 128>}]} {
    %c0_i32 = arith.constant 0 : i32
    %0 = arith.cmpi eq, %arg1, %c0_i32 : i32
    %1 = arith.extui %0 : i1 to i32
    %c0_i32_0 = arith.constant 0 : i32
    %2 = arith.cmpi ne, %1, %c0_i32_0 : i32
    scf.if %2 {
      %cst_79 = arith.constant 0.000000e+00 : f32
      %163 = vector.broadcast %cst_79 : f32 to vector<8x128xf32>
      %164 = arith.index_cast %arg0 : i32 to index
      %c0_80 = arith.constant 0 : index
      %c0_81 = arith.constant 0 : index
      %165 = vector.load %arg8[%164, %c0_80, %c0_81] : memref<2x8x128xf32, #tpu.memory_space<vmem>>, vector<1x8x128xf32>
      %166 = vector.shape_cast %165 : vector<1x8x128xf32> to vector<8x128xf32>
      %167 = vector.shape_cast %163 : vector<8x128xf32> to vector<1x8x128xf32>
      tpu.vector_store %arg8[%164, %c0_80, %c0_81], %167 {strides = array<i32>} : memref<2x8x128xf32, #tpu.memory_space<vmem>>, vector<1x8x128xf32>,
      %cst_82 = arith.constant 0.000000e+00 : f32
      %168 = vector.broadcast %cst_82 : f32 to vector<8x128xf32>
      %169 = arith.index_cast %arg0 : i32 to index
      %c0_83 = arith.constant 0 : index
      %c0_84 = arith.constant 0 : index
      %170 = vector.load %arg9[%169, %c0_83, %c0_84] : memref<2x8x128xf32, #tpu.memory_space<vmem>>, vector<1x8x128xf32>
      %171 = vector.shape_cast %170 : vector<1x8x128xf32> to vector<8x128xf32>
      %172 = vector.shape_cast %168 : vector<8x128xf32> to vector<1x8x128xf32>
      tpu.vector_store %arg9[%169, %c0_83, %c0_84], %172 {strides = array<i32>} : memref<2x8x128xf32, #tpu.memory_space<vmem>>, vector<1x8x128xf32>,
      %cst_85 = arith.constant 0.000000e+00 : f32
      %173 = vector.broadcast %cst_85 : f32 to vector<8x128xf32>
      %c0_86 = arith.constant 0 : index
      %c0_87 = arith.constant 0 : index
      %c0_88 = arith.constant 0 : index
      %174 = vector.load %arg7[%c0_86, %c0_87, %c0_88] : memref<1x8x128xf32, #tpu.memory_space<vmem>>, vector<1x8x128xf32>
      %175 = vector.shape_cast %174 : vector<1x8x128xf32> to vector<8x128xf32>
      %176 = vector.shape_cast %173 : vector<8x128xf32> to vector<1x8x128xf32>
      tpu.vector_store %arg7[%c0_86, %c0_87, %c0_88], %176 {strides = array<i32>} : memref<1x8x128xf32, #tpu.memory_space<vmem>>, vector<1x8x128xf32>,
    } else {
    }
    %c0 = arith.constant 0 : index
    %c0_1 = arith.constant 0 : index
    %c0_2 = arith.constant 0 : index
    %3 = vector.load %arg2[%c0, %c0_1, %c0_2] : memref<4x8x128xf32, #tpu.memory_space<vmem>>, vector<4x8x128xf32>
    %4 = vector.shape_cast %3 : vector<4x8x128xf32> to vector<32x128xf32>
    %c0_3 = arith.constant 0 : index
    %c0_4 = arith.constant 0 : index
    %c0_5 = arith.constant 0 : index
    %5 = vector.load %arg3[%c0_3, %c0_4, %c0_5] : memref<1x128x512xf32, #tpu.memory_space<vmem>>, vector<1x128x512xf32>
    %6 = vector.shape_cast %5 : vector<1x128x512xf32> to vector<128x512xf32>
    %cst = arith.constant dense<0.000000e+00> : vector<32x512xf32>
    %7 = tpu.matmul %4, %6, %cst {dimension_numbers = #tpu.dot_dimension_numbers<[1], [0], [0], [1], [0, 0, 1, 1], [], []>} : vector<32x128xf32>, vector<128x512xf32>, vector<32x512xf32> -> vector<32x512xf32>
    %c0_6 = arith.constant 0 : index
    %c0_7 = arith.constant 0 : index
    %c0_8 = arith.constant 0 : index
    %8 = vector.load %arg5[%c0_6, %c0_7, %c0_8] : memref<1x1x512xf32, #tpu.memory_space<vmem>>, vector<1x1x512xf32>
    %9 = vector.shape_cast %8 : vector<1x1x512xf32> to vector<1x512xf32>
    %10 = vector.broadcast %9 : vector<1x512xf32> to vector<32x512xf32>
    %11 = arith.addf %7, %10 : vector<32x512xf32>
    %12 = vector.shape_cast %11 : vector<32x512xf32> to vector<4x8x512xf32>
    %c0_9 = arith.constant 0 : index
    %c0_10 = arith.constant 0 : index
    %c0_11 = arith.constant 0 : index
    %13 = vector.load %arg10[%c0_9, %c0_10, %c0_11] : memref<4x8x512xf32, #tpu.memory_space<vmem>>, vector<4x8x512xf32>
    tpu.vector_store %arg10[%c0_9, %c0_10, %c0_11], %12 {strides = array<i32>} : memref<4x8x512xf32, #tpu.memory_space<vmem>>, vector<4x8x512xf32>,
    %14 = arith.index_cast %arg0 : i32 to index
    %c0_12 = arith.constant 0 : index
    %c0_13 = arith.constant 0 : index
    %15 = vector.load %arg8[%14, %c0_12, %c0_13] : memref<2x8x128xf32, #tpu.memory_space<vmem>>, vector<1x8x128xf32>
    %16 = vector.shape_cast %15 : vector<1x8x128xf32> to vector<8x128xf32>
    %17 = arith.index_cast %arg0 : i32 to index
    %c0_14 = arith.constant 0 : index
    %c0_15 = arith.constant 0 : index
    %18 = vector.load %arg9[%17, %c0_14, %c0_15] : memref<2x8x128xf32, #tpu.memory_space<vmem>>, vector<1x8x128xf32>
    %19 = vector.shape_cast %18 : vector<1x8x128xf32> to vector<8x128xf32>
    %c0_i32_16 = arith.constant 0 : i32
    %c2_i32 = arith.constant 2 : i32
    %20 = arith.muli %c2_i32, %c0_i32_16 : i32
    %c3_i32 = arith.constant 3 : i32
    %21 = arith.subi %c3_i32, %20 : i32
    %22 = arith.muli %arg0, %21 : i32
    %23 = arith.addi %c0_i32_16, %22 : i32
    %24 = arith.index_cast %23 : i32 to index
    %c0_17 = arith.constant 0 : index
    %c0_18 = arith.constant 0 : index
    %25 = vector.load %arg10[%24, %c0_17, %c0_18] : memref<4x8x512xf32, #tpu.memory_space<vmem>>, vector<1x8x512xf32>
    %26 = vector.shape_cast %25 : vector<1x8x512xf32> to vector<8x512xf32>
    %c0_19 = arith.constant 0 : index
    %c0_20 = arith.constant 0 : index
    %c0_21 = arith.constant 0 : index
    %27 = vector.load %arg4[%c0_19, %c0_20, %c0_21] : memref<1x128x512xf32, #tpu.memory_space<vmem>>, vector<1x128x512xf32>
    %28 = vector.shape_cast %27 : vector<1x128x512xf32> to vector<128x512xf32>
    %cst_22 = arith.constant dense<0.000000e+00> : vector<8x512xf32>
    %29 = tpu.matmul %16, %28, %cst_22 {dimension_numbers = #tpu.dot_dimension_numbers<[1], [0], [0], [1], [0, 0, 1, 1], [], []>} : vector<8x128xf32>, vector<128x512xf32>, vector<8x512xf32> -> vector<8x512xf32>
    %30 = arith.addf %26, %29 : vector<8x512xf32>
    %31 = math.tanh %30 : vector<8x512xf32>
    %32 = vector.extract_strided_slice %31 {offsets = [0, 0], sizes = [8, 128], strides = [1, 1]} : vector<8x512xf32> to vector<8x128xf32>
    %cst_23 = arith.constant 5.000000e-01 : f32
    %33 = vector.broadcast %cst_23 : f32 to vector<8x128xf32>
    %34 = arith.mulf %32, %33 : vector<8x128xf32>
    %cst_24 = arith.constant 5.000000e-01 : f32
    %35 = vector.broadcast %cst_24 : f32 to vector<8x128xf32>
    %36 = arith.addf %34, %35 : vector<8x128xf32>
    %37 = vector.extract_strided_slice %31 {offsets = [0, 128], sizes = [8, 128], strides = [1, 1]} : vector<8x512xf32> to vector<8x128xf32>
    %cst_25 = arith.constant 5.000000e-01 : f32
    %38 = vector.broadcast %cst_25 : f32 to vector<8x128xf32>
    %39 = arith.mulf %37, %38 : vector<8x128xf32>
    %cst_26 = arith.constant 5.000000e-01 : f32
    %40 = vector.broadcast %cst_26 : f32 to vector<8x128xf32>
    %41 = arith.addf %39, %40 : vector<8x128xf32>
    %42 = vector.extract_strided_slice %31 {offsets = [0, 256], sizes = [8, 128], strides = [1, 1]} : vector<8x512xf32> to vector<8x128xf32>
    %43 = vector.extract_strided_slice %31 {offsets = [0, 384], sizes = [8, 128], strides = [1, 1]} : vector<8x512xf32> to vector<8x128xf32>
    %cst_27 = arith.constant 5.000000e-01 : f32
    %44 = vector.broadcast %cst_27 : f32 to vector<8x128xf32>
    %45 = arith.mulf %43, %44 : vector<8x128xf32>
    %cst_28 = arith.constant 5.000000e-01 : f32
    %46 = vector.broadcast %cst_28 : f32 to vector<8x128xf32>
    %47 = arith.addf %45, %46 : vector<8x128xf32>
    %48 = arith.mulf %41, %19 : vector<8x128xf32>
    %49 = arith.mulf %36, %42 : vector<8x128xf32>
    %50 = arith.addf %48, %49 : vector<8x128xf32>
    %51 = math.tanh %50 : vector<8x128xf32>
    %52 = arith.mulf %47, %51 : vector<8x128xf32>
    %c1_i32 = arith.constant 1 : i32
    %c2_i32_29 = arith.constant 2 : i32
    %53 = arith.muli %c2_i32_29, %c1_i32 : i32
    %c3_i32_30 = arith.constant 3 : i32
    %54 = arith.subi %c3_i32_30, %53 : i32
    %55 = arith.muli %arg0, %54 : i32
    %56 = arith.addi %c1_i32, %55 : i32
    %57 = arith.index_cast %56 : i32 to index
    %c0_31 = arith.constant 0 : index
    %c0_32 = arith.constant 0 : index
    %58 = vector.load %arg10[%57, %c0_31, %c0_32] : memref<4x8x512xf32, #tpu.memory_space<vmem>>, vector<1x8x512xf32>
    %59 = vector.shape_cast %58 : vector<1x8x512xf32> to vector<8x512xf32>
    %c0_33 = arith.constant 0 : index
    %c0_34 = arith.constant 0 : index
    %c0_35 = arith.constant 0 : index
    %60 = vector.load %arg4[%c0_33, %c0_34, %c0_35] : memref<1x128x512xf32, #tpu.memory_space<vmem>>, vector<1x128x512xf32>
    %61 = vector.shape_cast %60 : vector<1x128x512xf32> to vector<128x512xf32>
    %cst_36 = arith.constant dense<0.000000e+00> : vector<8x512xf32>
    %62 = tpu.matmul %52, %61, %cst_36 {dimension_numbers = #tpu.dot_dimension_numbers<[1], [0], [0], [1], [0, 0, 1, 1], [], []>} : vector<8x128xf32>, vector<128x512xf32>, vector<8x512xf32> -> vector<8x512xf32>
    %63 = arith.addf %59, %62 : vector<8x512xf32>
    %64 = math.tanh %63 : vector<8x512xf32>
    %65 = vector.extract_strided_slice %64 {offsets = [0, 0], sizes = [8, 128], strides = [1, 1]} : vector<8x512xf32> to vector<8x128xf32>
    %cst_37 = arith.constant 5.000000e-01 : f32
    %66 = vector.broadcast %cst_37 : f32 to vector<8x128xf32>
    %67 = arith.mulf %65, %66 : vector<8x128xf32>
    %cst_38 = arith.constant 5.000000e-01 : f32
    %68 = vector.broadcast %cst_38 : f32 to vector<8x128xf32>
    %69 = arith.addf %67, %68 : vector<8x128xf32>
    %70 = vector.extract_strided_slice %64 {offsets = [0, 128], sizes = [8, 128], strides = [1, 1]} : vector<8x512xf32> to vector<8x128xf32>
    %cst_39 = arith.constant 5.000000e-01 : f32
    %71 = vector.broadcast %cst_39 : f32 to vector<8x128xf32>
    %72 = arith.mulf %70, %71 : vector<8x128xf32>
    %cst_40 = arith.constant 5.000000e-01 : f32
    %73 = vector.broadcast %cst_40 : f32 to vector<8x128xf32>
    %74 = arith.addf %72, %73 : vector<8x128xf32>
    %75 = vector.extract_strided_slice %64 {offsets = [0, 256], sizes = [8, 128], strides = [1, 1]} : vector<8x512xf32> to vector<8x128xf32>
    %76 = vector.extract_strided_slice %64 {offsets = [0, 384], sizes = [8, 128], strides = [1, 1]} : vector<8x512xf32> to vector<8x128xf32>
    %cst_41 = arith.constant 5.000000e-01 : f32
    %77 = vector.broadcast %cst_41 : f32 to vector<8x128xf32>
    %78 = arith.mulf %76, %77 : vector<8x128xf32>
    %cst_42 = arith.constant 5.000000e-01 : f32
    %79 = vector.broadcast %cst_42 : f32 to vector<8x128xf32>
    %80 = arith.addf %78, %79 : vector<8x128xf32>
    %81 = arith.mulf %74, %50 : vector<8x128xf32>
    %82 = arith.mulf %69, %75 : vector<8x128xf32>
    %83 = arith.addf %81, %82 : vector<8x128xf32>
    %84 = math.tanh %83 : vector<8x128xf32>
    %85 = arith.mulf %80, %84 : vector<8x128xf32>
    %c2_i32_43 = arith.constant 2 : i32
    %c2_i32_44 = arith.constant 2 : i32
    %86 = arith.muli %c2_i32_44, %c2_i32_43 : i32
    %c3_i32_45 = arith.constant 3 : i32
    %87 = arith.subi %c3_i32_45, %86 : i32
    %88 = arith.muli %arg0, %87 : i32
    %89 = arith.addi %c2_i32_43, %88 : i32
    %90 = arith.index_cast %89 : i32 to index
    %c0_46 = arith.constant 0 : index
    %c0_47 = arith.constant 0 : index
    %91 = vector.load %arg10[%90, %c0_46, %c0_47] : memref<4x8x512xf32, #tpu.memory_space<vmem>>, vector<1x8x512xf32>
    %92 = vector.shape_cast %91 : vector<1x8x512xf32> to vector<8x512xf32>
    %c0_48 = arith.constant 0 : index
    %c0_49 = arith.constant 0 : index
    %c0_50 = arith.constant 0 : index
    %93 = vector.load %arg4[%c0_48, %c0_49, %c0_50] : memref<1x128x512xf32, #tpu.memory_space<vmem>>, vector<1x128x512xf32>
    %94 = vector.shape_cast %93 : vector<1x128x512xf32> to vector<128x512xf32>
    %cst_51 = arith.constant dense<0.000000e+00> : vector<8x512xf32>
    %95 = tpu.matmul %85, %94, %cst_51 {dimension_numbers = #tpu.dot_dimension_numbers<[1], [0], [0], [1], [0, 0, 1, 1], [], []>} : vector<8x128xf32>, vector<128x512xf32>, vector<8x512xf32> -> vector<8x512xf32>
    %96 = arith.addf %92, %95 : vector<8x512xf32>
    %97 = math.tanh %96 : vector<8x512xf32>
    %98 = vector.extract_strided_slice %97 {offsets = [0, 0], sizes = [8, 128], strides = [1, 1]} : vector<8x512xf32> to vector<8x128xf32>
    %cst_52 = arith.constant 5.000000e-01 : f32
    %99 = vector.broadcast %cst_52 : f32 to vector<8x128xf32>
    %100 = arith.mulf %98, %99 : vector<8x128xf32>
    %cst_53 = arith.constant 5.000000e-01 : f32
    %101 = vector.broadcast %cst_53 : f32 to vector<8x128xf32>
    %102 = arith.addf %100, %101 : vector<8x128xf32>
    %103 = vector.extract_strided_slice %97 {offsets = [0, 128], sizes = [8, 128], strides = [1, 1]} : vector<8x512xf32> to vector<8x128xf32>
    %cst_54 = arith.constant 5.000000e-01 : f32
    %104 = vector.broadcast %cst_54 : f32 to vector<8x128xf32>
    %105 = arith.mulf %103, %104 : vector<8x128xf32>
    %cst_55 = arith.constant 5.000000e-01 : f32
    %106 = vector.broadcast %cst_55 : f32 to vector<8x128xf32>
    %107 = arith.addf %105, %106 : vector<8x128xf32>
    %108 = vector.extract_strided_slice %97 {offsets = [0, 256], sizes = [8, 128], strides = [1, 1]} : vector<8x512xf32> to vector<8x128xf32>
    %109 = vector.extract_strided_slice %97 {offsets = [0, 384], sizes = [8, 128], strides = [1, 1]} : vector<8x512xf32> to vector<8x128xf32>
    %cst_56 = arith.constant 5.000000e-01 : f32
    %110 = vector.broadcast %cst_56 : f32 to vector<8x128xf32>
    %111 = arith.mulf %109, %110 : vector<8x128xf32>
    %cst_57 = arith.constant 5.000000e-01 : f32
    %112 = vector.broadcast %cst_57 : f32 to vector<8x128xf32>
    %113 = arith.addf %111, %112 : vector<8x128xf32>
    %114 = arith.mulf %107, %83 : vector<8x128xf32>
    %115 = arith.mulf %102, %108 : vector<8x128xf32>
    %116 = arith.addf %114, %115 : vector<8x128xf32>
    %117 = math.tanh %116 : vector<8x128xf32>
    %118 = arith.mulf %113, %117 : vector<8x128xf32>
    %c3_i32_58 = arith.constant 3 : i32
    %c2_i32_59 = arith.constant 2 : i32
    %119 = arith.muli %c2_i32_59, %c3_i32_58 : i32
    %c3_i32_60 = arith.constant 3 : i32
    %120 = arith.subi %c3_i32_60, %119 : i32
    %121 = arith.muli %arg0, %120 : i32
    %122 = arith.addi %c3_i32_58, %121 : i32
    %123 = arith.index_cast %122 : i32 to index
    %c0_61 = arith.constant 0 : index
    %c0_62 = arith.constant 0 : index
    %124 = vector.load %arg10[%123, %c0_61, %c0_62] : memref<4x8x512xf32, #tpu.memory_space<vmem>>, vector<1x8x512xf32>
    %125 = vector.shape_cast %124 : vector<1x8x512xf32> to vector<8x512xf32>
    %c0_63 = arith.constant 0 : index
    %c0_64 = arith.constant 0 : index
    %c0_65 = arith.constant 0 : index
    %126 = vector.load %arg4[%c0_63, %c0_64, %c0_65] : memref<1x128x512xf32, #tpu.memory_space<vmem>>, vector<1x128x512xf32>
    %127 = vector.shape_cast %126 : vector<1x128x512xf32> to vector<128x512xf32>
    %cst_66 = arith.constant dense<0.000000e+00> : vector<8x512xf32>
    %128 = tpu.matmul %118, %127, %cst_66 {dimension_numbers = #tpu.dot_dimension_numbers<[1], [0], [0], [1], [0, 0, 1, 1], [], []>} : vector<8x128xf32>, vector<128x512xf32>, vector<8x512xf32> -> vector<8x512xf32>
    %129 = arith.addf %125, %128 : vector<8x512xf32>
    %130 = math.tanh %129 : vector<8x512xf32>
    %131 = vector.extract_strided_slice %130 {offsets = [0, 0], sizes = [8, 128], strides = [1, 1]} : vector<8x512xf32> to vector<8x128xf32>
    %cst_67 = arith.constant 5.000000e-01 : f32
    %132 = vector.broadcast %cst_67 : f32 to vector<8x128xf32>
    %133 = arith.mulf %131, %132 : vector<8x128xf32>
    %cst_68 = arith.constant 5.000000e-01 : f32
    %134 = vector.broadcast %cst_68 : f32 to vector<8x128xf32>
    %135 = arith.addf %133, %134 : vector<8x128xf32>
    %136 = vector.extract_strided_slice %130 {offsets = [0, 128], sizes = [8, 128], strides = [1, 1]} : vector<8x512xf32> to vector<8x128xf32>
    %cst_69 = arith.constant 5.000000e-01 : f32
    %137 = vector.broadcast %cst_69 : f32 to vector<8x128xf32>
    %138 = arith.mulf %136, %137 : vector<8x128xf32>
    %cst_70 = arith.constant 5.000000e-01 : f32
    %139 = vector.broadcast %cst_70 : f32 to vector<8x128xf32>
    %140 = arith.addf %138, %139 : vector<8x128xf32>
    %141 = vector.extract_strided_slice %130 {offsets = [0, 256], sizes = [8, 128], strides = [1, 1]} : vector<8x512xf32> to vector<8x128xf32>
    %142 = vector.extract_strided_slice %130 {offsets = [0, 384], sizes = [8, 128], strides = [1, 1]} : vector<8x512xf32> to vector<8x128xf32>
    %cst_71 = arith.constant 5.000000e-01 : f32
    %143 = vector.broadcast %cst_71 : f32 to vector<8x128xf32>
    %144 = arith.mulf %142, %143 : vector<8x128xf32>
    %cst_72 = arith.constant 5.000000e-01 : f32
    %145 = vector.broadcast %cst_72 : f32 to vector<8x128xf32>
    %146 = arith.addf %144, %145 : vector<8x128xf32>
    %147 = arith.mulf %140, %116 : vector<8x128xf32>
    %148 = arith.mulf %135, %141 : vector<8x128xf32>
    %149 = arith.addf %147, %148 : vector<8x128xf32>
    %150 = math.tanh %149 : vector<8x128xf32>
    %151 = arith.mulf %146, %150 : vector<8x128xf32>
    %c4_i32 = arith.constant 4 : i32
    %152 = arith.index_cast %arg0 : i32 to index
    %c0_73 = arith.constant 0 : index
    %c0_74 = arith.constant 0 : index
    %153 = vector.load %arg8[%152, %c0_73, %c0_74] : memref<2x8x128xf32, #tpu.memory_space<vmem>>, vector<1x8x128xf32>
    %154 = vector.shape_cast %153 : vector<1x8x128xf32> to vector<8x128xf32>
    %155 = vector.shape_cast %151 : vector<8x128xf32> to vector<1x8x128xf32>
    tpu.vector_store %arg8[%152, %c0_73, %c0_74], %155 {strides = array<i32>} : memref<2x8x128xf32, #tpu.memory_space<vmem>>, vector<1x8x128xf32>,
    %156 = arith.index_cast %arg0 : i32 to index
    %c0_75 = arith.constant 0 : index
    %c0_76 = arith.constant 0 : index
    %157 = vector.load %arg9[%156, %c0_75, %c0_76] : memref<2x8x128xf32, #tpu.memory_space<vmem>>, vector<1x8x128xf32>
    %158 = vector.shape_cast %157 : vector<1x8x128xf32> to vector<8x128xf32>
    %159 = vector.shape_cast %149 : vector<8x128xf32> to vector<1x8x128xf32>
    tpu.vector_store %arg9[%156, %c0_75, %c0_76], %159 {strides = array<i32>} : memref<2x8x128xf32, #tpu.memory_space<vmem>>, vector<1x8x128xf32>,
    %c1_i32_77 = arith.constant 1 : i32
    %160 = arith.cmpi eq, %arg1, %c1_i32_77 : i32
    %161 = arith.extui %160 : i1 to i32
    %c0_i32_78 = arith.constant 0 : i32
    %162 = arith.cmpi ne, %161, %c0_i32_78 : i32
    scf.if %162 {
      %c0_79 = arith.constant 0 : index
      %c0_80 = arith.constant 0 : index
      %c0_81 = arith.constant 0 : index
      %163 = vector.load %arg6[%c0_79, %c0_80, %c0_81] : memref<1x128x128xf32, #tpu.memory_space<vmem>>, vector<1x128x128xf32>
      %164 = vector.shape_cast %163 : vector<1x128x128xf32> to vector<128x128xf32>
      %cst_82 = arith.constant dense<0.000000e+00> : vector<8x128xf32>
      %165 = tpu.matmul %151, %164, %cst_82 {dimension_numbers = #tpu.dot_dimension_numbers<[1], [0], [0], [1], [0, 0, 1, 1], [], []>} : vector<8x128xf32>, vector<128x128xf32>, vector<8x128xf32> -> vector<8x128xf32>
      %c0_83 = arith.constant 0 : index
      %c0_84 = arith.constant 0 : index
      %c0_85 = arith.constant 0 : index
      %166 = vector.load %arg7[%c0_83, %c0_84, %c0_85] : memref<1x8x128xf32, #tpu.memory_space<vmem>>, vector<1x8x128xf32>
      %167 = vector.shape_cast %166 : vector<1x8x128xf32> to vector<8x128xf32>
      %168 = vector.shape_cast %165 : vector<8x128xf32> to vector<1x8x128xf32>
      tpu.vector_store %arg7[%c0_83, %c0_84, %c0_85], %168 {strides = array<i32>} : memref<1x8x128xf32, #tpu.memory_space<vmem>>, vector<1x8x128xf32>,
    } else {
    }
    return
  }
  func.func @transform_0(%arg0: i32, %arg1: i32) -> (i32, i32, i32) {
    %c2_i32 = arith.constant 2 : i32
    %0 = arith.muli %c2_i32, %arg1 : i32
    %c1_i32 = arith.constant 1 : i32
    %1 = arith.subi %c1_i32, %0 : i32
    %2 = arith.muli %arg0, %1 : i32
    %3 = arith.addi %arg1, %2 : i32
    %c0_i32 = arith.constant 0 : i32
    %c0_i32_0 = arith.constant 0 : i32
    %c0_i32_1 = arith.constant 0 : i32
    return %3, %c0_i32, %c0_i32_0 : i32, i32, i32
  }
  func.func @transform_1(%arg0: i32, %arg1: i32) -> (i32, i32, i32) {
    %c0_i32 = arith.constant 0 : i32
    %c0_i32_0 = arith.constant 0 : i32
    %c0_i32_1 = arith.constant 0 : i32
    return %arg0, %c0_i32, %c0_i32_0 : i32, i32, i32
  }
  func.func @transform_2(%arg0: i32, %arg1: i32) -> (i32, i32, i32) {
    %c0_i32 = arith.constant 0 : i32
    %c0_i32_0 = arith.constant 0 : i32
    %c0_i32_1 = arith.constant 0 : i32
    return %arg0, %c0_i32, %c0_i32_0 : i32, i32, i32
  }
  func.func @transform_3(%arg0: i32, %arg1: i32) -> (i32, i32, i32) {
    %c0_i32 = arith.constant 0 : i32
    %c0_i32_0 = arith.constant 0 : i32
    %c0_i32_1 = arith.constant 0 : i32
    return %arg0, %c0_i32, %c0_i32_0 : i32, i32, i32
  }
  func.func @transform_4(%arg0: i32, %arg1: i32) -> (i32, i32, i32) {
    %c0_i32 = arith.constant 0 : i32
    %c0_i32_0 = arith.constant 0 : i32
    %c0_i32_1 = arith.constant 0 : i32
    return %arg0, %c0_i32, %c0_i32_0 : i32, i32, i32
  }
  func.func @transform_5(%arg0: i32, %arg1: i32) -> (i32, i32, i32) {
    %c0_i32 = arith.constant 0 : i32
    %c0_i32_0 = arith.constant 0 : i32
    %c0_i32_1 = arith.constant 0 : i32
    return %arg0, %c0_i32, %c0_i32_0 : i32, i32, i32
  }
}

</mosaic_0001>

<bundles_post_ra>
// kernel: tpu_custom_call.1
= control target key start
LH: loop header
LB: loop body
LE: loop exit
PB: predicated region body
PF: predicated region fallthrough
CT: control target
= control target key end

     0   :  { %s2545_s0 = inlined_call_operand.hbm [shape: f32[8,8,128], index: 0, kind: input, shape index: {}]   ;;  %s2546_s1 = inlined_call_operand.hbm [shape: f32[2,128,512], index: 1, kind: input, shape index: {}]   ;;  %s2547_s2 = inlined_call_operand.hbm [shape: f32[2,128,512], index: 2, kind: input, shape index: {}]   ;;  %s2548_s3 = inlined_call_operand.hbm [shape: f32[2,1,512], index: 3, kind: input, shape index: {}]   ;;  %s2549_s4 = inlined_call_operand.hbm [shape: f32[2,128,128], index: 4, kind: input, shape index: {}]   ;;  %s2550_s5 = inlined_call_operand.hbm [shape: f32[2,8,128], index: 5, kind: output, shape index: {}]  }
   0x1   :  { %2581 = sst [smem:[#allocation43_spill]] %s2546_s1 }
   0x2   :  { %2582 = sst [smem:[#allocation44_spill]] %s2547_s2 }
   0x3   :  { %2583 = sst [smem:[#allocation45_spill]] %s2548_s3 }
   0x4   :  { %2584 = sst [smem:[#allocation46_spill]] %s2549_s4 }
   0x5   :  { %2585 = sst [smem:[#allocation47_spill]] %s2550_s5 }
   0x6   :  { %10 = vsyncpa [#allocation6], 0 }
   0x7   :  { %12 = vsyncpa [#allocation6 + $0x1], 0 }
   0x8   :  { %13 = vsyncpa [#allocation9], 0 }
   0x9   :  { %14 = vsyncpa [#allocation12], 0 }
   0xa   :  { %15 = vsyncpa [#allocation7], 0 }
   0xb   :  { %17 = vsyncpa [#allocation7 + $0x1], 0  ;;  %s1834_s18 = smov 0   ;;  %s1836_s19 = smov 0  }
   0xc   :  { %s1838_s20 = smov 0   ;;  %s1840_s21 = smov 0  }
   0xd   :  { %s1842_s22 = smov 0   ;;  %s1844_s23 = smov 0  }
   0xe   :  { %s1846_s24 = smov 0   ;;  %s1848_s25 = smov 0  }
   0xf   :  { %s1850_s26 = smov 0   ;;  %s1852_s27 = smov 0  }
  0x10   :  { %s1854_s28 = smov 0  }
  0x11 LB: > { %2586 = sst [smem:[#allocation19_spill]] %s1753_s18  ;;  %s1293_s29 = sadd.s32 4294967295, %s1793_s28   ;;  %s1793_s28 = sphi %s1854_s28, %s23_s28   ;;  %s1789_s27 = sphi %s1852_s27, %s2662_s27   ;;  %s1785_s26 = sphi %s1850_s26, %s2661_s26   ;;  %s1781_s25 = sphi %s1848_s25, %s2660_s25   ;;  %s1777_s24 = sphi %s1846_s24, %s2659_s24   ;;  %s1773_s23 = sphi %s1844_s23, %s2658_s23   ;;  %s1769_s22 = sphi %s1842_s22, %s2657_s22   ;;  %s1765_s21 = sphi %s1840_s21, %s2656_s21   ;;  %s1761_s20 = sphi %s1838_s20, %s2655_s20   ;;  %s1757_s19 = sphi %s1836_s19, %s2654_s19   ;;  %s1753_s18 = sphi %s1834_s18, %s2653_s18  }
  0x12   : > { %2587 = sst [smem:[#allocation20_spill]] %s1777_s24  ;;  %p63_p0 = scmp.ne.s32.totalorder %s1769_s22, %s1765_s21 }
  0x13   : > { %p64_p1 = scmp.eq.s32.totalorder %s1293_s29, 0  ;;  %s1294_s30 = sadd.s32 4294967294, %s1793_s28  }
  0x14   : > { %p89_p2 = scmp.ne.s32.totalorder %s1757_s19, %s1753_s18  ;;  %p190_p4 = scmp.ne.s32.totalorder %s1761_s20, %s1757_s19 }
  0x15   : > { %p1892_p3 = por %p64_p1, %p63_p0  ;;  %p191_p6 = scmp.eq.s32.totalorder %s1293_s29, 3 }
  0x16   : > { %p1898_p5 = por %p89_p2, %p64_p1  ;;  %p197_p7 = scmp.eq.s32.totalorder %s1294_s30, 3 }
  0x17   : > { %p1297_p8 = scmp.ge.s32.totalorder %s1793_s28, 1  ;;  %p1903_p9 = por %p191_p6, %p190_p4 }
  0x18   : > { %p204_p10 = scmp.lt.s32.totalorder %s1793_s28, 5  ;;  %p1908_p11 = por %p197_p7, %p89_p2 }
  0x19   : > { %s2590_s8 = scalar_select %p1903_p9, 1, 0 }
  0x1a   : > { %s2592_s9 = scalar_select %p1908_p11, 1, 0 }
  0x1b   : > { %2591 = sst [smem:[#allocation21_spill]] %s2590_s8  ;;  %s1335_s10 = sshll.u32 %s1781_s25, 9 }
  0x1c   : > { %2593 = sst [smem:[#allocation22_spill]] %s2592_s9  ;;  %p1913_p12 = pnand %p1297_p8, %p204_p10 }
  0x1d   : > { %s2595_s1 = sld [smem:[#allocation43_spill]]  ;;  %s1795_s16 = smov [#allocation8]  }
  0x1e   : > { %p1353_p13 = pneg %p1913_p12  ;;  %s220_s17 = sshll.u32 %s1795_s16, 4  ;;  %s221_s17 = int_to_ptr.vmem [resolvable:$true] %s220_s17 }
  0x1f   : > { %s2597_s2 = sld [smem:[#allocation44_spill]] }
  0x20   : > { %p1924_p0 = pnand %p1353_p13, %p1898_p5 }
  0x22   : > { %p1517_p2 = pneg %p1924_p0 }
  0x23   : > { %s217_s14 = scalar_lea.hbm %s2595_s1, %s1335_s10  ;;  %s1520_s29 = scalar_lea.hbm %s2595_s1, 1024 }
  0x24   : > { %s218_s15 = sshll.u32 %s217_s14, 4  ;;  %s219_s15 = int_to_ptr.hbm [resolvable:$true] %s218_s15 }
  0x25   : > { %s1931_s12 = scalar_lea.hbm %s2597_s2, %s1335_s10  ;;  %s1513_s14 = sshra.s32 %s219_s15, 4  ;;  %s1514_s14 = int_to_ptr.hbm [resolvable:$true] %s1513_s14 }
  0x26   : > { %s1515_s9 = scalar_lea.hbm %s1514_s14, 512  ;;  %p1521_p7 = scmp.lt.s32.totalorder %s1514_s14, %s2595_s1 }
  0x27   : > { %p1516_p1 = scmp.ne.s32.totalorder %s1514_s14, %s1515_s9  ;;  %p1522_p8 = scmp.lt.s32.totalorder %s1520_s29, %s1515_s9 }
  0x29   : > { %p1518_p4 = pnand %p1517_p2, %p1516_p1  ;;  %p1523_p10 = por %p1522_p8, %p1521_p7 }
  0x2b   : > { %p1519_p6 = pneg %p1518_p4 }
  0x2d   : > { %p1524_p13 = pnand %p1523_p10, %p1519_p6 }
  0x2f   : > { %1527 = shalt.err (!%p1524_p13)
}
  0x30   : > { %s2556_s10 = smov 512   ;;  %s1797_s13 = smov 32  }
  0x31   : > { %1356 = dma.hbm_to_vmem [thread:$0]  (!%p1924_p0), %s219_s15, 8192, %s221_s17, [#allocation9], %s2556_s10, %s2556_s10, %s1797_s13  }
  0x32   : > { %s1302_s18 = sshll.u32 %s1781_s25, 2  ;;  %s2598_s3 = sld [smem:[#allocation45_spill]] }
  0x33   : > { %s1798_s9 = smov [#allocation11]  }
  0x34   : > { %s254_s29 = sshll.u32 %s1798_s9, 4  ;;  %s255_s29 = int_to_ptr.vmem [resolvable:$true] %s254_s29 }
  0x38   : > { %s250_s8 = scalar_lea.hbm %s2598_s3, %s1302_s18  ;;  %s1550_s17 = scalar_lea.hbm %s2598_s3, 8 }
  0x39   : > { %s252_s14 = sshll.u32 %s250_s8, 4  ;;  %s253_s14 = int_to_ptr.hbm [resolvable:$true] %s252_s14 }
  0x3a   : > { %s1543_s30 = sshra.s32 %s253_s14, 4  ;;  %s1544_s30 = int_to_ptr.hbm [resolvable:$true] %s1543_s30 }
  0x3b   : > { %s1545_s1 = scalar_lea.hbm %s1544_s30, 4  ;;  %p1551_p7 = scmp.lt.s32.totalorder %s1544_s30, %s2598_s3 }
  0x3c   : > { %p1546_p1 = scmp.ne.s32.totalorder %s1544_s30, %s1545_s1  ;;  %p1552_p8 = scmp.lt.s32.totalorder %s1550_s17, %s1545_s1 }
  0x3e   : > { %p1548_p4 = pnand %p1546_p1, %p1517_p2  ;;  %p1553_p10 = por %p1552_p8, %p1551_p7 }
  0x40   : > { %p1549_p6 = pneg %p1548_p4 }
  0x42   : > { %p1554_p13 = pnand %p1553_p10, %p1549_p6 }
  0x44   : > { %1557 = shalt.err (!%p1554_p13)
}
  0x45   : > { %1362 = dma.hbm_to_vmem [thread:$0]  (!%p1924_p0), %s253_s14, 64, %s255_s29, [#allocation12]  }
  0x46   : > { %s2599_s18 = sshll.u32 %s1931_s12, 4  ;;  %s1799_s16 = smov [#allocation10]   ;;  %s236_s18 = int_to_ptr.hbm [resolvable:$true] %s2599_s18 }
  0x47   : > { %s237_s8 = sshll.u32 %s1799_s16, 4  ;;  %s1337_s24 = sshll.u32 %s1781_s25, 7  ;;  %s238_s8 = int_to_ptr.vmem [resolvable:$true] %s237_s8 }
  0x48   : > { %s2600_s4 = sld [smem:[#allocation46_spill]]  ;;  %s1573_s1 = sshra.s32 %s236_s18, 4  ;;  %s1574_s1 = int_to_ptr.hbm [resolvable:$true] %s1573_s1 }
  0x49   : > { %s1575_s30 = scalar_lea.hbm %s1574_s1, 512  ;;  %s1580_s12 = scalar_lea.hbm %s2597_s2, 1024 }
  0x4a   : > { %p1576_p1 = scmp.ne.s32.totalorder %s1574_s1, %s1575_s30  ;;  %p1581_p7 = scmp.lt.s32.totalorder %s1574_s1, %s2597_s2 }
  0x4b   : > { %p1582_p8 = scmp.lt.s32.totalorder %s1580_s12, %s1575_s30 }
  0x4c   : > { %p1578_p4 = pnand %p1576_p1, %p1517_p2 }
  0x4d   : > { %p1583_p10 = por %p1582_p8, %p1581_p7 }
  0x4e   : > { %s265_s10 = scalar_lea.hbm %s2600_s4, %s1337_s24  ;;  %p1579_p6 = pneg %p1578_p4 }
  0x50   : > { %p1584_p13 = pnand %p1583_p10, %p1579_p6 }
  0x52   : > { %1587 = shalt.err (!%p1584_p13)
}
  0x53   : > { %s2601_s16 = smov 512   ;;  %s266_s24 = sshll.u32 %s265_s10, 4  ;;  %s267_s24 = int_to_ptr.hbm [resolvable:$true] %s266_s24 }
  0x54   : > { %1359 = dma.hbm_to_vmem [thread:$0]  (!%p1924_p0), %s236_s18, 8192, %s238_s8, [#allocation9], %s2601_s16, %s2601_s16, %s1797_s13  }
  0x55   : > { %s1800_s9 = smov [#allocation13]   ;;  %s1603_s17 = sshra.s32 %s267_s24, 4  ;;  %s1604_s17 = int_to_ptr.hbm [resolvable:$true] %s1603_s17 }
  0x56   : > { %s268_s15 = sshll.u32 %s1800_s9, 4  ;;  %s1605_s14 = scalar_lea.hbm %s1604_s17, 128  ;;  %s269_s15 = int_to_ptr.vmem [resolvable:$true] %s268_s15 }
  0x57   : > { %p1606_p1 = scmp.ne.s32.totalorder %s1604_s17, %s1605_s14  ;;  %s1610_s12 = scalar_lea.hbm %s2600_s4, 256 }
  0x58   : > { %p1611_p7 = scmp.lt.s32.totalorder %s1604_s17, %s2600_s4  ;;  %p1612_p8 = scmp.lt.s32.totalorder %s1610_s12, %s1605_s14 }
  0x59   : > { %p1608_p4 = pnand %p1606_p1, %p1517_p2 }
  0x5a   : > { %p1613_p10 = por %p1612_p8, %p1611_p7 }
  0x5b   : > { %p1609_p6 = pneg %p1608_p4 }
  0x5d   : > { %p1614_p13 = pnand %p1613_p10, %p1609_p6 }
  0x5f   : > { %1617 = shalt.err (!%p1614_p13)
}
  0x60   : > { %s2557_s13 = smov 128   ;;  %s2558_s18 = smov 8  }
  0x61   : > { %1365 = dma.hbm_to_vmem [thread:$0]  (!%p1924_p0), %s267_s24, 2048, %s269_s15, [#allocation12], %s2557_s13, %s2557_s13, %s2558_s18  }
  0x62   : > { %s76_s8 = sadd.s32 1, %s1761_s20  ;;  %s32_s10 = sadd.s32 1, %s1785_s26 }
  0x63   : > { %p33_p2 = scmp.ge.s32.totalorder %s32_s10, 2  ;;  %s35_s16 = sadd.s32 1, %s1789_s27 }
  0x64   : > { %s1295_s9 = sshll.u32 %s1785_s26, 1  ;;  %p57_p0 = scmp.ne.s32.totalorder %s1773_s23, %s1769_s22 }
  0x65   : > { %s2664_s10 = smov (%p33_p2, %s32_s10), 0  ;;  %s2666_s16 = smov (!%p33_p2, %s35_s16), %s1789_s27 }
  0x66   : > { %s40_s17 = ssub.s32 1, %s1295_s9  ;;  %s1296_s21 = sshll.u32 %s2664_s10, 1 }
  0x67   : > { %p37_p1 = scmp.ge.s32.totalorder %s2666_s16, 2  ;;  %s41_s14 = smul.u32 %s1789_s27, %s40_s17 }
  0x68   : > { %s44_s24 = ssub.s32 1, %s1296_s21  ;;  %p58_p4 = scmp.eq.s32.totalorder %s1793_s28, 0 }
  0x69   : > { %s2668_s16 = smov (%p37_p1, %s2666_s16), 0  ;;  %s42_s15 = sadd.s32 %s1785_s26, %s41_s14 }
  0x6a   : > { %s45_s1 = smul.u32 %s44_s24, %s2668_s16  ;;  %s73_s30 = ssub.s32 %s1789_s27, %s2668_s16 }
  0x6b   : > { %s50_s12 = sadd.s32 1, %s1773_s23  ;;  %p74_p6 = scmp.eq.s32.totalorder %s73_s30, 0 }
  0x6c   : > { %s46_s29 = sadd.s32 %s45_s1, %s2664_s10  ;;  %p2019_p7 = por %p58_p4, %p57_p0 }
  0x6d   : > { %s47_s9 = ssub.s32 %s42_s15, %s46_s29  ;;  %p1374_p8 = scmp.lt.s32.totalorder %s1793_s28, 4 }
  0x6e   : > { %p48_p10 = scmp.eq.s32.totalorder %s47_s9, 0  ;;  %s282_s17 = sand.u32 1, %s1773_s23  }
  0x6f   : > { %s2026_s21 = scalar_select %p74_p6, %s1761_s20, %s76_s8  }
  0x70   : > { %s2029_s13 = scalar_select %p48_p10, %s1773_s23, %s50_s12  }
  0x71   : > { %s1306_s14 = sshll.u32 %s282_s17, 5  ;;  %s1338_s24 = sshll.u32 %s42_s15, 5 }
  0x72   : > { %s295_s1 = scalar_lea.hbm %s2545_s0, %s1338_s24  ;;  %s286_s3 = scalar_lea.vmem [#allocation5], %s1306_s14 }
  0x73   : > { %s296_s30 = sshll.u32 %s295_s1, 4  ;;  %s298_s4 = sshll.u32 %s286_s3, 4  ;;  %s297_s30 = int_to_ptr.hbm [resolvable:$true] %s296_s30  ;;  %s299_s4 = int_to_ptr.vmem [resolvable:$true] %s298_s4 }
  0x74   : > { %p2038_p13 = pnand %p1374_p8, %p2019_p7  ;;  %s283_s8 = scalar_lea.sflag [#allocation6], %s282_s17 }
  0x75   : > { %s1633_s12 = sshra.s32 %s297_s30, 4  ;;  %s1640_s18 = scalar_lea.hbm %s2545_s0, 64  ;;  %s1634_s12 = int_to_ptr.hbm [resolvable:$true] %s1633_s12 }
  0x76   : > { %s1635_s15 = scalar_lea.hbm %s1634_s12, 32  ;;  %p1637_p1 = pneg %p2038_p13 }
  0x77   : > { %p1636_p2 = scmp.ne.s32.totalorder %s1634_s12, %s1635_s15  ;;  %p1641_p6 = scmp.lt.s32.totalorder %s1634_s12, %s2545_s0 }
  0x78   : > { %p1642_p7 = scmp.lt.s32.totalorder %s1640_s18, %s1635_s15 }
  0x79   : > { %p1638_p0 = pnand %p1637_p1, %p1636_p2 }
  0x7a   : > { %p1643_p8 = por %p1642_p7, %p1641_p6 }
  0x7b   : > { %p1639_p4 = pneg %p1638_p0 }
  0x7d   : > { %p1644_p10 = pnand %p1643_p8, %p1639_p4 }
  0x7f   : > { %1647 = shalt.err (!%p1644_p10)
}
  0x80   : > { %s2604_s17 = smov 8   ;;  %s2605_s14 = smov 128  }
  0x81   : > { %1369 = dma.hbm_to_vmem [thread:$0]  (!%p2038_p13), %s297_s30, 512, %s299_s4, %s283_s8, %s2605_s14, %s2605_s14, %s2604_s17  }
  0x82   : > { %310 = sbr.rel (%p1913_p12) target bundleno = 1035 (0x40b), region = 40 }
  0x87   : > { %s312_s24 = sand.u32 1, %s1769_s22  }
  0x88   : > { %s1311_s1 = sshll.u32 %s312_s24, 5  ;;  %s313_s2 = scalar_lea.sflag [#allocation6], %s312_s24 }
  0x89   : > { %s2058_s3 = scalar_lea.vmem [#allocation5], %s1311_s1 }
  0x8a   : > { %1736 = dma.done.wait (%p1892_p3), %s313_s2, 512  }
  0x8b   : > { %1738 = vsyncadd (%p1892_p3), %s313_s2, 4294966784 }
  0x8c   : > { %1740 = dma.done.wait (%p1898_p5), [#allocation9], 16384  }
  0x8d   : > { %1742 = vsyncadd (%p1898_p5), [#allocation9], 4294950912 }
  0x8e   : > { %1744 = dma.done.wait (%p1898_p5), [#allocation12], 2112  }
  0x8f   : > { %1746 = vsyncadd (%p1898_p5), [#allocation12], 4294965184  ;;  %s361_s4 = sand.u32 1, %s1757_s19   ;;  %s2606_s6 = sld [smem:[#allocation20_spill]] }
  0x90   : > { %s1312_s11 = sshll.u32 %s361_s4, 3 }
  0x91   : > { %s2075_s30 = scalar_lea.vmem [#allocation14], %s1312_s11 }
  0x95   : > { %p1313_p3 = scmp.ne.s32.totalorder %s2606_s6, 0 }
  0x96   : > { %s1314_s29 = sshll.u32 (!%p1313_p3), %s1781_s25, 3 }
  0x97   : > { %372 = sbr.rel (%p1313_p3) target bundleno = 160 (0xa0), region = 64  ;;  %s374_s8 = scalar_lea.vmem (!%p1313_p3), [#allocation2], %s1314_s29 }
  0x98   : > { %s376_s12 = scalar_lea.vmem (!%p1313_p3), [#allocation3], %s1314_s29 }
  0x9c   : > { %v1803_v0 = vmov 0.0  }
  0x9d   : > { %378 = vst [vmem:[%s2075_s30] sm:$0xff] %v1803_v0 }
  0x9e   : > { %375 = vst [vmem:[%s374_s8] sm:$0xff] %v1803_v0 }
  0x9f   : > { %377 = vst [vmem:[%s376_s12] sm:$0xff] %v1803_v0 }
  0xa0 PF: > { %v445_v1 = vld [vmem:[#allocation8 + $0x1f0] sm:$0xff]  ;;  %v446_v2 = vld [vmem:[#allocation8 + $0x1f8] sm:$0xff]  ;;  %v443_v7 = vld [vmem:[#allocation8 + $0x1e0] sm:$0xff]  ;;  %s2231_s7 = sshll.u32 %s1781_s25, 3  ;;  %s1339_s18 = smul.u32 96, %s1781_s25 }
  0xa1   : > { %v441_v3 = vld [vmem:[#allocation8 + $0x1d0] sm:$0xff]  ;;  %515 = vmatpush.msra.mxu2 %v445_v1  ;;  %544 = vmatpush.msra.mxu3 %v446_v2  ;;  %v442_v4 = vld [vmem:[#allocation8 + $0x1d8] sm:$0xff]  ;;  %v444_v8 = vld [vmem:[#allocation8 + $0x1e8] sm:$0xff]  ;;  %s590_s15 = scalar_lea.vmem [#allocation2], %s2231_s7  ;;  %s592_s9 = scalar_lea.vmem [#allocation3], %s2231_s7 }
  0xa2   : > { %v437_v5 = vld [vmem:[#allocation8 + $0x1b0] sm:$0xff]  ;;  %v438_v6 = vld [vmem:[#allocation8 + $0x1b8] sm:$0xff]  ;;  %v439_v9 = vld [vmem:[#allocation8 + $0x1c0] sm:$0xff]  ;;  %457 = vmatpush.msra.mxu0 %v443_v7  ;;  %486 = vmatpush.msra.mxu1 %v444_v8  ;;  %s597_s5 = scalar_lea.vmem [#allocation4], %s1339_s18  ;;  %s1318_s17 = sshll.u32 %s1781_s25, 5 }
  0xa3   : > { %516 = vmatpush.msra.mxu2 %v441_v3  ;;  %545 = vmatpush.msra.mxu3 %v442_v4  ;;  %v440_v10 = vld [vmem:[#allocation8 + $0x1c8] sm:$0xff]  ;;  %v433_v11 = vld [vmem:[#allocation8 + $0x190] sm:$0xff]  ;;  %v434_v12 = vld [vmem:[#allocation8 + $0x198] sm:$0xff]  ;;  %s1206_s14 = scalar_lea.vmem [#allocation4], %s1318_s17  ;;  %s872_s24 = ssub.s32 2, %s1781_s25 }
  0xa4   : > { %v435_v13 = vld [vmem:[#allocation8 + $0x1a0] sm:$0xff]  ;;  %v436_v14 = vld [vmem:[#allocation8 + $0x1a8] sm:$0xff]  ;;  %458 = vmatpush.msra.mxu0 %v439_v9  ;;  %487 = vmatpush.msra.mxu1 %v440_v10  ;;  %v429_v15 = vld [vmem:[#allocation8 + $0x170] sm:$0xff]  ;;  %s1340_s1 = sshll.u32 %s872_s24, 5 }
  0xa5   : > { %517 = vmatpush.msra.mxu2 %v437_v5  ;;  %546 = vmatpush.msra.mxu3 %v438_v6  ;;  %v430_v16 = vld [vmem:[#allocation8 + $0x178] sm:$0xff]  ;;  %v431_v17 = vld [vmem:[#allocation8 + $0x180] sm:$0xff]  ;;  %v432_v18 = vld [vmem:[#allocation8 + $0x188] sm:$0xff]  ;;  %s875_s2 = scalar_lea.vmem [#allocation4], %s1340_s1 }
  0xa6   : > { %459 = vmatpush.msra.mxu0 %v435_v13  ;;  %488 = vmatpush.msra.mxu1 %v436_v14  ;;  %v425_v19 = vld [vmem:[#allocation8 + $0x150] sm:$0xff]  ;;  %v426_v20 = vld [vmem:[#allocation8 + $0x158] sm:$0xff]  ;;  %v427_v21 = vld [vmem:[#allocation8 + $0x160] sm:$0xff] }
  0xa7   : > { %518 = vmatpush.msra.mxu2 %v433_v11  ;;  %547 = vmatpush.msra.mxu3 %v434_v12  ;;  %v428_v22 = vld [vmem:[#allocation8 + $0x168] sm:$0xff]  ;;  %v421_v23 = vld [vmem:[#allocation8 + $0x130] sm:$0xff]  ;;  %v422_v24 = vld [vmem:[#allocation8 + $0x138] sm:$0xff] }
  0xa8   : > { %460 = vmatpush.msra.mxu0 %v431_v17  ;;  %489 = vmatpush.msra.mxu1 %v432_v18  ;;  %v423_v25 = vld [vmem:[#allocation8 + $0x140] sm:$0xff]  ;;  %v424_v26 = vld [vmem:[#allocation8 + $0x148] sm:$0xff]  ;;  %v417_v27 = vld [vmem:[#allocation8 + $0x110] sm:$0xff] }
  0xa9   : > { %519 = vmatpush.msra.mxu2 %v429_v15  ;;  %548 = vmatpush.msra.mxu3 %v430_v16  ;;  %v418_v28 = vld [vmem:[#allocation8 + $0x118] sm:$0xff]  ;;  %v419_v29 = vld [vmem:[#allocation8 + $0x120] sm:$0xff]  ;;  %v420_v30 = vld [vmem:[#allocation8 + $0x128] sm:$0xff] }
  0xaa   : > { %461 = vmatpush.msra.mxu0 %v427_v21  ;;  %490 = vmatpush.msra.mxu1 %v428_v22  ;;  %v413_v31 = vld [vmem:[#allocation8 + $0xf0] sm:$0xff]  ;;  %v414_v32 = vld [vmem:[#allocation8 + $0xf8] sm:$0xff]  ;;  %v415_v33 = vld [vmem:[#allocation8 + $0x100] sm:$0xff] }
  0xab   : > { %520 = vmatpush.msra.mxu2 %v425_v19  ;;  %549 = vmatpush.msra.mxu3 %v426_v20  ;;  %v416_v34 = vld [vmem:[#allocation8 + $0x108] sm:$0xff]  ;;  %v409_v35 = vld [vmem:[#allocation8 + $0xd0] sm:$0xff]  ;;  %v410_v36 = vld [vmem:[#allocation8 + $0xd8] sm:$0xff] }
  0xac   : > { %462 = vmatpush.msra.mxu0 %v423_v25  ;;  %491 = vmatpush.msra.mxu1 %v424_v26  ;;  %v411_v37 = vld [vmem:[#allocation8 + $0xe0] sm:$0xff]  ;;  %v412_v38 = vld [vmem:[#allocation8 + $0xe8] sm:$0xff]  ;;  %v405_v39 = vld [vmem:[#allocation8 + $0xb0] sm:$0xff] }
  0xad   : > { %521 = vmatpush.msra.mxu2 %v421_v23  ;;  %550 = vmatpush.msra.mxu3 %v422_v24  ;;  %v406_v40 = vld [vmem:[#allocation8 + $0xb8] sm:$0xff]  ;;  %v407_v41 = vld [vmem:[#allocation8 + $0xc0] sm:$0xff]  ;;  %v408_v42 = vld [vmem:[#allocation8 + $0xc8] sm:$0xff] }
  0xae   : > { %463 = vmatpush.msra.mxu0 %v419_v29  ;;  %492 = vmatpush.msra.mxu1 %v420_v30  ;;  %v401_v43 = vld [vmem:[#allocation8 + $0x90] sm:$0xff]  ;;  %v402_v44 = vld [vmem:[#allocation8 + $0x98] sm:$0xff]  ;;  %v403_v45 = vld [vmem:[#allocation8 + $0xa0] sm:$0xff] }
  0xaf   : > { %522 = vmatpush.msra.mxu2 %v417_v27  ;;  %551 = vmatpush.msra.mxu3 %v418_v28  ;;  %v404_v46 = vld [vmem:[#allocation8 + $0xa8] sm:$0xff]  ;;  %v397_v47 = vld [vmem:[#allocation8 + $0x70] sm:$0xff]  ;;  %v398_v48 = vld [vmem:[#allocation8 + $0x78] sm:$0xff] }
  0xb0   : > { %464 = vmatpush.msra.mxu0 %v415_v33  ;;  %493 = vmatpush.msra.mxu1 %v416_v34  ;;  %v399_v49 = vld [vmem:[#allocation8 + $0x80] sm:$0xff]  ;;  %v400_v50 = vld [vmem:[#allocation8 + $0x88] sm:$0xff]  ;;  %v393_v51 = vld [vmem:[#allocation8 + $0x50] sm:$0xff] }
  0xb1   : > { %523 = vmatpush.msra.mxu2 %v413_v31  ;;  %552 = vmatpush.msra.mxu3 %v414_v32  ;;  %v394_v52 = vld [vmem:[#allocation8 + $0x58] sm:$0xff]  ;;  %v395_v53 = vld [vmem:[#allocation8 + $0x60] sm:$0xff]  ;;  %v396_v54 = vld [vmem:[#allocation8 + $0x68] sm:$0xff] }
  0xb2   : > { %465 = vmatpush.msra.mxu0 %v411_v37  ;;  %494 = vmatpush.msra.mxu1 %v412_v38  ;;  %v389_v55 = vld [vmem:[#allocation8 + $0x30] sm:$0xff]  ;;  %v390_v56 = vld [vmem:[#allocation8 + $0x38] sm:$0xff]  ;;  %v391_v57 = vld [vmem:[#allocation8 + $0x40] sm:$0xff] }
  0xb3   : > { %524 = vmatpush.msra.mxu2 %v409_v35  ;;  %553 = vmatpush.msra.mxu3 %v410_v36  ;;  %v392_v58 = vld [vmem:[#allocation8 + $0x48] sm:$0xff]  ;;  %v385_v59 = vld [vmem:[#allocation8 + $0x10] sm:$0xff]  ;;  %v386_v60 = vld [vmem:[#allocation8 + $0x18] sm:$0xff] }
  0xb4   : > { %466 = vmatpush.msra.mxu0 %v407_v41  ;;  %495 = vmatpush.msra.mxu1 %v408_v42  ;;  %v379_v61 = vld [vmem:[%s2058_s3] sm:$0xff]  ;;  %v388_v63 = vld [vmem:[#allocation8 + $0x28] sm:$0xff]  ;;  %v2081_v0 = vld [vmem:[#allocation10 + $0x1f0] sm:$0xff] }
  0xb5   : > { %525 = vmatpush.msra.mxu2 %v405_v39  ;;  %554 = vmatpush.msra.mxu3 %v406_v40  ;;  %v387_v62 = vld [vmem:[#allocation8 + $0x20] sm:$0xff]  ;;  %v2083_v1 = vld [vmem:[#allocation10 + $0x1f8] sm:$0xff]  ;;  %v384_v3 = vld [vmem:[#allocation8 + $0x8] sm:$0xff] }
  0xb6   : > { %467 = vmatpush.msra.mxu0 %v403_v45  ;;  %496 = vmatpush.msra.mxu1 %v404_v46  ;;  %v383_v2 = vld [vmem:[#allocation8] sm:$0xff]  ;;  %v2085_v4 = vld [vmem:[#allocation10 + $0x1d0] sm:$0xff]  ;;  %v2087_v5 = vld [vmem:[#allocation10 + $0x1d8] sm:$0xff] }
  0xb7   : > { %526 = vmatpush.msra.mxu2 %v401_v43  ;;  %555 = vmatpush.msra.mxu3 %v402_v44  ;;  %v2091_v6 = vld [vmem:[#allocation10 + $0x1b0] sm:$0xff]  ;;  %v2093_v7 = vld [vmem:[#allocation10 + $0x1b8] sm:$0xff]  ;;  %v2097_v8 = vld [vmem:[#allocation10 + $0x1e0] sm:$0xff] }
  0xb8   : > { %468 = vmatpush.msra.mxu0 %v399_v49  ;;  %497 = vmatpush.msra.mxu1 %v400_v50  ;;  %v2099_v9 = vld [vmem:[#allocation10 + $0x1e8] sm:$0xff]  ;;  %v2104_v11 = vld [vmem:[#allocation10 + $0x190] sm:$0xff]  ;;  %v2106_v12 = vld [vmem:[#allocation10 + $0x198] sm:$0xff] }
  0xb9   : > { %527 = vmatpush.msra.mxu2 %v397_v47  ;;  %556 = vmatpush.msra.mxu3 %v398_v48  ;;  %v380_v10 = vld [vmem:[%s2058_s3 + $0x8] sm:$0xff]  ;;  %v2110_v13 = vld [vmem:[#allocation10 + $0x1c0] sm:$0xff]  ;;  %v2114_v15 = vld [vmem:[#allocation10 + $0x170] sm:$0xff] }
  0xba   : > { %469 = vmatpush.msra.mxu0 %v395_v53  ;;  %498 = vmatpush.msra.mxu1 %v396_v54  ;;  %v2112_v14 = vld [vmem:[#allocation10 + $0x1c8] sm:$0xff]  ;;  %v2116_v16 = vld [vmem:[#allocation10 + $0x178] sm:$0xff]  ;;  %v2120_v17 = vld [vmem:[#allocation10 + $0x1a0] sm:$0xff] }
  0xbb   : > { %528 = vmatpush.msra.mxu2 %v393_v51  ;;  %557 = vmatpush.msra.mxu3 %v394_v52  ;;  %v2122_v18 = vld [vmem:[#allocation10 + $0x1a8] sm:$0xff]  ;;  %v2126_v19 = vld [vmem:[#allocation10 + $0x150] sm:$0xff]  ;;  %v2128_v20 = vld [vmem:[#allocation10 + $0x158] sm:$0xff] }
  0xbc   : > { %470 = vmatpush.msra.mxu0 %v391_v57  ;;  %499 = vmatpush.msra.mxu1 %v392_v58  ;;  %v2134_v21 = vld [vmem:[#allocation10 + $0x180] sm:$0xff]  ;;  %v2136_v22 = vld [vmem:[#allocation10 + $0x188] sm:$0xff]  ;;  %v2140_v23 = vld [vmem:[#allocation10 + $0x130] sm:$0xff] }
  0xbd   : > { %529 = vmatpush.msra.mxu2 %v389_v55  ;;  %558 = vmatpush.msra.mxu3 %v390_v56  ;;  %v2142_v24 = vld [vmem:[#allocation10 + $0x138] sm:$0xff]  ;;  %v381_v25 = vld [vmem:[%s2058_s3 + $0x10] sm:$0xff]  ;;  %v2147_v26 = vld [vmem:[#allocation10 + $0x160] sm:$0xff] }
  0xbe   : > { %471 = vmatpush.msra.mxu0 %v387_v62  ;;  %500 = vmatpush.msra.mxu1 %v388_v63  ;;  %v2149_v27 = vld [vmem:[#allocation10 + $0x168] sm:$0xff]  ;;  %v2153_v28 = vld [vmem:[#allocation10 + $0x110] sm:$0xff]  ;;  %v2155_v29 = vld [vmem:[#allocation10 + $0x118] sm:$0xff] }
  0xbf   : > { %530 = vmatpush.msra.mxu2 %v385_v59  ;;  %559 = vmatpush.msra.mxu3 %v386_v60  ;;  %v2157_v30 = vld [vmem:[#allocation10 + $0x140] sm:$0xff]  ;;  %v2159_v31 = vld [vmem:[#allocation10 + $0x148] sm:$0xff]  ;;  %v2163_v32 = vld [vmem:[#allocation10 + $0xf0] sm:$0xff] }
  0xc0   : > { %531 = vmatmul.f32.vlgmr.msra.gmra.mxu2 %v379_v61  ;;  %560 = vmatmul.f32.vlgmr.msra.gmra.mxu3 %v379_v61  ;;  %v2165_v33 = vld [vmem:[#allocation10 + $0xf8] sm:$0xff]  ;;  %v2169_v34 = vld [vmem:[#allocation10 + $0x120] sm:$0xff]  ;;  %v2171_v35 = vld [vmem:[#allocation10 + $0x128] sm:$0xff] }
  0xc1   : > { %706 = vmatpush.msrb.mxu2 %v2081_v0  ;;  %726 = vmatpush.msrb.mxu3 %v2083_v1  ;;  %v2175_v36 = vld [vmem:[#allocation10 + $0xd0] sm:$0xff]  ;;  %v2177_v37 = vld [vmem:[#allocation10 + $0xd8] sm:$0xff]  ;;  %v2183_v38 = vld [vmem:[#allocation10 + $0x100] sm:$0xff] }
  0xc2   : > { %472 = vmatpush.msra.mxu0 %v383_v2  ;;  %501 = vmatpush.msra.mxu1 %v384_v3  ;;  %v2185_v39 = vld [vmem:[#allocation10 + $0x108] sm:$0xff]  ;;  %v2189_v40 = vld [vmem:[#allocation10 + $0xb0] sm:$0xff]  ;;  %v2191_v41 = vld [vmem:[#allocation10 + $0xb8] sm:$0xff] }
  0xc3   : > { %707 = vmatpush.msrb.mxu2 %v2085_v4  ;;  %727 = vmatpush.msrb.mxu3 %v2087_v5  ;;  %v382_v42 = vld [vmem:[%s2058_s3 + $0x18] sm:$0xff]  ;;  %v2196_v43 = vld [vmem:[#allocation10 + $0xe0] sm:$0xff]  ;;  %v2198_v44 = vld [vmem:[#allocation10 + $0xe8] sm:$0xff]  ;;  %s1325_s3 = smul.u32 4294967200, %s1781_s25  ;;  %s2648_s25 = sld [smem:[#allocation20_spill]] }
  0xc4   : > { %473 = vmatmul.f32.vlgmr.msra.gmra.mxu0 %v379_v61  ;;  %502 = vmatmul.f32.vlgmr.msra.gmra.mxu1 %v379_v61  ;;  %v2202_v45 = vld [vmem:[#allocation10 + $0x90] sm:$0xff]  ;;  %v2204_v46 = vld [vmem:[#allocation10 + $0x98] sm:$0xff]  ;;  %v2206_v47 = vld [vmem:[#allocation10 + $0xc0] sm:$0xff] }
  0xc5   : > { %708 = vmatpush.msrb.mxu2 %v2091_v6  ;;  %728 = vmatpush.msrb.mxu3 %v2093_v7  ;;  %2607 = vst [vmem:[#allocation23_spill] sm:$0xff] %v2202_v45  ;;  %v2208_v48 = vld [vmem:[#allocation10 + $0xc8] sm:$0xff]  ;;  %v2212_v49 = vld [vmem:[#allocation10 + $0x70] sm:$0xff]  ;;  %v2214_v50 = vld [vmem:[#allocation10 + $0x78] sm:$0xff]  ;;  %s1212_s11 = scalar_lea.vmem [#allocation4], %s1325_s3 }
  0xc6   : > { %666 = vmatpush.msrb.mxu0 %v2097_v8  ;;  %686 = vmatpush.msrb.mxu1 %v2099_v9  ;;  %2608 = vst [vmem:[#allocation24_spill] sm:$0xff] %v2204_v46  ;;  %v2218_v51 = vld [vmem:[#allocation10 + $0xa0] sm:$0xff]  ;;  %v2220_v52 = vld [vmem:[#allocation10 + $0xa8] sm:$0xff]  ;;  %v2224_v53 = vld [vmem:[#allocation10 + $0x50] sm:$0xff] }
  0xc7   : > { %709 = vmatpush.msrb.mxu2 %v2104_v11  ;;  %729 = vmatpush.msrb.mxu3 %v2106_v12  ;;  %2609 = vst [vmem:[#allocation25_spill] sm:$0xff] %v2212_v49  ;;  %v2226_v54 = vld [vmem:[#allocation10 + $0x58] sm:$0xff]  ;;  %v2235_v55 = vld [vmem:[#allocation10 + $0x80] sm:$0xff]  ;;  %v2237_v56 = vld [vmem:[#allocation10 + $0x88] sm:$0xff] }
  0xc8   : > { %534 = vmatmul.f32.gmra.mxu2 %v380_v10  ;;  %563 = vmatmul.f32.gmra.mxu3 %v380_v10  ;;  %2610 = vst [vmem:[#allocation26_spill] sm:$0xff] %v2214_v50  ;;  %v2241_v57 = vld [vmem:[#allocation10 + $0x30] sm:$0xff]  ;;  %v2243_v58 = vld [vmem:[#allocation10 + $0x38] sm:$0xff]  ;;  %v2245_v59 = vld [vmem:[#allocation10 + $0x60] sm:$0xff] }
  0xc9   : > { %667 = vmatpush.msrb.mxu0 %v2110_v13  ;;  %687 = vmatpush.msrb.mxu1 %v2112_v14  ;;  %2611 = vst [vmem:[#allocation27_spill] sm:$0xff] %v2224_v53  ;;  %v2247_v60 = vld [vmem:[#allocation10 + $0x68] sm:$0xff]  ;;  %v2251_v61 = vld [vmem:[#allocation10 + $0x10] sm:$0xff]  ;;  %v2253_v62 = vld [vmem:[#allocation10 + $0x18] sm:$0xff]  ;;  %p1330_p5 = scmp.ne.s32.totalorder %s2648_s25, 1 }
  0xca   : > { %710 = vmatpush.msrb.mxu2 %v2114_v15  ;;  %730 = vmatpush.msrb.mxu3 %v2116_v16  ;;  %2612 = vst [vmem:[#allocation28_spill] sm:$0xff] %v2226_v54  ;;  %v2257_v63 = vld [vmem:[#allocation10 + $0x40] sm:$0xff]  ;;  %v2259_v2 = vld [vmem:[#allocation10 + $0x48] sm:$0xff] }
  0xcb   : > { %668 = vmatpush.msrb.mxu0 %v2120_v17  ;;  %688 = vmatpush.msrb.mxu1 %v2122_v18  ;;  %2613 = vst [vmem:[#allocation29_spill] sm:$0xff] %v2235_v55  ;;  %v591_v3 = vld [vmem:[%s590_s15] sm:$0xff] }
  0xcc   : > { %711 = vmatpush.msrb.mxu2 %v2126_v19  ;;  %731 = vmatpush.msrb.mxu3 %v2128_v20  ;;  %2614 = vst [vmem:[#allocation30_spill] sm:$0xff] %v2237_v56 }
  0xcd   : > { %476 = vmatmul.f32.gmra.mxu0 %v380_v10  ;;  %505 = vmatmul.f32.gmra.mxu1 %v380_v10  ;;  %2615 = vst [vmem:[#allocation31_spill] sm:$0xff] %v2241_v57  ;;  %v2268_v10 = vld [vmem:[#allocation10 + $0x20] sm:$0xff] }
  0xce   : > { %669 = vmatpush.msrb.mxu0 %v2134_v21  ;;  %689 = vmatpush.msrb.mxu1 %v2136_v22  ;;  %2616 = vst [vmem:[#allocation32_spill] sm:$0xff] %v2243_v58 }
  0xcf   : > { %712 = vmatpush.msrb.mxu2 %v2140_v23  ;;  %732 = vmatpush.msrb.mxu3 %v2142_v24  ;;  %2617 = vst [vmem:[#allocation33_spill] sm:$0xff] %v2245_v59 }
  0xd0   : > { %537 = vmatmul.f32.gmra.mxu2 %v381_v25  ;;  %566 = vmatmul.f32.gmra.mxu3 %v381_v25  ;;  %2618 = vst [vmem:[#allocation34_spill] sm:$0xff] %v2247_v60 }
  0xd1   : > { %670 = vmatpush.msrb.mxu0 %v2147_v26  ;;  %690 = vmatpush.msrb.mxu1 %v2149_v27  ;;  %2619 = vst [vmem:[#allocation35_spill] sm:$0xff] %v2251_v61 }
  0xd2   : > { %713 = vmatpush.msrb.mxu2 %v2153_v28  ;;  %733 = vmatpush.msrb.mxu3 %v2155_v29  ;;  %2620 = vst [vmem:[#allocation36_spill] sm:$0xff] %v2253_v62 }
  0xd3   : > { %671 = vmatpush.msrb.mxu0 %v2157_v30  ;;  %691 = vmatpush.msrb.mxu1 %v2159_v31  ;;  %2621 = vst [vmem:[#allocation37_spill] sm:$0xff] %v2257_v63 }
  0xd4   : > { %714 = vmatpush.msrb.mxu2 %v2163_v32  ;;  %734 = vmatpush.msrb.mxu3 %v2165_v33  ;;  %2622 = vst [vmem:[#allocation38_spill] sm:$0xff] %v2259_v2 }
  0xd5   : > { %672 = vmatpush.msrb.mxu0 %v2169_v34  ;;  %692 = vmatpush.msrb.mxu1 %v2171_v35  ;;  %2623 = vst [vmem:[#allocation39_spill] sm:$0xff] %v2268_v10 }
  0xd6   : > { %715 = vmatpush.msrb.mxu2 %v2175_v36  ;;  %735 = vmatpush.msrb.mxu3 %v2177_v37 }
  0xd7   : > { %479 = vmatmul.f32.gmra.mxu0 %v381_v25  ;;  %508 = vmatmul.f32.gmra.mxu1 %v381_v25  ;;  %v2270_v25 = vld [vmem:[#allocation10 + $0x28] sm:$0xff] }
  0xd8   : > { %673 = vmatpush.msrb.mxu0 %v2183_v38  ;;  %693 = vmatpush.msrb.mxu1 %v2185_v39  ;;  %2624 = vst [vmem:[#allocation40_spill] sm:$0xff] %v2270_v25 }
  0xd9   : > { %716 = vmatpush.msrb.mxu2 %v2189_v40  ;;  %736 = vmatpush.msrb.mxu3 %v2191_v41 }
  0xda   : > { %540 = vmatmul.f32.gmra.mxu2 %v382_v42  ;;  %569 = vmatmul.f32.gmra.mxu3 %v382_v42 }
  0xdb   : > { %674 = vmatpush.msrb.mxu0 %v2196_v43  ;;  %694 = vmatpush.msrb.mxu1 %v2198_v44 }
  0xdc   : > { %717 = vmatpush.msrb.mxu2 %v2202_v45  ;;  %737 = vmatpush.msrb.mxu3 %v2204_v46 }
  0xdd   : > { %675 = vmatpush.msrb.mxu0 %v2206_v47  ;;  %695 = vmatpush.msrb.mxu1 %v2208_v48 }
  0xde   : > { %718 = vmatpush.msrb.mxu2 %v2212_v49  ;;  %738 = vmatpush.msrb.mxu3 %v2214_v50 }
  0xdf   : > { %676 = vmatpush.msrb.mxu0 %v2218_v51  ;;  %696 = vmatpush.msrb.mxu1 %v2220_v52 }
  0xe0   : > { %719 = vmatpush.msrb.mxu2 %v2224_v53  ;;  %739 = vmatpush.msrb.mxu3 %v2226_v54 }
  0xe1   : > { %482 = vmatmul.f32.gmra.mxu0 %v382_v42  ;;  %511 = vmatmul.f32.gmra.mxu1 %v382_v42  ;;  %v2274_v42 = vld [vmem:[#allocation10] sm:$0xff] }
  0xe2   : > { %677 = vmatpush.msrb.mxu0 %v2235_v55  ;;  %697 = vmatpush.msrb.mxu1 %v2237_v56  ;;  %2625 = vst [vmem:[#allocation41_spill] sm:$0xff] %v2274_v42 }
  0xe3   : > { %720 = vmatpush.msrb.mxu2 %v2241_v57  ;;  %740 = vmatpush.msrb.mxu3 %v2243_v58  ;;  %v2276_v58 = vld [vmem:[#allocation10 + $0x8] sm:$0xff] }
  0xe4   : > { %678 = vmatpush.msrb.mxu0 %v2245_v59  ;;  %698 = vmatpush.msrb.mxu1 %v2247_v60  ;;  %2626 = vst [vmem:[#allocation42_spill] sm:$0xff] %v2276_v58 }
  0xe5   : > { %721 = vmatpush.msrb.mxu2 %v2251_v61  ;;  %741 = vmatpush.msrb.mxu3 %v2253_v62 }
  0xe6   : > { %679 = vmatpush.msrb.mxu0 %v2257_v63  ;;  %699 = vmatpush.msrb.mxu1 %v2259_v2 }
  0xe7   : > { %722 = vmatmul.f32.vlgmr.msrb.gmra.mxu2 %v591_v3  ;;  %742 = vmatmul.f32.vlgmr.msrb.gmra.mxu3 %v591_v3 }
  0xe8   : > { %680 = vmatpush.msrb.mxu0 %v2268_v10  ;;  %700 = vmatpush.msrb.mxu1 %v2270_v25 }
  0xe9   : > { %813 = vmatpush.msra.mxu2 %v2081_v0  ;;  %833 = vmatpush.msra.mxu3 %v2083_v1 }
  0xea   : > { %681 = vmatpush.msrb.mxu0 %v2274_v42  ;;  %701 = vmatpush.msrb.mxu1 %v2276_v58 }
  0xeb   : > { %682 = vmatmul.f32.vlgmr.msrb.gmra.mxu0 %v591_v3  ;;  %702 = vmatmul.f32.vlgmr.msrb.gmra.mxu1 %v591_v3  ;;  %v2627_v3 = vld [vmem:[#allocation32_spill] sm:$0xff] }
  0xec   : > { %773 = vmatpush.msra.mxu0 %v2097_v8  ;;  %793 = vmatpush.msra.mxu1 %v2099_v9 }
  0xed   : > { %814 = vmatpush.msra.mxu2 %v2085_v4  ;;  %834 = vmatpush.msra.mxu3 %v2087_v5 }
  0xee   : > { %774 = vmatpush.msra.mxu0 %v2110_v13  ;;  %794 = vmatpush.msra.mxu1 %v2112_v14 }
  0xef   : > { %815 = vmatpush.msra.mxu2 %v2091_v6  ;;  %835 = vmatpush.msra.mxu3 %v2093_v7 }
  0xf0   : > { %775 = vmatpush.msra.mxu0 %v2120_v17  ;;  %795 = vmatpush.msra.mxu1 %v2122_v18 }
  0xf1   : > { %816 = vmatpush.msra.mxu2 %v2104_v11  ;;  %836 = vmatpush.msra.mxu3 %v2106_v12 }
  0xf2   : > { %776 = vmatpush.msra.mxu0 %v2134_v21  ;;  %796 = vmatpush.msra.mxu1 %v2136_v22 }
  0xf3   : > { %817 = vmatpush.msra.mxu2 %v2114_v15  ;;  %837 = vmatpush.msra.mxu3 %v2116_v16 }
  0xf4   : > { %777 = vmatpush.msra.mxu0 %v2147_v26  ;;  %797 = vmatpush.msra.mxu1 %v2149_v27 }
  0xf5   : > { %818 = vmatpush.msra.mxu2 %v2126_v19  ;;  %838 = vmatpush.msra.mxu3 %v2128_v20 }
  0xf6   : > { %778 = vmatpush.msra.mxu0 %v2157_v30  ;;  %798 = vmatpush.msra.mxu1 %v2159_v31 }
  0xf7   : > { %819 = vmatpush.msra.mxu2 %v2140_v23  ;;  %839 = vmatpush.msra.mxu3 %v2142_v24 }
  0xf8   : > { %779 = vmatpush.msra.mxu0 %v2169_v34  ;;  %799 = vmatpush.msra.mxu1 %v2171_v35 }
  0xf9   : > { %820 = vmatpush.msra.mxu2 %v2153_v28  ;;  %840 = vmatpush.msra.mxu3 %v2155_v29 }
  0xfa   : > { %780 = vmatpush.msra.mxu0 %v2183_v38  ;;  %800 = vmatpush.msra.mxu1 %v2185_v39 }
  0xfb   : > { %821 = vmatpush.msra.mxu2 %v2163_v32  ;;  %841 = vmatpush.msra.mxu3 %v2165_v33 }
  0xfc   : > { %781 = vmatpush.msra.mxu0 %v2196_v43  ;;  %801 = vmatpush.msra.mxu1 %v2198_v44 }
  0xfd   : > { %822 = vmatpush.msra.mxu2 %v2175_v36  ;;  %842 = vmatpush.msra.mxu3 %v2177_v37 }
  0xfe   : > { %782 = vmatpush.msra.mxu0 %v2206_v47  ;;  %802 = vmatpush.msra.mxu1 %v2208_v48 }
  0xff   : > { %823 = vmatpush.msra.mxu2 %v2189_v40  ;;  %843 = vmatpush.msra.mxu3 %v2191_v41 }
 0x100   : > { %783 = vmatpush.msra.mxu0 %v2218_v51  ;;  %803 = vmatpush.msra.mxu1 %v2220_v52 }
 0x101   : > { %824 = vmatpush.msra.mxu2 %v2202_v45  ;;  %844 = vmatpush.msra.mxu3 %v2204_v46 }
 0x102   : > { %784 = vmatpush.msra.mxu0 %v2235_v55  ;;  %804 = vmatpush.msra.mxu1 %v2237_v56 }
 0x103   : > { %825 = vmatpush.msra.mxu2 %v2212_v49  ;;  %845 = vmatpush.msra.mxu3 %v2214_v50 }
 0x104   : > { %785 = vmatpush.msra.mxu0 %v2245_v59  ;;  %805 = vmatpush.msra.mxu1 %v2247_v60 }
 0x105   : > { %826 = vmatpush.msra.mxu2 %v2224_v53  ;;  %846 = vmatpush.msra.mxu3 %v2226_v54 }
 0x106   : > { %786 = vmatpush.msra.mxu0 %v2257_v63  ;;  %806 = vmatpush.msra.mxu1 %v2259_v2 }
 0x107   : > { %827 = vmatpush.msra.mxu2 %v2241_v57  ;;  %847 = vmatpush.msra.mxu3 %v2627_v3 }
 0x108   : > { %787 = vmatpush.msra.mxu0 %v2268_v10  ;;  %807 = vmatpush.msra.mxu1 %v2270_v25 }
 0x109   : > { %828 = vmatpush.msra.mxu2 %v2251_v61  ;;  %848 = vmatpush.msra.mxu3 %v2253_v62 }
 0x10a   : > { %788 = vmatpush.msra.mxu0 %v2274_v42  ;;  %808 = vmatpush.msra.mxu1 %v2276_v58 }
 0x10b   : > { %920 = vmatpush.msrb.mxu2 %v2081_v0  ;;  %940 = vmatpush.msrb.mxu3 %v2083_v1 }
 0x10c   : > { %880 = vmatpush.msrb.mxu0 %v2097_v8  ;;  %900 = vmatpush.msrb.mxu1 %v2099_v9 }
 0x10d   : > { %921 = vmatpush.msrb.mxu2 %v2085_v4  ;;  %941 = vmatpush.msrb.mxu3 %v2087_v5 }
 0x10e   : > { %881 = vmatpush.msrb.mxu0 %v2110_v13  ;;  %901 = vmatpush.msrb.mxu1 %v2112_v14 }
 0x10f   : > { %922 = vmatpush.msrb.mxu2 %v2091_v6  ;;  %942 = vmatpush.msrb.mxu3 %v2093_v7 }
 0x110   : > { %882 = vmatpush.msrb.mxu0 %v2120_v17  ;;  %902 = vmatpush.msrb.mxu1 %v2122_v18 }
 0x111   : > { %923 = vmatpush.msrb.mxu2 %v2104_v11  ;;  %943 = vmatpush.msrb.mxu3 %v2106_v12 }
 0x112   : > { %883 = vmatpush.msrb.mxu0 %v2134_v21  ;;  %903 = vmatpush.msrb.mxu1 %v2136_v22 }
 0x113   : > { %924 = vmatpush.msrb.mxu2 %v2114_v15  ;;  %944 = vmatpush.msrb.mxu3 %v2116_v16 }
 0x114   : > { %884 = vmatpush.msrb.mxu0 %v2147_v26  ;;  %904 = vmatpush.msrb.mxu1 %v2149_v27 }
 0x115   : > { %925 = vmatpush.msrb.mxu2 %v2126_v19  ;;  %945 = vmatpush.msrb.mxu3 %v2128_v20 }
 0x116   : > { %885 = vmatpush.msrb.mxu0 %v2157_v30  ;;  %905 = vmatpush.msrb.mxu1 %v2159_v31 }
 0x117   : > { %926 = vmatpush.msrb.mxu2 %v2140_v23  ;;  %946 = vmatpush.msrb.mxu3 %v2142_v24 }
 0x118   : > { %886 = vmatpush.msrb.mxu0 %v2169_v34  ;;  %906 = vmatpush.msrb.mxu1 %v2171_v35 }
 0x119   : > { %927 = vmatpush.msrb.mxu2 %v2153_v28  ;;  %947 = vmatpush.msrb.mxu3 %v2155_v29 }
 0x11a   : > { %887 = vmatpush.msrb.mxu0 %v2183_v38  ;;  %907 = vmatpush.msrb.mxu1 %v2185_v39 }
 0x11b   : > { %928 = vmatpush.msrb.mxu2 %v2163_v32  ;;  %948 = vmatpush.msrb.mxu3 %v2165_v33 }
 0x11c   : > { %888 = vmatpush.msrb.mxu0 %v2196_v43  ;;  %908 = vmatpush.msrb.mxu1 %v2198_v44 }
 0x11d   : > { %929 = vmatpush.msrb.mxu2 %v2175_v36  ;;  %949 = vmatpush.msrb.mxu3 %v2177_v37 }
 0x11e   : > { %889 = vmatpush.msrb.mxu0 %v2206_v47  ;;  %909 = vmatpush.msrb.mxu1 %v2208_v48 }
 0x11f   : > { %930 = vmatpush.msrb.mxu2 %v2189_v40  ;;  %950 = vmatpush.msrb.mxu3 %v2191_v41 }
 0x120   : > { %890 = vmatpush.msrb.mxu0 %v2218_v51  ;;  %910 = vmatpush.msrb.mxu1 %v2220_v52 }
 0x121   : > { %931 = vmatpush.msrb.mxu2 %v2202_v45  ;;  %951 = vmatpush.msrb.mxu3 %v2204_v46 }
 0x122   : > { %891 = vmatpush.msrb.mxu0 %v2235_v55  ;;  %911 = vmatpush.msrb.mxu1 %v2237_v56 }
 0x123   : > { %932 = vmatpush.msrb.mxu2 %v2212_v49  ;;  %952 = vmatpush.msrb.mxu3 %v2214_v50 }
 0x124   : > { %892 = vmatpush.msrb.mxu0 %v2245_v59  ;;  %912 = vmatpush.msrb.mxu1 %v2247_v60 }
 0x125   : > { %933 = vmatpush.msrb.mxu2 %v2224_v53  ;;  %953 = vmatpush.msrb.mxu3 %v2226_v54 }
 0x126   : > { %893 = vmatpush.msrb.mxu0 %v2257_v63  ;;  %913 = vmatpush.msrb.mxu1 %v2259_v2  ;;  %v447_v2 = vld [vmem:[#allocation11] sm:$0xf] }
 0x127   : > { %934 = vmatpush.msrb.mxu2 %v2241_v57  ;;  %954 = vmatpush.msrb.mxu3 %v2627_v3  ;;  %v449_v53 = vperm.slane %v447_v2, 0  ;;  %v450_v63 = vperm.slane %v447_v2, 1  ;;  %v451_v54 = vperm.slane %v447_v2, 2  ;;  %v452_v50 = vperm.slane %v447_v2, 3 }
 0x128   : > { %894 = vmatpush.msrb.mxu0 %v2268_v10  ;;  %914 = vmatpush.msrb.mxu1 %v2270_v25 }
 0x129   : > { %935 = vmatpush.msrb.mxu2 %v2251_v61  ;;  %955 = vmatpush.msrb.mxu3 %v2253_v62 }
 0x12a   : > { %895 = vmatpush.msrb.mxu0 %v2274_v42  ;;  %915 = vmatpush.msrb.mxu1 %v2276_v58 }
 0x141   : > { %v474_v10 = vpop.f32.mrf.mxu0  ;;  %v503_v49 = vpop.f32.mrf.mxu1 }
 0x142   : > { %v475_v25 = vadd.f32 %v474_v10, %v449_v53  ;;  %v504_v60 = vadd.f32 %v503_v49, %v450_v63 }
 0x143   : > { %v532_v57 = vpop.f32.mrf.mxu2  ;;  %v561_v59 = vpop.f32.mrf.mxu3 }
 0x144   : > { %v533_v3 = vadd.f32 %v532_v57, %v451_v54  ;;  %v562_v46 = vadd.f32 %v561_v59, %v452_v50  ;;  %573 = vst [vmem:[#allocation4] sm:$0xff] %v475_v25 }
 0x145   : > { %574 = vst [vmem:[#allocation4 + $0x8] sm:$0xff] %v504_v60 }
 0x146   : > { %575 = vst [vmem:[#allocation4 + $0x10] sm:$0xff] %v533_v3 }
 0x147   : > { %576 = vst [vmem:[#allocation4 + $0x18] sm:$0xff] %v562_v46 }
 0x14a   : > { %v477_v61 = vpop.f32.mrf.mxu0  ;;  %v506_v58 = vpop.f32.mrf.mxu1 }
 0x14b   : > { %v478_v62 = vadd.f32 %v477_v61, %v449_v53  ;;  %v507_v42 = vadd.f32 %v506_v58, %v450_v63  ;;  %v535_v45 = vpop.f32.mrf.mxu2  ;;  %v564_v56 = vpop.f32.mrf.mxu3 }
 0x14c   : > { %v536_v55 = vadd.f32 %v535_v45, %v451_v54  ;;  %v565_v2 = vadd.f32 %v564_v56, %v452_v50 }
 0x14d   : > { %577 = vst [vmem:[#allocation4 + $0x20] sm:$0xff] %v478_v62 }
 0x14e   : > { %578 = vst [vmem:[#allocation4 + $0x28] sm:$0xff] %v507_v42 }
 0x14f   : > { %579 = vst [vmem:[#allocation4 + $0x30] sm:$0xff] %v536_v55 }
 0x150   : > { %580 = vst [vmem:[#allocation4 + $0x38] sm:$0xff] %v565_v2 }
 0x153   : > { %v538_v49 = vpop.f32.mrf.mxu2  ;;  %v567_v10 = vpop.f32.mrf.mxu3 }
 0x154   : > { %v480_v57 = vpop.f32.mrf.mxu0  ;;  %v509_v59 = vpop.f32.mrf.mxu1  ;;  %v539_v25 = vadd.f32 %v538_v49, %v451_v54  ;;  %v568_v46 = vadd.f32 %v567_v10, %v452_v50 }
 0x155   : > { %v481_v60 = vadd.f32 %v480_v57, %v449_v53  ;;  %v510_v3 = vadd.f32 %v509_v59, %v450_v63 }
 0x156   : > { %583 = vst [vmem:[#allocation4 + $0x50] sm:$0xff] %v539_v25 }
 0x157   : > { %581 = vst [vmem:[#allocation4 + $0x40] sm:$0xff] %v481_v60 }
 0x158   : > { %582 = vst [vmem:[#allocation4 + $0x48] sm:$0xff] %v510_v3 }
 0x159   : > { %584 = vst [vmem:[#allocation4 + $0x58] sm:$0xff] %v568_v46 }
 0x15d   : > { %v541_v58 = vpop.f32.mrf.mxu2  ;;  %v570_v45 = vpop.f32.mrf.mxu3 }
 0x15e   : > { %v483_v56 = vpop.f32.mrf.mxu0  ;;  %v512_v61 = vpop.f32.mrf.mxu1  ;;  %v542_v62 = vadd.f32 %v541_v58, %v451_v54  ;;  %v571_v2 = vadd.f32 %v570_v45, %v452_v50 }
 0x15f   : > { %v484_v55 = vadd.f32 %v483_v56, %v449_v53  ;;  %v513_v42 = vadd.f32 %v512_v61, %v450_v63 }
 0x160   : > { %587 = vst [vmem:[#allocation4 + $0x70] sm:$0xff] %v542_v62 }
 0x161   : > { %585 = vst [vmem:[#allocation4 + $0x60] sm:$0xff] %v484_v55  ;;  %v593_v55 = vld [vmem:[%s592_s9] sm:$0xff] }
 0x162   : > { %586 = vst [vmem:[#allocation4 + $0x68] sm:$0xff] %v513_v42 }
 0x163   : > { %588 = vst [vmem:[#allocation4 + $0x78] sm:$0xff] %v571_v2 }
 0x168   : > { %v683_v49 = vpop.f32.mrf.mxu0  ;;  %v703_v10 = vpop.f32.mrf.mxu1 }
 0x16a   : > { %v598_v57 = vld [vmem:[%s597_s5] sm:$0xff]  ;;  %v599_v59 = vld [vmem:[%s597_s5 + $0x8] sm:$0xff]  ;;  %v600_v25 = vld [vmem:[%s597_s5 + $0x10] sm:$0xff]  ;;  %v723_v60 = vpop.f32.mrf.mxu2  ;;  %v743_v54 = vpop.f32.mrf.mxu3 }
 0x16b   : > { %v746_v3 = vadd.f32 %v683_v49, %v598_v57  ;;  %v747_v46 = vadd.f32 %v703_v10, %v599_v59  ;;  %v748_v53 = vadd.f32 %v723_v60, %v600_v25  ;;  %v601_v50 = vld [vmem:[%s597_s5 + $0x18] sm:$0xff] }
 0x16c   : > { %v749_v63 = vadd.f32 %v743_v54, %v601_v50 }
 0x16d   : > { %1473 = vtanh.f32 %v746_v3 }
 0x16e   : > { %1475 = vtanh.f32 %v747_v46 }
 0x16f   : > { %1477 = vtanh.f32 %v748_v53 }
 0x170   : > { %1479 = vtanh.f32 %v749_v63  ;;  %v876_v63 = vld [vmem:[%s875_s2] sm:$0xff] }
 0x173   : > { %v1474_v58 = vpop.eup %1473 }
 0x174   : > { %v1476_v45 = vpop.eup %1475  ;;  %v754_v56 = vmul.f32 0.5, %v1474_v58 }
 0x175   : > { %v756_v61 = vmul.f32 0.5, %v1476_v45  ;;  %v1478_v42 = vpop.eup %1477  ;;  %v877_v45 = vld [vmem:[%s875_s2 + $0x8] sm:$0xff] }
 0x176   : > { %v755_v62 = vadd.f32 0.5, %v754_v56  ;;  %v1480_v57 = vpop.eup %1479 }
 0x177   : > { %v757_v2 = vadd.f32 0.5, %v756_v61  ;;  %v758_v25 = vmul.f32 0.5, %v1480_v57 }
 0x178   : > { %v761_v49 = vmul.f32 %v1478_v42, %v755_v62 }
 0x179   : > { %v760_v10 = vmul.f32 %v757_v2, %v593_v55  ;;  %v759_v60 = vadd.f32 0.5, %v758_v25  ;;  %v878_v55 = vld [vmem:[%s875_s2 + $0x10] sm:$0xff] }
 0x17b   : > { %v2414_v59 = vadd.f32 %v761_v49, %v760_v10  ;;  %v879_v10 = vld [vmem:[%s875_s2 + $0x18] sm:$0xff] }
 0x17d   : > { %1481 = vtanh.f32 %v2414_v59 }
 0x183   : > { %v1482_v3 = vpop.eup %1481 }
 0x184   : > { %v764_v46 = vmul.f32 %v1482_v3, %v759_v60 }
 0x186   : > { %789 = vmatmul.f32.vlgmr.msra.gmra.mxu0 %v764_v46  ;;  %809 = vmatmul.f32.vlgmr.msra.gmra.mxu1 %v764_v46 }
 0x187   : > { %829 = vmatmul.f32.vlgmr.msra.gmra.mxu2 %v764_v46  ;;  %849 = vmatmul.f32.vlgmr.msra.gmra.mxu3 %v764_v46 }
 0x188   : > { %988 = vmatpush.msra.mxu0 %v2097_v8  ;;  %1008 = vmatpush.msra.mxu1 %v2099_v9  ;;  %v2634_v8 = vld [vmem:[#allocation25_spill] sm:$0xff]  ;;  %v2635_v9 = vld [vmem:[#allocation26_spill] sm:$0xff] }
 0x189   : > { %1028 = vmatpush.msra.mxu2 %v2081_v0  ;;  %1048 = vmatpush.msra.mxu3 %v2083_v1  ;;  %v2628_v0 = vld [vmem:[#allocation29_spill] sm:$0xff]  ;;  %v2629_v1 = vld [vmem:[#allocation30_spill] sm:$0xff] }
 0x18a   : > { %989 = vmatpush.msra.mxu0 %v2110_v13  ;;  %1009 = vmatpush.msra.mxu1 %v2112_v14  ;;  %v2638_v13 = vld [vmem:[#allocation27_spill] sm:$0xff]  ;;  %v2639_v14 = vld [vmem:[#allocation28_spill] sm:$0xff] }
 0x18b   : > { %1029 = vmatpush.msra.mxu2 %v2085_v4  ;;  %1049 = vmatpush.msra.mxu3 %v2087_v5  ;;  %v2630_v4 = vld [vmem:[#allocation23_spill] sm:$0xff]  ;;  %v2631_v5 = vld [vmem:[#allocation24_spill] sm:$0xff] }
 0x18c   : > { %990 = vmatpush.msra.mxu0 %v2120_v17  ;;  %1010 = vmatpush.msra.mxu1 %v2122_v18  ;;  %v2642_v17 = vld [vmem:[#allocation31_spill] sm:$0xff]  ;;  %v2643_v18 = vld [vmem:[#allocation32_spill] sm:$0xff] }
 0x18d   : > { %1030 = vmatpush.msra.mxu2 %v2091_v6  ;;  %1050 = vmatpush.msra.mxu3 %v2093_v7  ;;  %v2632_v6 = vld [vmem:[#allocation33_spill] sm:$0xff]  ;;  %v2633_v7 = vld [vmem:[#allocation34_spill] sm:$0xff] }
 0x18e   : > { %991 = vmatpush.msra.mxu0 %v2134_v21  ;;  %1011 = vmatpush.msra.mxu1 %v2136_v22  ;;  %v2646_v21 = vld [vmem:[#allocation35_spill] sm:$0xff]  ;;  %v2647_v22 = vld [vmem:[#allocation36_spill] sm:$0xff] }
 0x18f   : > { %1031 = vmatpush.msra.mxu2 %v2104_v11  ;;  %1051 = vmatpush.msra.mxu3 %v2106_v12  ;;  %v2636_v11 = vld [vmem:[#allocation37_spill] sm:$0xff]  ;;  %v2637_v12 = vld [vmem:[#allocation38_spill] sm:$0xff] }
 0x190   : > { %992 = vmatpush.msra.mxu0 %v2147_v26  ;;  %1012 = vmatpush.msra.mxu1 %v2149_v27  ;;  %v1320_v26 = vld [vmem:[%s1206_s14 + $0x28] sm:$0xff] }
 0x191   : > { %1032 = vmatpush.msra.mxu2 %v2114_v15  ;;  %1052 = vmatpush.msra.mxu3 %v2116_v16  ;;  %v2640_v15 = vld [vmem:[#allocation39_spill] sm:$0xff]  ;;  %v2641_v16 = vld [vmem:[#allocation40_spill] sm:$0xff] }
 0x192   : > { %993 = vmatpush.msra.mxu0 %v2157_v30  ;;  %1013 = vmatpush.msra.mxu1 %v2159_v31  ;;  %v1321_v30 = vld [vmem:[%s1206_s14 + $0x30] sm:$0xff] }
 0x193   : > { %1033 = vmatpush.msra.mxu2 %v2126_v19  ;;  %1053 = vmatpush.msra.mxu3 %v2128_v20  ;;  %v2644_v19 = vld [vmem:[#allocation41_spill] sm:$0xff]  ;;  %v2645_v20 = vld [vmem:[#allocation42_spill] sm:$0xff] }
 0x194   : > { %994 = vmatpush.msra.mxu0 %v2169_v34  ;;  %1014 = vmatpush.msra.mxu1 %v2171_v35  ;;  %v1322_v34 = vld [vmem:[%s1206_s14 + $0x38] sm:$0xff] }
 0x195   : > { %1034 = vmatpush.msra.mxu2 %v2140_v23  ;;  %1054 = vmatpush.msra.mxu3 %v2142_v24  ;;  %v1319_v23 = vld [vmem:[%s1206_s14 + $0x20] sm:$0xff] }
 0x196   : > { %995 = vmatpush.msra.mxu0 %v2183_v38  ;;  %1015 = vmatpush.msra.mxu1 %v2185_v39 }
 0x197   : > { %1035 = vmatpush.msra.mxu2 %v2153_v28  ;;  %1055 = vmatpush.msra.mxu3 %v2155_v29 }
 0x198   : > { %996 = vmatpush.msra.mxu0 %v2196_v43  ;;  %1016 = vmatpush.msra.mxu1 %v2198_v44 }
 0x199   : > { %1036 = vmatpush.msra.mxu2 %v2163_v32  ;;  %1056 = vmatpush.msra.mxu3 %v2165_v33 }
 0x19a   : > { %997 = vmatpush.msra.mxu0 %v2206_v47  ;;  %1017 = vmatpush.msra.mxu1 %v2208_v48 }
 0x19b   : > { %1037 = vmatpush.msra.mxu2 %v2175_v36  ;;  %1057 = vmatpush.msra.mxu3 %v2177_v37 }
 0x19c   : > { %998 = vmatpush.msra.mxu0 %v2218_v51  ;;  %1018 = vmatpush.msra.mxu1 %v2220_v52 }
 0x19d   : > { %1038 = vmatpush.msra.mxu2 %v2189_v40  ;;  %1058 = vmatpush.msra.mxu3 %v2191_v41 }
 0x19e   : > { %999 = vmatpush.msra.mxu0 %v2628_v0  ;;  %1019 = vmatpush.msra.mxu1 %v2629_v1 }
 0x19f   : > { %1039 = vmatpush.msra.mxu2 %v2630_v4  ;;  %1059 = vmatpush.msra.mxu3 %v2631_v5 }
 0x1a0   : > { %1000 = vmatpush.msra.mxu0 %v2632_v6  ;;  %1020 = vmatpush.msra.mxu1 %v2633_v7 }
 0x1a1   : > { %1040 = vmatpush.msra.mxu2 %v2634_v8  ;;  %1060 = vmatpush.msra.mxu3 %v2635_v9 }
 0x1a2   : > { %1001 = vmatpush.msra.mxu0 %v2636_v11  ;;  %1021 = vmatpush.msra.mxu1 %v2637_v12 }
 0x1a3   : > { %1041 = vmatpush.msra.mxu2 %v2638_v13  ;;  %1061 = vmatpush.msra.mxu3 %v2639_v14  ;;  %v1326_v13 = vld [vmem:[%s1212_s11 + $0x60] sm:$0xff] }
 0x1a4   : > { %1002 = vmatpush.msra.mxu0 %v2640_v15  ;;  %1022 = vmatpush.msra.mxu1 %v2641_v16  ;;  %v1327_v15 = vld [vmem:[%s1212_s11 + $0x68] sm:$0xff] }
 0x1a5   : > { %1042 = vmatpush.msra.mxu2 %v2642_v17  ;;  %1062 = vmatpush.msra.mxu3 %v2643_v18 }
 0x1a6   : > { %1003 = vmatpush.msra.mxu0 %v2644_v19  ;;  %1023 = vmatpush.msra.mxu1 %v2645_v20  ;;  %v1328_v19 = vld [vmem:[%s1212_s11 + $0x70] sm:$0xff] }
 0x1a7   : > { %1043 = vmatpush.msra.mxu2 %v2646_v21  ;;  %1063 = vmatpush.msra.mxu3 %v2647_v22 }
 0x203   : > { %v790_v24 = vpop.f32.mrf.mxu0  ;;  %v810_v27 = vpop.f32.mrf.mxu1 }
 0x204   : > { %v853_v28 = vadd.f32 %v1319_v23, %v790_v24  ;;  %v854_v29 = vadd.f32 %v1320_v26, %v810_v27  ;;  %v1329_v23 = vld [vmem:[%s1212_s11 + $0x78] sm:$0xff] }
 0x206   : > { %1483 = vtanh.f32 %v853_v28 }
 0x207   : > { %1485 = vtanh.f32 %v854_v29 }
 0x20a   : > { %v830_v31 = vpop.f32.mrf.mxu2  ;;  %v850_v32 = vpop.f32.mrf.mxu3 }
 0x20b   : > { %v855_v33 = vadd.f32 %v1321_v30, %v830_v31  ;;  %v856_v36 = vadd.f32 %v1322_v34, %v850_v32 }
 0x20c   : > { %v1484_v35 = vpop.eup %1483 }
 0x20d   : > { %v1486_v37 = vpop.eup %1485  ;;  %1487 = vtanh.f32 %v855_v33  ;;  %v861_v38 = vmul.f32 0.5, %v1484_v35 }
 0x20e   : > { %v863_v39 = vmul.f32 0.5, %v1486_v37  ;;  %1489 = vtanh.f32 %v856_v36 }
 0x20f   : > { %v862_v41 = vadd.f32 0.5, %v861_v38 }
 0x210   : > { %v864_v40 = vadd.f32 0.5, %v863_v39 }
 0x212   : > { %v867_v44 = vmul.f32 %v864_v40, %v2414_v59 }
 0x213   : > { %v1488_v43 = vpop.eup %1487 }
 0x214   : > { %v868_v47 = vmul.f32 %v1488_v43, %v862_v41  ;;  %v1490_v48 = vpop.eup %1489 }
 0x215   : > { %v865_v52 = vmul.f32 0.5, %v1490_v48 }
 0x216   : > { %v869_v51 = vadd.f32 %v868_v47, %v867_v44 }
 0x217   : > { %v866_v53 = vadd.f32 0.5, %v865_v52 }
 0x218   : > { %1491 = vtanh.f32 %v869_v51 }
 0x21e   : > { %v1492_v50 = vpop.eup %1491 }
 0x21f   : > { %v871_v54 = vmul.f32 %v1492_v50, %v866_v53 }
 0x221   : > { %896 = vmatmul.f32.vlgmr.msrb.gmra.mxu0 %v871_v54  ;;  %916 = vmatmul.f32.vlgmr.msrb.gmra.mxu1 %v871_v54 }
 0x222   : > { %936 = vmatmul.f32.vlgmr.msrb.gmra.mxu2 %v871_v54  ;;  %956 = vmatmul.f32.vlgmr.msrb.gmra.mxu3 %v871_v54 }
 0x29e   : > { %v897_v58 = vpop.f32.mrf.mxu0  ;;  %v917_v56 = vpop.f32.mrf.mxu1 }
 0x29f   : > { %v960_v61 = vadd.f32 %v897_v58, %v876_v63  ;;  %v961_v62 = vadd.f32 %v917_v56, %v877_v45 }
 0x2a1   : > { %1493 = vtanh.f32 %v960_v61 }
 0x2a2   : > { %1495 = vtanh.f32 %v961_v62 }
 0x2a5   : > { %v937_v42 = vpop.f32.mrf.mxu2  ;;  %v957_v2 = vpop.f32.mrf.mxu3 }
 0x2a6   : > { %v962_v49 = vadd.f32 %v937_v42, %v878_v55  ;;  %v963_v59 = vadd.f32 %v957_v2, %v879_v10 }
 0x2a7   : > { %v1494_v57 = vpop.eup %1493 }
 0x2a8   : > { %v1496_v25 = vpop.eup %1495  ;;  %1497 = vtanh.f32 %v962_v49  ;;  %v968_v60 = vmul.f32 0.5, %v1494_v57 }
 0x2a9   : > { %v970_v3 = vmul.f32 0.5, %v1496_v25  ;;  %1499 = vtanh.f32 %v963_v59 }
 0x2aa   : > { %v969_v0 = vadd.f32 0.5, %v968_v60 }
 0x2ab   : > { %v971_v46 = vadd.f32 0.5, %v970_v3 }
 0x2ad   : > { %v974_v4 = vmul.f32 %v971_v46, %v869_v51 }
 0x2ae   : > { %v1498_v1 = vpop.eup %1497 }
 0x2af   : > { %v975_v5 = vmul.f32 %v1498_v1, %v969_v0  ;;  %v1500_v6 = vpop.eup %1499 }
 0x2b0   : > { %v972_v8 = vmul.f32 0.5, %v1500_v6 }
 0x2b1   : > { %v976_v7 = vadd.f32 %v975_v5, %v974_v4 }
 0x2b2   : > { %v973_v9 = vadd.f32 0.5, %v972_v8 }
 0x2b3   : > { %1501 = vtanh.f32 %v976_v7 }
 0x2b9   : > { %v1502_v11 = vpop.eup %1501 }
 0x2ba   : > { %v978_v12 = vmul.f32 %v1502_v11, %v973_v9 }
 0x2bc   : > { %1004 = vmatmul.f32.vlgmr.msra.gmra.mxu0 %v978_v12  ;;  %1024 = vmatmul.f32.vlgmr.msra.gmra.mxu1 %v978_v12 }
 0x2bd   : > { %1044 = vmatmul.f32.vlgmr.msra.gmra.mxu2 %v978_v12  ;;  %1064 = vmatmul.f32.vlgmr.msra.gmra.mxu3 %v978_v12 }
 0x339   : > { %v1005_v14 = vpop.f32.mrf.mxu0  ;;  %v1025_v16 = vpop.f32.mrf.mxu1 }
 0x33a   : > { %v1068_v17 = vadd.f32 %v1326_v13, %v1005_v14  ;;  %v1069_v18 = vadd.f32 %v1327_v15, %v1025_v16 }
 0x33c   : > { %1503 = vtanh.f32 %v1068_v17 }
 0x33d   : > { %1505 = vtanh.f32 %v1069_v18 }
 0x340   : > { %v1045_v20 = vpop.f32.mrf.mxu2  ;;  %v1065_v21 = vpop.f32.mrf.mxu3 }
 0x341   : > { %v1070_v22 = vadd.f32 %v1328_v19, %v1045_v20  ;;  %v1071_v26 = vadd.f32 %v1329_v23, %v1065_v21 }
 0x342   : > { %v1504_v24 = vpop.eup %1503 }
 0x343   : > { %v1506_v27 = vpop.eup %1505  ;;  %1507 = vtanh.f32 %v1070_v22  ;;  %v1076_v28 = vmul.f32 0.5, %v1504_v24 }
 0x344   : > { %v1078_v29 = vmul.f32 0.5, %v1506_v27  ;;  %1509 = vtanh.f32 %v1071_v26 }
 0x345   : > { %v1077_v31 = vadd.f32 0.5, %v1076_v28 }
 0x346   : > { %v1079_v30 = vadd.f32 0.5, %v1078_v29 }
 0x348   : > { %v1082_v33 = vmul.f32 %v1079_v30, %v976_v7 }
 0x349   : > { %v1508_v32 = vpop.eup %1507 }
 0x34a   : > { %v1083_v34 = vmul.f32 %v1508_v32, %v1077_v31  ;;  %v1510_v35 = vpop.eup %1509 }
 0x34b   : > { %v1080_v37 = vmul.f32 0.5, %v1510_v35 }
 0x34c   : > { %v1084_v36 = vadd.f32 %v1083_v34, %v1082_v33 }
 0x34d   : > { %v1081_v38 = vadd.f32 0.5, %v1080_v37 }
 0x34e   : > { %1511 = vtanh.f32 %v1084_v36  ;;  %1088 = vst [vmem:[%s592_s9] sm:$0xff] %v1084_v36 }
 0x353   : > { %1092 = sbr.rel (%p1330_p5) target bundleno = 1015 (0x3f7), region = 68 }
 0x354   : > { %v1512_v39 = vpop.eup %1511 }
 0x355   : > { %v1086_v40 = vmul.f32 %v1512_v39, %v1081_v38 }
 0x357   : > { %1087 = vst [vmem:[%s590_s15] sm:$0xff] %v1086_v40 }
 0x358   : > { %v1108_v41 = vld [vmem:[#allocation13 + $0x78] sm:$0xff]  ;;  %v1107_v43 = vld [vmem:[#allocation13 + $0x70] sm:$0xff]  ;;  %v1106_v44 = vld [vmem:[#allocation13 + $0x68] sm:$0xff] }
 0x359   : > { %1109 = vmatpush.msra.mxu0 %v1108_v41  ;;  %v1105_v47 = vld [vmem:[#allocation13 + $0x60] sm:$0xff]  ;;  %v1104_v48 = vld [vmem:[#allocation13 + $0x58] sm:$0xff]  ;;  %v1103_v51 = vld [vmem:[#allocation13 + $0x50] sm:$0xff] }
 0x35a   : > { %v1102_v52 = vld [vmem:[#allocation13 + $0x48] sm:$0xff]  ;;  %v1101_v53 = vld [vmem:[#allocation13 + $0x40] sm:$0xff]  ;;  %v1100_v50 = vld [vmem:[#allocation13 + $0x38] sm:$0xff] }
 0x35b   : > { %1110 = vmatpush.msra.mxu0 %v1107_v43  ;;  %v1099_v54 = vld [vmem:[#allocation13 + $0x30] sm:$0xff]  ;;  %v1098_v63 = vld [vmem:[#allocation13 + $0x28] sm:$0xff]  ;;  %v1097_v58 = vld [vmem:[#allocation13 + $0x20] sm:$0xff] }
 0x35c   : > { %v1096_v45 = vld [vmem:[#allocation13 + $0x18] sm:$0xff]  ;;  %v1095_v56 = vld [vmem:[#allocation13 + $0x10] sm:$0xff]  ;;  %v1094_v61 = vld [vmem:[#allocation13 + $0x8] sm:$0xff] }
 0x35d   : > { %1111 = vmatpush.msra.mxu0 %v1106_v44  ;;  %v1093_v62 = vld [vmem:[#allocation13] sm:$0xff] }
 0x35f   : > { %1112 = vmatpush.msra.mxu0 %v1105_v47 }
 0x361   : > { %1113 = vmatpush.msra.mxu0 %v1104_v48 }
 0x363   : > { %1114 = vmatpush.msra.mxu0 %v1103_v51 }
 0x365   : > { %1115 = vmatpush.msra.mxu0 %v1102_v52 }
 0x367   : > { %1116 = vmatpush.msra.mxu0 %v1101_v53 }
 0x369   : > { %1117 = vmatpush.msra.mxu0 %v1100_v50 }
 0x36b   : > { %1118 = vmatpush.msra.mxu0 %v1099_v54 }
 0x36d   : > { %1119 = vmatpush.msra.mxu0 %v1098_v63 }
 0x36f   : > { %1120 = vmatpush.msra.mxu0 %v1097_v58 }
 0x371   : > { %1121 = vmatpush.msra.mxu0 %v1096_v45 }
 0x373   : > { %1122 = vmatpush.msra.mxu0 %v1095_v56 }
 0x375   : > { %1123 = vmatpush.msra.mxu0 %v1094_v61 }
 0x377   : > { %1124 = vmatpush.msra.mxu0 %v1093_v62 }
 0x378   : > { %1125 = vmatmul.f32.vlgmr.msra.gmra.mxu0 %v1086_v40 }
 0x3f5   : > { %v1126_v55 = vpop.f32.mrf.mxu0 }
 0x3f6   : > { %1129 = vst [vmem:[%s2075_s30] sm:$0xff] %v1126_v55 }
 0x3f7 PF: > { %s2649_s8 = sld [smem:[#allocation47_spill]]  ;;  %s1143_s18 = sshll.u32 %s2075_s30, 4  ;;  %s1144_s18 = int_to_ptr.vmem [resolvable:$true] %s1143_s18 }
 0x3f8   : > { %s1131_s9 = scalar_lea.sflag [#allocation7], %s361_s4 }
 0x3fd   : > { %s1141_s15 = scalar_lea.hbm %s2649_s8, %s2231_s7  ;;  %s1683_s2 = scalar_lea.hbm %s2649_s8, 16 }
 0x3fe   : > { %s1145_s5 = sshll.u32 %s1141_s15, 4  ;;  %s1146_s5 = int_to_ptr.hbm [resolvable:$true] %s1145_s5 }
 0x3ff   : > { %s1677_s17 = sshra.s32 %s1146_s5, 4  ;;  %s1678_s17 = int_to_ptr.hbm [resolvable:$true] %s1677_s17 }
 0x400   : > { %s1679_s14 = scalar_lea.hbm %s1678_s17, 8  ;;  %p1684_p1 = scmp.lt.s32.totalorder %s1678_s17, %s2649_s8 }
 0x401   : > { %p1680_p12 = scmp.ne.s32.totalorder %s1678_s17, %s1679_s14  ;;  %p1685_p0 = scmp.lt.s32.totalorder %s1683_s2, %s1679_s14 }
 0x403   : > { %p1681_p13 = pnand %p1680_p12, %p1903_p9  ;;  %p1686_p4 = por %p1685_p0, %p1684_p1 }
 0x405   : > { %p1682_p2 = pneg %p1681_p13 }
 0x407   : > { %p1687_p6 = pnand %p1686_p4, %p1682_p2 }
 0x409   : > { %1690 = shalt.err (!%p1687_p6)
}
 0x40a   : > { %1351 = dma.vmem_to_hbm [thread:$0]  (%p1903_p9), %s1144_s18, 128, %s1146_s5, %s1131_s9  }
 0x40b PF: > { %s2651_s4 = sld [smem:[#allocation19_spill]]  ;;  %p1375_p7 = scmp.ge.s32.totalorder %s1793_s28, 2 }
 0x40d   : > { %p1371_p8 = pnand %p1375_p7, %p1908_p11 }
 0x40f   : > { %p1372_p10 = pneg %p1371_p8 }
 0x411   : > { %s1157_s7 = sand.u32 1, %s2651_s4  }
 0x412   : > { %s1158_s25 = scalar_lea.sflag [#allocation7], %s1157_s7 }
 0x413   : > { %1748 = dma.done.wait (%p1372_p10), %s1158_s25, 128  }
 0x414   : > { %1750 = vsyncadd (%p1372_p10), %s1158_s25, 4294967168  ;;  %s23_s28 = sadd.s32 1, %s1793_s28   ;;  %s2653_s18 = smov %s1757_s19 }
 0x415   : > { %p20_p3 = scmp.ge.s32.totalorder %s23_s28, 6   ;;  %s2654_s19 = smov %s1761_s20 }
 0x416   : > { %s2655_s20 = smov %s2026_s21  ;;  %s2656_s21 = smov %s1769_s22 }
 0x417   : > { %s2657_s22 = smov %s1773_s23  ;;  %s2658_s23 = smov %s2029_s13 }
 0x418   : > { %s2659_s24 = smov %s1785_s26  ;;  %s2660_s25 = smov %s1789_s27 }
 0x419   : > { %s2661_s26 = smov %s2664_s10  ;;  %s2662_s27 = smov %s2668_s16 }
 0x41a   :  { %22 = sbr.rel (!%p20_p3) target bundleno = 17 (0x11), region = 121 }
 0x41f   :  { %1164 = vsyncpa [#allocation6], 1 }
 0x420   :  { %1166 = vsyncpa [#allocation6 + $0x1], 1 }
 0x421   :  { %1167 = vsyncpa [#allocation9], 1 }
 0x422   :  { %1168 = vsyncpa [#allocation12], 1 }
 0x423   :  { %1169 = vsyncpa [#allocation7], 1 }
 0x424   :  { %1171 = vsyncpa [#allocation7 + $0x1], 1 }

// kernel: tpu_custom_call.1
= control target key start
LH: loop header
LB: loop body
LE: loop exit
PB: predicated region body
PF: predicated region fallthrough
CT: control target
= control target key end

     0   :  { %s2804_s0 = inlined_call_operand.hbm [shape: f32[8,8,128], index: 0, kind: input, shape index: {}]   ;;  %s2805_s1 = inlined_call_operand.hbm [shape: f32[2,128,512], index: 1, kind: input, shape index: {}]   ;;  %s2806_s2 = inlined_call_operand.hbm [shape: f32[2,128,512], index: 2, kind: input, shape index: {}]   ;;  %s2807_s3 = inlined_call_operand.hbm [shape: f32[2,1,512], index: 3, kind: input, shape index: {}]   ;;  %s2808_s4 = inlined_call_operand.hbm [shape: f32[2,128,128], index: 4, kind: input, shape index: {}]   ;;  %s2809_s5 = inlined_call_operand.hbm [shape: f32[2,8,128], index: 5, kind: output, shape index: {}]  }
   0x1   :  { %2847 = sst [smem:[#allocation51_spill]] %s2804_s0 }
   0x2   :  { %2848 = sst [smem:[#allocation52_spill]] %s2805_s1 }
   0x3   :  { %2849 = sst [smem:[#allocation53_spill]] %s2806_s2 }
   0x4   :  { %2850 = sst [smem:[#allocation54_spill]] %s2807_s3 }
   0x5   :  { %2851 = sst [smem:[#allocation55_spill]] %s2809_s5 }
   0x6   :  { %10 = vsyncpa [#allocation6], 0 }
   0x7   :  { %12 = vsyncpa [#allocation6 + $0x1], 0 }
   0x8   :  { %13 = vsyncpa [#allocation9], 0 }
   0x9   :  { %15 = vsyncpa [#allocation9 + $0x1], 0 }
   0xa   :  { %16 = vsyncpa [#allocation12], 0 }
   0xb   :  { %18 = vsyncpa [#allocation12 + $0x1], 0 }
   0xc   :  { %19 = vsyncpa [#allocation7], 0 }
   0xd   :  { %21 = vsyncpa [#allocation7 + $0x1], 0  ;;  %s1937_s18 = smov 0   ;;  %s1939_s19 = smov 0  }
   0xe   :  { %s1941_s20 = smov 0   ;;  %s1943_s21 = smov 0  }
   0xf   :  { %s1945_s22 = smov 0   ;;  %s1947_s23 = smov 0  }
  0x10   :  { %s1949_s24 = smov 0   ;;  %s1951_s25 = smov 0  }
  0x11   :  { %s1953_s26 = smov 0   ;;  %s1955_s27 = smov 0  }
  0x12   :  { %s1957_s28 = smov 0  }
  0x13 LB: > { %2852 = sst [smem:[#allocation19_spill]] %s1876_s22  ;;  %s1993_s29 = sadd.s32 4294967295, %s1900_s28   ;;  %s1900_s28 = sphi %s1957_s28, %s27_s28   ;;  %s1896_s27 = sphi %s1955_s27, %s2946_s27   ;;  %s1892_s26 = sphi %s1953_s26, %s2938_s26   ;;  %s1888_s25 = sphi %s1951_s25, %s2945_s25   ;;  %s1884_s24 = sphi %s1949_s24, %s2937_s24   ;;  %s1880_s23 = sphi %s1947_s23, %s2944_s23   ;;  %s1876_s22 = sphi %s1945_s22, %s2943_s22   ;;  %s1872_s21 = sphi %s1943_s21, %s2935_s21   ;;  %s1868_s20 = sphi %s1941_s20, %s2942_s20   ;;  %s1864_s19 = sphi %s1939_s19, %s2941_s19   ;;  %s1860_s18 = sphi %s1937_s18, %s2940_s18  }
  0x14   : > { %2853 = sst [smem:[#allocation20_spill]] %s1884_s24  ;;  %s1398_s30 = sadd.s32 4294967294, %s1900_s28  }
  0x15   : > { %2854 = sst [smem:[#allocation21_spill]] %s1888_s25  ;;  %p62_p0 = scmp.eq.s32.totalorder %s1900_s28, 0 }
  0x16   : > { %2855 = sst [smem:[#allocation22_spill]] %s1892_s26  ;;  %p87_p1 = scmp.ne.s32.totalorder %s1868_s20, %s1864_s19 }
  0x17   : > { %2856 = sst [smem:[#allocation23_spill]] %s1993_s29  ;;  %p93_p2 = scmp.ne.s32.totalorder %s1864_s19, %s1860_s18 }
  0x18   : > { %p195_p3 = scmp.eq.s32.totalorder %s1993_s29, 3  ;;  %p201_p4 = scmp.eq.s32.totalorder %s1398_s30, 3 }
  0x19   : > { %p2005_p5 = por %p87_p1, %p62_p0  ;;  %p1485_p8 = scmp.lt.s32.totalorder %s1900_s28, 4 }
  0x1a   : > { %p2009_p6 = por %p195_p3, %p87_p1  ;;  %p2016_p7 = por %p201_p4, %p93_p2 }
  0x1b   : > { %s2023_s11 = sand.u32 1, %s1868_s20   ;;  %s1448_s13 = sshll.u32 %s1896_s27, 9 }
  0x1c   : > { %s2858_s8 = scalar_select %p2009_p6, 1, 0 }
  0x1d   : > { %s2860_s9 = scalar_select %p2016_p7, 1, 0 }
  0x1e   : > { %2859 = sst [smem:[#allocation24_spill]] %s2858_s8  ;;  %s1407_s12 = sshll.u32 %s2023_s11, 9 }
  0x1f   : > { %2861 = sst [smem:[#allocation25_spill]] %s2860_s9  ;;  %s251_s30 = scalar_lea.vmem [#allocation8], %s1407_s12 }
  0x20   : > { %s2862_s1 = sld [smem:[#allocation52_spill]]  ;;  %s259_s6 = sshll.u32 %s251_s30, 4  ;;  %s260_s6 = int_to_ptr.vmem [resolvable:$true] %s259_s6 }
  0x21   : > { %p2034_p9 = pnand %p1485_p8, %p2005_p5  ;;  %s2864_s2 = sld [smem:[#allocation53_spill]] }
  0x22   : > { %s2865_s15 = sand.u32 1, %s1900_s28   ;;  %s2815_s30 = smov 512  }
  0x23   : > { %s273_s5 = scalar_lea.vmem [#allocation10], %s1407_s12  ;;  %p1418_p10 = scmp.ge.s32.totalorder %s1900_s28, 1 }
  0x24   : > { %s281_s25 = sshll.u32 %s273_s5, 4  ;;  %p330_p11 = scmp.lt.s32.totalorder %s1900_s28, 5  ;;  %s2053_s25 = int_to_ptr.vmem [resolvable:$true] %s281_s25 }
  0x25   : > { %s1413_s8 = sshll.u32 %s2023_s11, 2  ;;  %s2868_s3 = sld [smem:[#allocation54_spill]] }
  0x26   : > { %s256_s16 = scalar_lea.hbm %s2862_s1, %s1448_s13  ;;  %s2816_s1 = smov 32  }
  0x27   : > { %s257_s17 = sshll.u32 %s256_s16, 4  ;;  %s278_s14 = scalar_lea.hbm %s2864_s2, %s1448_s13  ;;  %s258_s17 = int_to_ptr.hbm [resolvable:$true] %s257_s17 }
  0x28   : > { %s2043_s16 = scalar_lea.sflag [#allocation9], %s2865_s15  ;;  %s279_s7 = sshll.u32 %s278_s14, 4  ;;  %s2051_s7 = int_to_ptr.hbm [resolvable:$true] %s279_s7 }
  0x29   : > { %1471 = dma.hbm_to_vmem [thread:$0]  (!%p2034_p9), %s258_s17, 8192, %s260_s6, %s2043_s16, %s2815_s30, %s2815_s30, %s2816_s1  }
  0x2a   : > { %p2058_p12 = pnand %p1418_p10, %p330_p11  ;;  %s1414_s6 = sshll.u32 %s1896_s27, 2 }
  0x2b   : > { %s295_s12 = scalar_lea.vmem [#allocation11], %s1413_s8  ;;  %s299_s14 = scalar_lea.hbm %s2868_s3, %s1414_s6 }
  0x2c   : > { %s2866_s9 = scalar_select %p2058_p12, 1, 0 }
  0x2d   : > { %s303_s5 = sshll.u32 %s295_s12, 4  ;;  %s301_s15 = sshll.u32 %s299_s14, 4  ;;  %s304_s5 = int_to_ptr.vmem [resolvable:$true] %s303_s5  ;;  %s302_s15 = int_to_ptr.hbm [resolvable:$true] %s301_s15 }
  0x2e   : > { %2867 = sst [smem:[#allocation26_spill]] %s2866_s9  ;;  %s2869_s30 = sand.u32 1, %s1900_s28  }
  0x2f   : > { %s2068_s1 = scalar_lea.sflag [#allocation12], %s2869_s30  ;;  %s36_s8 = sadd.s32 1, %s1892_s26 }
  0x30   : > { %1477 = dma.hbm_to_vmem [thread:$0]  (!%p2034_p9), %s302_s15, 64, %s304_s5, %s2068_s1  }
  0x31   : > { %s39_s12 = sadd.s32 1, %s1896_s27  ;;  %p37_p13 = scmp.ge.s32.totalorder %s36_s8, 2 }
  0x32   : > { %s1399_s6 = sshll.u32 %s1892_s26, 1  ;;  %s54_s17 = sadd.s32 1, %s1880_s23 }
  0x33   : > { %s44_s13 = ssub.s32 1, %s1399_s6  ;;  %s2948_s8 = smov (%p37_p13, %s36_s8), 0 }
  0x34   : > { %2870 = sst [smem:[#allocation27_spill]] %s2948_s8  ;;  %s2950_s12 = smov (!%p37_p13, %s39_s12), %s1896_s27 }
  0x35   : > { %s45_s30 = smul.u32 %s1896_s27, %s44_s13  ;;  %s1400_s14 = sshll.u32 %s2948_s8, 1 }
  0x36   : > { %p41_p1 = scmp.ge.s32.totalorder %s2950_s12, 2  ;;  %s48_s5 = ssub.s32 1, %s1400_s14 }
  0x37   : > { %s46_s15 = sadd.s32 %s1892_s26, %s45_s30  ;;  %p61_p3 = scmp.ne.s32.totalorder %s1880_s23, %s1876_s22 }
  0x38   : > { %s2952_s12 = smov (%p41_p1, %s2950_s12), 0  ;;  %p67_p5 = scmp.ne.s32.totalorder %s1876_s22, %s1872_s21 }
  0x39   : > { %2871 = sst [smem:[#allocation28_spill]] %s2952_s12  ;;  %p2089_p4 = por %p62_p0, %p61_p3 }
  0x3a   : > { %s49_s13 = smul.u32 %s48_s5, %s2952_s12  ;;  %p68_p10 = scmp.eq.s32.totalorder %s1993_s29, 0 }
  0x3b   : > { %s77_s2 = ssub.s32 %s1896_s27, %s2952_s12  ;;  %s221_s3 = sand.u32 1, %s1880_s23  }
  0x3c   : > { %s50_s14 = sadd.s32 %s49_s13, %s2948_s8  ;;  %p2101_p11 = por %p68_p10, %p67_p5 }
  0x3d   : > { %s51_s26 = ssub.s32 %s46_s15, %s50_s14  ;;  %p78_p13 = scmp.eq.s32.totalorder %s77_s2, 0 }
  0x3e   : > { %s2873_s30 = scalar_select %p2101_p11, 1, 0 }
  0x3f   : > { %p52_p1 = scmp.eq.s32.totalorder %s51_s26, 0  ;;  %p2108_p0 = por %p93_p2, %p68_p10 }
  0x40   : > { %2874 = sst [smem:[#allocation29_spill]] %s2873_s30  ;;  %s2876_s21 = sadd.s32 1, %s1868_s20 }
  0x41   : > { %s2115_s5 = scalar_select %p78_p13, %s1868_s20, %s2876_s21  }
  0x42   : > { %s2118_s12 = scalar_select %p52_p1, %s1880_s23, %s54_s17  }
  0x43   : > { %s1403_s13 = sshll.u32 %s221_s3, 5  ;;  %s1447_s8 = sshll.u32 %s46_s15, 5 }
  0x44   : > { %2877 = sst [smem:[#allocation30_spill]] %s2118_s12  ;;  %s225_s9 = scalar_lea.vmem [#allocation5], %s1403_s13 }
  0x45   : > { %s2878_s0 = sld [smem:[#allocation51_spill]]  ;;  %s237_s14 = sshll.u32 %s225_s9, 4  ;;  %s238_s14 = int_to_ptr.vmem [resolvable:$true] %s237_s14 }
  0x46   : > { %p2127_p2 = pnand %p1485_p8, %p2089_p4  ;;  %s1415_s17 = sshll.u32 %s2023_s11, 7 }
  0x47   : > { %s222_s21 = scalar_lea.sflag [#allocation6], %s221_s3 }
  0x48   : > { %p1684_p5 = pneg %p2127_p2 }
  0x4b   : > { %s234_s30 = scalar_lea.hbm %s2878_s0, %s1447_s8  ;;  %s1687_s9 = scalar_lea.hbm %s2878_s0, 64 }
  0x4c   : > { %s235_s2 = sshll.u32 %s234_s30, 4  ;;  %s236_s2 = int_to_ptr.hbm [resolvable:$true] %s235_s2 }
  0x4d   : > { %s1680_s12 = sshra.s32 %s236_s2, 4  ;;  %s1681_s12 = int_to_ptr.hbm [resolvable:$true] %s1680_s12 }
  0x4e   : > { %s1682_s15 = scalar_lea.hbm %s1681_s12, 32  ;;  %p1688_p8 = scmp.lt.s32.totalorder %s1681_s12, %s2878_s0 }
  0x4f   : > { %p1683_p3 = scmp.ne.s32.totalorder %s1681_s12, %s1682_s15  ;;  %p1689_p4 = scmp.lt.s32.totalorder %s1687_s9, %s1682_s15 }
  0x51   : > { %p1685_p10 = pnand %p1684_p5, %p1683_p3  ;;  %p1690_p1 = por %p1689_p4, %p1688_p8 }
  0x53   : > { %p1686_p13 = pneg %p1685_p10 }
  0x55   : > { %p1691_p7 = pnand %p1690_p1, %p1686_p13 }
  0x57   : > { %1694 = shalt.err (!%p1691_p7)
}
  0x58   : > { %s1904_s3 = smov 128   ;;  %s1905_s11 = smov 8  }
  0x59   : > { %1468 = dma.hbm_to_vmem [thread:$0]  (!%p2127_p2), %s236_s2, 512, %s238_s14, %s222_s21, %s1904_s3, %s1904_s3, %s1905_s11  }
  0x5a   : > { %s2880_s30 = smov 32   ;;  %s2881_s13 = smov 512  }
  0x5b   : > { %1474 = dma.hbm_to_vmem [thread:$0]  (!%p2034_p9), %s2051_s7, 8192, %s2053_s25, %s2043_s16, %s2881_s13, %s2881_s13, %s2880_s30  }
  0x5c   : > { %s1450_s12 = sshll.u32 %s1896_s27, 7  ;;  %s314_s9 = scalar_lea.vmem [#allocation13], %s1415_s17 }
  0x5d   : > { %s319_s29 = scalar_lea.hbm %s2808_s4, %s1450_s12  ;;  %s322_s8 = sshll.u32 %s314_s9, 4  ;;  %s323_s8 = int_to_ptr.vmem [resolvable:$true] %s322_s8 }
  0x5e   : > { %s320_s6 = sshll.u32 %s319_s29, 4  ;;  %334 = sbr.rel (%p2058_p12) target bundleno = 1015 (0x3f7), region = 40  ;;  %s321_s6 = int_to_ptr.hbm [resolvable:$true] %s320_s6 }
  0x5f   : > { %1480 = dma.hbm_to_vmem [thread:$0]  (!%p2034_p9), %s321_s6, 2048, %s323_s8, %s2068_s1, %s1904_s3, %s1904_s3, %s1905_s11  }
  0x63   : > { %s2883_s14 = sld [smem:[#allocation19_spill]] }
  0x69   : > { %s336_s26 = sand.u32 1, %s2883_s14  }
  0x6a   : > { %s1419_s21 = sshll.u32 %s336_s26, 5  ;;  %s337_s25 = scalar_lea.sflag [#allocation6], %s336_s26 }
  0x6b   : > { %s2160_s16 = scalar_lea.vmem [#allocation5], %s1419_s21 }
  0x6c   : > { %1843 = dma.done.wait (%p2101_p11), %s337_s25, 512  }
  0x6d   : > { %1845 = vsyncadd (%p2101_p11), %s337_s25, 4294966784  ;;  %s2885_s7 = sld [smem:[#allocation23_spill]]  ;;  %s2168_s1 = sand.u32 1, %s1864_s19  }
  0x6e   : > { %s1420_s0 = sshll.u32 %s2168_s1, 9 }
  0x6f   : > { %s2171_s3 = scalar_lea.vmem [#allocation8], %s1420_s0 }
  0x73   : > { %s346_s10 = sand.u32 1, %s2885_s7  }
  0x74   : > { %s347_s17 = scalar_lea.sflag [#allocation9], %s346_s10 }
  0x75   : > { %1847 = dma.done.wait (%p2108_p0), %s347_s17, 16384  }
  0x76   : > { %1849 = vsyncadd (%p2108_p0), %s347_s17, 4294950912  ;;  %s1422_s11 = sshll.u32 %s2168_s1, 2  ;;  %s2178_s30 = scalar_lea.vmem [#allocation10], %s1420_s0 }
  0x77   : > { %s367_s13 = scalar_lea.sflag [#allocation12], %s346_s10  ;;  %s2180_s12 = scalar_lea.vmem [#allocation11], %s1422_s11 }
  0x78   : > { %1851 = dma.done.wait (%p2108_p0), %s367_s13, 2112  }
  0x79   : > { %1853 = vsyncadd (%p2108_p0), %s367_s13, 4294965184  ;;  %s1423_s15 = sshll.u32 %s2168_s1, 7  ;;  %s1424_s22 = sshll.u32 %s2168_s1, 3 }
  0x7a   : > { %s2188_s29 = scalar_lea.vmem [#allocation13], %s1423_s15  ;;  %s2190_s9 = scalar_lea.vmem [#allocation14], %s1424_s22 }
  0x7b   : > { %s2886_s8 = sld [smem:[#allocation20_spill]] }
  0x81   : > { %p1425_p7 = scmp.ne.s32.totalorder %s2886_s8, 0 }
  0x82   : > { %s2887_s6 = sld [smem:[#allocation21_spill]] (!%p1425_p7) }
  0x83   : > { %436 = sbr.rel (%p1425_p7) target bundleno = 140 (0x8c), region = 64 }
  0x88   : > { %s1426_s14 = sshll.u32 %s2887_s6, 3  ;;  %v1906_v0 = vmov 0.0  }
  0x89   : > { %442 = vst [vmem:[%s2190_s9] sm:$0xff] %v1906_v0  ;;  %s438_s2 = scalar_lea.vmem [#allocation2], %s1426_s14  ;;  %s440_s24 = scalar_lea.vmem [#allocation3], %s1426_s14 }
  0x8a   : > { %439 = vst [vmem:[%s438_s2] sm:$0xff] %v1906_v0 }
  0x8b   : > { %441 = vst [vmem:[%s440_s24] sm:$0xff] %v1906_v0 }
  0x8c PF: > { %v509_v1 = vld [vmem:[%s2171_s3 + $0x1f0] sm:$0xff]  ;;  %v510_v2 = vld [vmem:[%s2171_s3 + $0x1f8] sm:$0xff]  ;;  %v507_v7 = vld [vmem:[%s2171_s3 + $0x1e0] sm:$0xff]  ;;  %s2890_s26 = sld [smem:[#allocation21_spill]] }
  0x8d   : > { %v505_v3 = vld [vmem:[%s2171_s3 + $0x1d0] sm:$0xff]  ;;  %579 = vmatpush.msra.mxu2 %v509_v1  ;;  %608 = vmatpush.msra.mxu3 %v510_v2  ;;  %v506_v4 = vld [vmem:[%s2171_s3 + $0x1d8] sm:$0xff]  ;;  %v508_v8 = vld [vmem:[%s2171_s3 + $0x1e8] sm:$0xff]  ;;  %s2930_s15 = sld [smem:[#allocation20_spill]] }
  0x8e   : > { %v501_v5 = vld [vmem:[%s2171_s3 + $0x1b0] sm:$0xff]  ;;  %v502_v6 = vld [vmem:[%s2171_s3 + $0x1b8] sm:$0xff]  ;;  %v503_v9 = vld [vmem:[%s2171_s3 + $0x1c0] sm:$0xff]  ;;  %521 = vmatpush.msra.mxu0 %v507_v7  ;;  %550 = vmatpush.msra.mxu1 %v508_v8 }
  0x8f   : > { %580 = vmatpush.msra.mxu2 %v505_v3  ;;  %609 = vmatpush.msra.mxu3 %v506_v4  ;;  %v504_v10 = vld [vmem:[%s2171_s3 + $0x1c8] sm:$0xff]  ;;  %v497_v11 = vld [vmem:[%s2171_s3 + $0x190] sm:$0xff]  ;;  %v498_v12 = vld [vmem:[%s2171_s3 + $0x198] sm:$0xff] }
  0x90   : > { %v499_v13 = vld [vmem:[%s2171_s3 + $0x1a0] sm:$0xff]  ;;  %v500_v14 = vld [vmem:[%s2171_s3 + $0x1a8] sm:$0xff]  ;;  %522 = vmatpush.msra.mxu0 %v503_v9  ;;  %551 = vmatpush.msra.mxu1 %v504_v10  ;;  %v493_v15 = vld [vmem:[%s2171_s3 + $0x170] sm:$0xff] }
  0x91   : > { %581 = vmatpush.msra.mxu2 %v501_v5  ;;  %610 = vmatpush.msra.mxu3 %v502_v6  ;;  %v494_v16 = vld [vmem:[%s2171_s3 + $0x178] sm:$0xff]  ;;  %v495_v17 = vld [vmem:[%s2171_s3 + $0x180] sm:$0xff]  ;;  %v496_v18 = vld [vmem:[%s2171_s3 + $0x188] sm:$0xff] }
  0x92   : > { %523 = vmatpush.msra.mxu0 %v499_v13  ;;  %552 = vmatpush.msra.mxu1 %v500_v14  ;;  %v489_v19 = vld [vmem:[%s2171_s3 + $0x150] sm:$0xff]  ;;  %v490_v20 = vld [vmem:[%s2171_s3 + $0x158] sm:$0xff]  ;;  %v491_v21 = vld [vmem:[%s2171_s3 + $0x160] sm:$0xff]  ;;  %s2460_s21 = sshll.u32 %s2890_s26, 3  ;;  %s1430_s0 = sshll.u32 %s2890_s26, 5 }
  0x93   : > { %582 = vmatpush.msra.mxu2 %v497_v11  ;;  %611 = vmatpush.msra.mxu3 %v498_v12  ;;  %v492_v22 = vld [vmem:[%s2171_s3 + $0x168] sm:$0xff]  ;;  %v485_v23 = vld [vmem:[%s2171_s3 + $0x130] sm:$0xff]  ;;  %v486_v24 = vld [vmem:[%s2171_s3 + $0x138] sm:$0xff]  ;;  %s654_s25 = scalar_lea.vmem [#allocation2], %s2460_s21  ;;  %s656_s10 = scalar_lea.vmem [#allocation3], %s2460_s21 }
  0x94   : > { %524 = vmatpush.msra.mxu0 %v495_v17  ;;  %553 = vmatpush.msra.mxu1 %v496_v18  ;;  %v487_v25 = vld [vmem:[%s2171_s3 + $0x140] sm:$0xff]  ;;  %v488_v26 = vld [vmem:[%s2171_s3 + $0x148] sm:$0xff]  ;;  %v481_v27 = vld [vmem:[%s2171_s3 + $0x110] sm:$0xff]  ;;  %s1310_s17 = scalar_lea.vmem [#allocation4], %s1430_s0  ;;  %s1437_s13 = smul.u32 4294967200, %s2890_s26 }
  0x95   : > { %583 = vmatpush.msra.mxu2 %v493_v15  ;;  %612 = vmatpush.msra.mxu3 %v494_v16  ;;  %v482_v28 = vld [vmem:[%s2171_s3 + $0x118] sm:$0xff]  ;;  %v483_v29 = vld [vmem:[%s2171_s3 + $0x120] sm:$0xff]  ;;  %v484_v30 = vld [vmem:[%s2171_s3 + $0x128] sm:$0xff]  ;;  %p1442_p9 = scmp.ne.s32.totalorder %s2930_s15, 1 }
  0x96   : > { %525 = vmatpush.msra.mxu0 %v491_v21  ;;  %554 = vmatpush.msra.mxu1 %v492_v22  ;;  %v477_v31 = vld [vmem:[%s2171_s3 + $0xf0] sm:$0xff]  ;;  %v478_v32 = vld [vmem:[%s2171_s3 + $0xf8] sm:$0xff]  ;;  %v479_v33 = vld [vmem:[%s2171_s3 + $0x100] sm:$0xff] }
  0x97   : > { %584 = vmatpush.msra.mxu2 %v489_v19  ;;  %613 = vmatpush.msra.mxu3 %v490_v20  ;;  %v480_v34 = vld [vmem:[%s2171_s3 + $0x108] sm:$0xff]  ;;  %v473_v35 = vld [vmem:[%s2171_s3 + $0xd0] sm:$0xff]  ;;  %v474_v36 = vld [vmem:[%s2171_s3 + $0xd8] sm:$0xff] }
  0x98   : > { %526 = vmatpush.msra.mxu0 %v487_v25  ;;  %555 = vmatpush.msra.mxu1 %v488_v26  ;;  %v475_v37 = vld [vmem:[%s2171_s3 + $0xe0] sm:$0xff]  ;;  %v476_v38 = vld [vmem:[%s2171_s3 + $0xe8] sm:$0xff]  ;;  %v469_v39 = vld [vmem:[%s2171_s3 + $0xb0] sm:$0xff] }
  0x99   : > { %585 = vmatpush.msra.mxu2 %v485_v23  ;;  %614 = vmatpush.msra.mxu3 %v486_v24  ;;  %v470_v40 = vld [vmem:[%s2171_s3 + $0xb8] sm:$0xff]  ;;  %v471_v41 = vld [vmem:[%s2171_s3 + $0xc0] sm:$0xff]  ;;  %v472_v42 = vld [vmem:[%s2171_s3 + $0xc8] sm:$0xff] }
  0x9a   : > { %527 = vmatpush.msra.mxu0 %v483_v29  ;;  %556 = vmatpush.msra.mxu1 %v484_v30  ;;  %v465_v43 = vld [vmem:[%s2171_s3 + $0x90] sm:$0xff]  ;;  %v466_v44 = vld [vmem:[%s2171_s3 + $0x98] sm:$0xff]  ;;  %v467_v45 = vld [vmem:[%s2171_s3 + $0xa0] sm:$0xff] }
  0x9b   : > { %586 = vmatpush.msra.mxu2 %v481_v27  ;;  %615 = vmatpush.msra.mxu3 %v482_v28  ;;  %v468_v46 = vld [vmem:[%s2171_s3 + $0xa8] sm:$0xff]  ;;  %v461_v47 = vld [vmem:[%s2171_s3 + $0x70] sm:$0xff]  ;;  %v462_v48 = vld [vmem:[%s2171_s3 + $0x78] sm:$0xff] }
  0x9c   : > { %528 = vmatpush.msra.mxu0 %v479_v33  ;;  %557 = vmatpush.msra.mxu1 %v480_v34  ;;  %v463_v49 = vld [vmem:[%s2171_s3 + $0x80] sm:$0xff]  ;;  %v464_v50 = vld [vmem:[%s2171_s3 + $0x88] sm:$0xff]  ;;  %v457_v51 = vld [vmem:[%s2171_s3 + $0x50] sm:$0xff] }
  0x9d   : > { %587 = vmatpush.msra.mxu2 %v477_v31  ;;  %616 = vmatpush.msra.mxu3 %v478_v32  ;;  %v458_v52 = vld [vmem:[%s2171_s3 + $0x58] sm:$0xff]  ;;  %v459_v53 = vld [vmem:[%s2171_s3 + $0x60] sm:$0xff]  ;;  %v460_v54 = vld [vmem:[%s2171_s3 + $0x68] sm:$0xff] }
  0x9e   : > { %529 = vmatpush.msra.mxu0 %v475_v37  ;;  %558 = vmatpush.msra.mxu1 %v476_v38  ;;  %v453_v55 = vld [vmem:[%s2171_s3 + $0x30] sm:$0xff]  ;;  %v454_v56 = vld [vmem:[%s2171_s3 + $0x38] sm:$0xff]  ;;  %v455_v57 = vld [vmem:[%s2171_s3 + $0x40] sm:$0xff] }
  0x9f   : > { %588 = vmatpush.msra.mxu2 %v473_v35  ;;  %617 = vmatpush.msra.mxu3 %v474_v36  ;;  %v456_v58 = vld [vmem:[%s2171_s3 + $0x48] sm:$0xff]  ;;  %v449_v59 = vld [vmem:[%s2171_s3 + $0x10] sm:$0xff]  ;;  %v450_v60 = vld [vmem:[%s2171_s3 + $0x18] sm:$0xff] }
  0xa0   : > { %530 = vmatpush.msra.mxu0 %v471_v41  ;;  %559 = vmatpush.msra.mxu1 %v472_v42  ;;  %v443_v61 = vld [vmem:[%s2160_s16] sm:$0xff]  ;;  %v452_v63 = vld [vmem:[%s2171_s3 + $0x28] sm:$0xff]  ;;  %v2259_v0 = vld [vmem:[%s2178_s30 + $0x1f0] sm:$0xff] }
  0xa1   : > { %589 = vmatpush.msra.mxu2 %v469_v39  ;;  %618 = vmatpush.msra.mxu3 %v470_v40  ;;  %v451_v62 = vld [vmem:[%s2171_s3 + $0x20] sm:$0xff]  ;;  %v2262_v1 = vld [vmem:[%s2178_s30 + $0x1f8] sm:$0xff]  ;;  %v448_v3 = vld [vmem:[%s2171_s3 + $0x8] sm:$0xff] }
  0xa2   : > { %531 = vmatpush.msra.mxu0 %v467_v45  ;;  %560 = vmatpush.msra.mxu1 %v468_v46  ;;  %v447_v2 = vld [vmem:[%s2171_s3] sm:$0xff]  ;;  %v2267_v4 = vld [vmem:[%s2178_s30 + $0x1d0] sm:$0xff]  ;;  %v2270_v5 = vld [vmem:[%s2178_s30 + $0x1d8] sm:$0xff]  ;;  %s936_s3 = ssub.s32 2, %s2890_s26 }
  0xa3   : > { %590 = vmatpush.msra.mxu2 %v465_v43  ;;  %619 = vmatpush.msra.mxu3 %v466_v44  ;;  %v2275_v6 = vld [vmem:[%s2178_s30 + $0x1b0] sm:$0xff]  ;;  %v2278_v7 = vld [vmem:[%s2178_s30 + $0x1b8] sm:$0xff]  ;;  %v2283_v8 = vld [vmem:[%s2178_s30 + $0x1e0] sm:$0xff]  ;;  %s1452_s11 = sshll.u32 %s936_s3, 5 }
  0xa4   : > { %532 = vmatpush.msra.mxu0 %v463_v49  ;;  %561 = vmatpush.msra.mxu1 %v464_v50  ;;  %v2286_v9 = vld [vmem:[%s2178_s30 + $0x1e8] sm:$0xff]  ;;  %v2292_v11 = vld [vmem:[%s2178_s30 + $0x190] sm:$0xff]  ;;  %v2295_v12 = vld [vmem:[%s2178_s30 + $0x198] sm:$0xff] }
  0xa5   : > { %591 = vmatpush.msra.mxu2 %v461_v47  ;;  %620 = vmatpush.msra.mxu3 %v462_v48  ;;  %v444_v10 = vld [vmem:[%s2160_s16 + $0x8] sm:$0xff]  ;;  %v2300_v13 = vld [vmem:[%s2178_s30 + $0x1c0] sm:$0xff]  ;;  %v2306_v15 = vld [vmem:[%s2178_s30 + $0x170] sm:$0xff] }
  0xa6   : > { %533 = vmatpush.msra.mxu0 %v459_v53  ;;  %562 = vmatpush.msra.mxu1 %v460_v54  ;;  %v2303_v14 = vld [vmem:[%s2178_s30 + $0x1c8] sm:$0xff]  ;;  %v2309_v16 = vld [vmem:[%s2178_s30 + $0x178] sm:$0xff]  ;;  %v2314_v17 = vld [vmem:[%s2178_s30 + $0x1a0] sm:$0xff] }
  0xa7   : > { %592 = vmatpush.msra.mxu2 %v457_v51  ;;  %621 = vmatpush.msra.mxu3 %v458_v52  ;;  %v2317_v18 = vld [vmem:[%s2178_s30 + $0x1a8] sm:$0xff]  ;;  %v2322_v19 = vld [vmem:[%s2178_s30 + $0x150] sm:$0xff]  ;;  %v2325_v20 = vld [vmem:[%s2178_s30 + $0x158] sm:$0xff] }
  0xa8   : > { %534 = vmatpush.msra.mxu0 %v455_v57  ;;  %563 = vmatpush.msra.mxu1 %v456_v58  ;;  %v2332_v21 = vld [vmem:[%s2178_s30 + $0x180] sm:$0xff]  ;;  %v2335_v22 = vld [vmem:[%s2178_s30 + $0x188] sm:$0xff]  ;;  %v2340_v23 = vld [vmem:[%s2178_s30 + $0x130] sm:$0xff] }
  0xa9   : > { %593 = vmatpush.msra.mxu2 %v453_v55  ;;  %622 = vmatpush.msra.mxu3 %v454_v56  ;;  %v2343_v24 = vld [vmem:[%s2178_s30 + $0x138] sm:$0xff]  ;;  %v445_v25 = vld [vmem:[%s2160_s16 + $0x10] sm:$0xff]  ;;  %v2349_v26 = vld [vmem:[%s2178_s30 + $0x160] sm:$0xff] }
  0xaa   : > { %535 = vmatpush.msra.mxu0 %v451_v62  ;;  %564 = vmatpush.msra.mxu1 %v452_v63  ;;  %v2352_v27 = vld [vmem:[%s2178_s30 + $0x168] sm:$0xff]  ;;  %v2357_v28 = vld [vmem:[%s2178_s30 + $0x110] sm:$0xff]  ;;  %v2360_v29 = vld [vmem:[%s2178_s30 + $0x118] sm:$0xff] }
  0xab   : > { %594 = vmatpush.msra.mxu2 %v449_v59  ;;  %623 = vmatpush.msra.mxu3 %v450_v60  ;;  %v2363_v30 = vld [vmem:[%s2178_s30 + $0x140] sm:$0xff]  ;;  %v2366_v31 = vld [vmem:[%s2178_s30 + $0x148] sm:$0xff]  ;;  %v2371_v32 = vld [vmem:[%s2178_s30 + $0xf0] sm:$0xff] }
  0xac   : > { %595 = vmatmul.f32.vlgmr.msra.gmra.mxu2 %v443_v61  ;;  %624 = vmatmul.f32.vlgmr.msra.gmra.mxu3 %v443_v61  ;;  %v2374_v33 = vld [vmem:[%s2178_s30 + $0xf8] sm:$0xff]  ;;  %v2379_v34 = vld [vmem:[%s2178_s30 + $0x120] sm:$0xff]  ;;  %v2382_v35 = vld [vmem:[%s2178_s30 + $0x128] sm:$0xff] }
  0xad   : > { %770 = vmatpush.msrb.mxu2 %v2259_v0  ;;  %790 = vmatpush.msrb.mxu3 %v2262_v1  ;;  %v2387_v36 = vld [vmem:[%s2178_s30 + $0xd0] sm:$0xff]  ;;  %v2390_v37 = vld [vmem:[%s2178_s30 + $0xd8] sm:$0xff]  ;;  %v2397_v38 = vld [vmem:[%s2178_s30 + $0x100] sm:$0xff] }
  0xae   : > { %536 = vmatpush.msra.mxu0 %v447_v2  ;;  %565 = vmatpush.msra.mxu1 %v448_v3  ;;  %v2400_v39 = vld [vmem:[%s2178_s30 + $0x108] sm:$0xff]  ;;  %v2405_v40 = vld [vmem:[%s2178_s30 + $0xb0] sm:$0xff]  ;;  %v2408_v41 = vld [vmem:[%s2178_s30 + $0xb8] sm:$0xff] }
  0xaf   : > { %771 = vmatpush.msrb.mxu2 %v2267_v4  ;;  %791 = vmatpush.msrb.mxu3 %v2270_v5  ;;  %v446_v42 = vld [vmem:[%s2160_s16 + $0x18] sm:$0xff]  ;;  %v2414_v43 = vld [vmem:[%s2178_s30 + $0xe0] sm:$0xff]  ;;  %v2417_v44 = vld [vmem:[%s2178_s30 + $0xe8] sm:$0xff]  ;;  %s1451_s16 = smul.u32 96, %s2890_s26 }
  0xb0   : > { %537 = vmatmul.f32.vlgmr.msra.gmra.mxu0 %v443_v61  ;;  %566 = vmatmul.f32.vlgmr.msra.gmra.mxu1 %v443_v61  ;;  %v2422_v45 = vld [vmem:[%s2178_s30 + $0x90] sm:$0xff]  ;;  %v2425_v46 = vld [vmem:[%s2178_s30 + $0x98] sm:$0xff]  ;;  %v2428_v47 = vld [vmem:[%s2178_s30 + $0xc0] sm:$0xff] }
  0xb1   : > { %772 = vmatpush.msrb.mxu2 %v2275_v6  ;;  %792 = vmatpush.msrb.mxu3 %v2278_v7  ;;  %2888 = vst [vmem:[#allocation31_spill] sm:$0xff] %v2422_v45  ;;  %v2431_v48 = vld [vmem:[%s2178_s30 + $0xc8] sm:$0xff]  ;;  %v2436_v49 = vld [vmem:[%s2178_s30 + $0x70] sm:$0xff]  ;;  %v2439_v50 = vld [vmem:[%s2178_s30 + $0x78] sm:$0xff]  ;;  %s661_s7 = scalar_lea.vmem [#allocation4], %s1451_s16 }
  0xb2   : > { %730 = vmatpush.msrb.mxu0 %v2283_v8  ;;  %750 = vmatpush.msrb.mxu1 %v2286_v9  ;;  %2889 = vst [vmem:[#allocation32_spill] sm:$0xff] %v2425_v46  ;;  %v2444_v51 = vld [vmem:[%s2178_s30 + $0xa0] sm:$0xff]  ;;  %v2447_v52 = vld [vmem:[%s2178_s30 + $0xa8] sm:$0xff]  ;;  %v2452_v53 = vld [vmem:[%s2178_s30 + $0x50] sm:$0xff] }
  0xb3   : > { %773 = vmatpush.msrb.mxu2 %v2292_v11  ;;  %793 = vmatpush.msrb.mxu3 %v2295_v12  ;;  %2891 = vst [vmem:[#allocation33_spill] sm:$0xff] %v2436_v49  ;;  %v2455_v54 = vld [vmem:[%s2178_s30 + $0x58] sm:$0xff]  ;;  %v2465_v55 = vld [vmem:[%s2178_s30 + $0x80] sm:$0xff]  ;;  %v2468_v56 = vld [vmem:[%s2178_s30 + $0x88] sm:$0xff] }
  0xb4   : > { %598 = vmatmul.f32.gmra.mxu2 %v444_v10  ;;  %627 = vmatmul.f32.gmra.mxu3 %v444_v10  ;;  %2892 = vst [vmem:[#allocation34_spill] sm:$0xff] %v2439_v50  ;;  %v2473_v57 = vld [vmem:[%s2178_s30 + $0x30] sm:$0xff]  ;;  %v2476_v58 = vld [vmem:[%s2178_s30 + $0x38] sm:$0xff]  ;;  %v2479_v59 = vld [vmem:[%s2178_s30 + $0x60] sm:$0xff] }
  0xb5   : > { %731 = vmatpush.msrb.mxu0 %v2300_v13  ;;  %751 = vmatpush.msrb.mxu1 %v2303_v14  ;;  %2893 = vst [vmem:[#allocation35_spill] sm:$0xff] %v2452_v53  ;;  %v2482_v60 = vld [vmem:[%s2178_s30 + $0x68] sm:$0xff]  ;;  %v2487_v61 = vld [vmem:[%s2178_s30 + $0x10] sm:$0xff]  ;;  %v2490_v62 = vld [vmem:[%s2178_s30 + $0x18] sm:$0xff] }
  0xb6   : > { %774 = vmatpush.msrb.mxu2 %v2306_v15  ;;  %794 = vmatpush.msrb.mxu3 %v2309_v16  ;;  %2894 = vst [vmem:[#allocation36_spill] sm:$0xff] %v2455_v54  ;;  %v2495_v63 = vld [vmem:[%s2178_s30 + $0x40] sm:$0xff]  ;;  %v2498_v2 = vld [vmem:[%s2178_s30 + $0x48] sm:$0xff] }
  0xb7   : > { %732 = vmatpush.msrb.mxu0 %v2314_v17  ;;  %752 = vmatpush.msrb.mxu1 %v2317_v18  ;;  %2895 = vst [vmem:[#allocation37_spill] sm:$0xff] %v2465_v55  ;;  %v655_v3 = vld [vmem:[%s654_s25] sm:$0xff] }
  0xb8   : > { %775 = vmatpush.msrb.mxu2 %v2322_v19  ;;  %795 = vmatpush.msrb.mxu3 %v2325_v20  ;;  %2896 = vst [vmem:[#allocation38_spill] sm:$0xff] %v2468_v56 }
  0xb9   : > { %540 = vmatmul.f32.gmra.mxu0 %v444_v10  ;;  %569 = vmatmul.f32.gmra.mxu1 %v444_v10  ;;  %2897 = vst [vmem:[#allocation39_spill] sm:$0xff] %v2473_v57  ;;  %v2508_v10 = vld [vmem:[%s2178_s30 + $0x20] sm:$0xff] }
  0xba   : > { %733 = vmatpush.msrb.mxu0 %v2332_v21  ;;  %753 = vmatpush.msrb.mxu1 %v2335_v22  ;;  %2898 = vst [vmem:[#allocation40_spill] sm:$0xff] %v2476_v58 }
  0xbb   : > { %776 = vmatpush.msrb.mxu2 %v2340_v23  ;;  %796 = vmatpush.msrb.mxu3 %v2343_v24  ;;  %2899 = vst [vmem:[#allocation41_spill] sm:$0xff] %v2479_v59 }
  0xbc   : > { %601 = vmatmul.f32.gmra.mxu2 %v445_v25  ;;  %630 = vmatmul.f32.gmra.mxu3 %v445_v25  ;;  %2900 = vst [vmem:[#allocation42_spill] sm:$0xff] %v2482_v60 }
  0xbd   : > { %734 = vmatpush.msrb.mxu0 %v2349_v26  ;;  %754 = vmatpush.msrb.mxu1 %v2352_v27  ;;  %2901 = vst [vmem:[#allocation43_spill] sm:$0xff] %v2487_v61 }
  0xbe   : > { %777 = vmatpush.msrb.mxu2 %v2357_v28  ;;  %797 = vmatpush.msrb.mxu3 %v2360_v29  ;;  %2902 = vst [vmem:[#allocation44_spill] sm:$0xff] %v2490_v62 }
  0xbf   : > { %735 = vmatpush.msrb.mxu0 %v2363_v30  ;;  %755 = vmatpush.msrb.mxu1 %v2366_v31  ;;  %2903 = vst [vmem:[#allocation45_spill] sm:$0xff] %v2495_v63 }
  0xc0   : > { %778 = vmatpush.msrb.mxu2 %v2371_v32  ;;  %798 = vmatpush.msrb.mxu3 %v2374_v33  ;;  %2904 = vst [vmem:[#allocation46_spill] sm:$0xff] %v2498_v2 }
  0xc1   : > { %736 = vmatpush.msrb.mxu0 %v2379_v34  ;;  %756 = vmatpush.msrb.mxu1 %v2382_v35  ;;  %2905 = vst [vmem:[#allocation47_spill] sm:$0xff] %v2508_v10 }
  0xc2   : > { %779 = vmatpush.msrb.mxu2 %v2387_v36  ;;  %799 = vmatpush.msrb.mxu3 %v2390_v37 }
  0xc3   : > { %543 = vmatmul.f32.gmra.mxu0 %v445_v25  ;;  %572 = vmatmul.f32.gmra.mxu1 %v445_v25  ;;  %v2511_v25 = vld [vmem:[%s2178_s30 + $0x28] sm:$0xff] }
  0xc4   : > { %737 = vmatpush.msrb.mxu0 %v2397_v38  ;;  %757 = vmatpush.msrb.mxu1 %v2400_v39  ;;  %2906 = vst [vmem:[#allocation48_spill] sm:$0xff] %v2511_v25 }
  0xc5   : > { %780 = vmatpush.msrb.mxu2 %v2405_v40  ;;  %800 = vmatpush.msrb.mxu3 %v2408_v41 }
  0xc6   : > { %604 = vmatmul.f32.gmra.mxu2 %v446_v42  ;;  %633 = vmatmul.f32.gmra.mxu3 %v446_v42 }
  0xc7   : > { %738 = vmatpush.msrb.mxu0 %v2414_v43  ;;  %758 = vmatpush.msrb.mxu1 %v2417_v44 }
  0xc8   : > { %781 = vmatpush.msrb.mxu2 %v2422_v45  ;;  %801 = vmatpush.msrb.mxu3 %v2425_v46 }
  0xc9   : > { %739 = vmatpush.msrb.mxu0 %v2428_v47  ;;  %759 = vmatpush.msrb.mxu1 %v2431_v48 }
  0xca   : > { %782 = vmatpush.msrb.mxu2 %v2436_v49  ;;  %802 = vmatpush.msrb.mxu3 %v2439_v50 }
  0xcb   : > { %740 = vmatpush.msrb.mxu0 %v2444_v51  ;;  %760 = vmatpush.msrb.mxu1 %v2447_v52 }
  0xcc   : > { %783 = vmatpush.msrb.mxu2 %v2452_v53  ;;  %803 = vmatpush.msrb.mxu3 %v2455_v54 }
  0xcd   : > { %546 = vmatmul.f32.gmra.mxu0 %v446_v42  ;;  %575 = vmatmul.f32.gmra.mxu1 %v446_v42  ;;  %v2516_v42 = vld [vmem:[%s2178_s30] sm:$0xff] }
  0xce   : > { %741 = vmatpush.msrb.mxu0 %v2465_v55  ;;  %761 = vmatpush.msrb.mxu1 %v2468_v56  ;;  %2907 = vst [vmem:[#allocation49_spill] sm:$0xff] %v2516_v42 }
  0xcf   : > { %784 = vmatpush.msrb.mxu2 %v2473_v57  ;;  %804 = vmatpush.msrb.mxu3 %v2476_v58  ;;  %v2519_v58 = vld [vmem:[%s2178_s30 + $0x8] sm:$0xff]  ;;  %s939_s30 = scalar_lea.vmem [#allocation4], %s1452_s11 }
  0xd0   : > { %742 = vmatpush.msrb.mxu0 %v2479_v59  ;;  %762 = vmatpush.msrb.mxu1 %v2482_v60  ;;  %2908 = vst [vmem:[#allocation50_spill] sm:$0xff] %v2519_v58 }
  0xd1   : > { %785 = vmatpush.msrb.mxu2 %v2487_v61  ;;  %805 = vmatpush.msrb.mxu3 %v2490_v62 }
  0xd2   : > { %743 = vmatpush.msrb.mxu0 %v2495_v63  ;;  %763 = vmatpush.msrb.mxu1 %v2498_v2 }
  0xd3   : > { %786 = vmatmul.f32.vlgmr.msrb.gmra.mxu2 %v655_v3  ;;  %806 = vmatmul.f32.vlgmr.msrb.gmra.mxu3 %v655_v3 }
  0xd4   : > { %744 = vmatpush.msrb.mxu0 %v2508_v10  ;;  %764 = vmatpush.msrb.mxu1 %v2511_v25 }
  0xd5   : > { %877 = vmatpush.msra.mxu2 %v2259_v0  ;;  %897 = vmatpush.msra.mxu3 %v2262_v1 }
  0xd6   : > { %745 = vmatpush.msrb.mxu0 %v2516_v42  ;;  %765 = vmatpush.msrb.mxu1 %v2519_v58 }
  0xd7   : > { %746 = vmatmul.f32.vlgmr.msrb.gmra.mxu0 %v655_v3  ;;  %766 = vmatmul.f32.vlgmr.msrb.gmra.mxu1 %v655_v3  ;;  %v2909_v3 = vld [vmem:[#allocation40_spill] sm:$0xff] }
  0xd8   : > { %837 = vmatpush.msra.mxu0 %v2283_v8  ;;  %857 = vmatpush.msra.mxu1 %v2286_v9 }
  0xd9   : > { %878 = vmatpush.msra.mxu2 %v2267_v4  ;;  %898 = vmatpush.msra.mxu3 %v2270_v5 }
  0xda   : > { %838 = vmatpush.msra.mxu0 %v2300_v13  ;;  %858 = vmatpush.msra.mxu1 %v2303_v14 }
  0xdb   : > { %879 = vmatpush.msra.mxu2 %v2275_v6  ;;  %899 = vmatpush.msra.mxu3 %v2278_v7 }
  0xdc   : > { %839 = vmatpush.msra.mxu0 %v2314_v17  ;;  %859 = vmatpush.msra.mxu1 %v2317_v18 }
  0xdd   : > { %880 = vmatpush.msra.mxu2 %v2292_v11  ;;  %900 = vmatpush.msra.mxu3 %v2295_v12 }
  0xde   : > { %840 = vmatpush.msra.mxu0 %v2332_v21  ;;  %860 = vmatpush.msra.mxu1 %v2335_v22 }
  0xdf   : > { %881 = vmatpush.msra.mxu2 %v2306_v15  ;;  %901 = vmatpush.msra.mxu3 %v2309_v16 }
  0xe0   : > { %841 = vmatpush.msra.mxu0 %v2349_v26  ;;  %861 = vmatpush.msra.mxu1 %v2352_v27 }
  0xe1   : > { %882 = vmatpush.msra.mxu2 %v2322_v19  ;;  %902 = vmatpush.msra.mxu3 %v2325_v20 }
  0xe2   : > { %842 = vmatpush.msra.mxu0 %v2363_v30  ;;  %862 = vmatpush.msra.mxu1 %v2366_v31 }
  0xe3   : > { %883 = vmatpush.msra.mxu2 %v2340_v23  ;;  %903 = vmatpush.msra.mxu3 %v2343_v24 }
  0xe4   : > { %843 = vmatpush.msra.mxu0 %v2379_v34  ;;  %863 = vmatpush.msra.mxu1 %v2382_v35 }
  0xe5   : > { %884 = vmatpush.msra.mxu2 %v2357_v28  ;;  %904 = vmatpush.msra.mxu3 %v2360_v29 }
  0xe6   : > { %844 = vmatpush.msra.mxu0 %v2397_v38  ;;  %864 = vmatpush.msra.mxu1 %v2400_v39 }
  0xe7   : > { %885 = vmatpush.msra.mxu2 %v2371_v32  ;;  %905 = vmatpush.msra.mxu3 %v2374_v33 }
  0xe8   : > { %845 = vmatpush.msra.mxu0 %v2414_v43  ;;  %865 = vmatpush.msra.mxu1 %v2417_v44 }
  0xe9   : > { %886 = vmatpush.msra.mxu2 %v2387_v36  ;;  %906 = vmatpush.msra.mxu3 %v2390_v37 }
  0xea   : > { %846 = vmatpush.msra.mxu0 %v2428_v47  ;;  %866 = vmatpush.msra.mxu1 %v2431_v48 }
  0xeb   : > { %887 = vmatpush.msra.mxu2 %v2405_v40  ;;  %907 = vmatpush.msra.mxu3 %v2408_v41 }
  0xec   : > { %847 = vmatpush.msra.mxu0 %v2444_v51  ;;  %867 = vmatpush.msra.mxu1 %v2447_v52 }
  0xed   : > { %888 = vmatpush.msra.mxu2 %v2422_v45  ;;  %908 = vmatpush.msra.mxu3 %v2425_v46 }
  0xee   : > { %848 = vmatpush.msra.mxu0 %v2465_v55  ;;  %868 = vmatpush.msra.mxu1 %v2468_v56 }
  0xef   : > { %889 = vmatpush.msra.mxu2 %v2436_v49  ;;  %909 = vmatpush.msra.mxu3 %v2439_v50 }
  0xf0   : > { %849 = vmatpush.msra.mxu0 %v2479_v59  ;;  %869 = vmatpush.msra.mxu1 %v2482_v60 }
  0xf1   : > { %890 = vmatpush.msra.mxu2 %v2452_v53  ;;  %910 = vmatpush.msra.mxu3 %v2455_v54 }
  0xf2   : > { %850 = vmatpush.msra.mxu0 %v2495_v63  ;;  %870 = vmatpush.msra.mxu1 %v2498_v2 }
  0xf3   : > { %891 = vmatpush.msra.mxu2 %v2473_v57  ;;  %911 = vmatpush.msra.mxu3 %v2909_v3 }
  0xf4   : > { %851 = vmatpush.msra.mxu0 %v2508_v10  ;;  %871 = vmatpush.msra.mxu1 %v2511_v25 }
  0xf5   : > { %892 = vmatpush.msra.mxu2 %v2487_v61  ;;  %912 = vmatpush.msra.mxu3 %v2490_v62 }
  0xf6   : > { %852 = vmatpush.msra.mxu0 %v2516_v42  ;;  %872 = vmatpush.msra.mxu1 %v2519_v58 }
  0xf7   : > { %984 = vmatpush.msrb.mxu2 %v2259_v0  ;;  %1004 = vmatpush.msrb.mxu3 %v2262_v1 }
  0xf8   : > { %944 = vmatpush.msrb.mxu0 %v2283_v8  ;;  %964 = vmatpush.msrb.mxu1 %v2286_v9 }
  0xf9   : > { %985 = vmatpush.msrb.mxu2 %v2267_v4  ;;  %1005 = vmatpush.msrb.mxu3 %v2270_v5 }
  0xfa   : > { %945 = vmatpush.msrb.mxu0 %v2300_v13  ;;  %965 = vmatpush.msrb.mxu1 %v2303_v14 }
  0xfb   : > { %986 = vmatpush.msrb.mxu2 %v2275_v6  ;;  %1006 = vmatpush.msrb.mxu3 %v2278_v7 }
  0xfc   : > { %946 = vmatpush.msrb.mxu0 %v2314_v17  ;;  %966 = vmatpush.msrb.mxu1 %v2317_v18 }
  0xfd   : > { %987 = vmatpush.msrb.mxu2 %v2292_v11  ;;  %1007 = vmatpush.msrb.mxu3 %v2295_v12 }
  0xfe   : > { %947 = vmatpush.msrb.mxu0 %v2332_v21  ;;  %967 = vmatpush.msrb.mxu1 %v2335_v22 }
  0xff   : > { %988 = vmatpush.msrb.mxu2 %v2306_v15  ;;  %1008 = vmatpush.msrb.mxu3 %v2309_v16 }
 0x100   : > { %948 = vmatpush.msrb.mxu0 %v2349_v26  ;;  %968 = vmatpush.msrb.mxu1 %v2352_v27 }
 0x101   : > { %989 = vmatpush.msrb.mxu2 %v2322_v19  ;;  %1009 = vmatpush.msrb.mxu3 %v2325_v20 }
 0x102   : > { %949 = vmatpush.msrb.mxu0 %v2363_v30  ;;  %969 = vmatpush.msrb.mxu1 %v2366_v31 }
 0x103   : > { %990 = vmatpush.msrb.mxu2 %v2340_v23  ;;  %1010 = vmatpush.msrb.mxu3 %v2343_v24 }
 0x104   : > { %950 = vmatpush.msrb.mxu0 %v2379_v34  ;;  %970 = vmatpush.msrb.mxu1 %v2382_v35 }
 0x105   : > { %991 = vmatpush.msrb.mxu2 %v2357_v28  ;;  %1011 = vmatpush.msrb.mxu3 %v2360_v29 }
 0x106   : > { %951 = vmatpush.msrb.mxu0 %v2397_v38  ;;  %971 = vmatpush.msrb.mxu1 %v2400_v39 }
 0x107   : > { %992 = vmatpush.msrb.mxu2 %v2371_v32  ;;  %1012 = vmatpush.msrb.mxu3 %v2374_v33 }
 0x108   : > { %952 = vmatpush.msrb.mxu0 %v2414_v43  ;;  %972 = vmatpush.msrb.mxu1 %v2417_v44 }
 0x109   : > { %993 = vmatpush.msrb.mxu2 %v2387_v36  ;;  %1013 = vmatpush.msrb.mxu3 %v2390_v37 }
 0x10a   : > { %953 = vmatpush.msrb.mxu0 %v2428_v47  ;;  %973 = vmatpush.msrb.mxu1 %v2431_v48 }
 0x10b   : > { %994 = vmatpush.msrb.mxu2 %v2405_v40  ;;  %1014 = vmatpush.msrb.mxu3 %v2408_v41 }
 0x10c   : > { %954 = vmatpush.msrb.mxu0 %v2444_v51  ;;  %974 = vmatpush.msrb.mxu1 %v2447_v52 }
 0x10d   : > { %995 = vmatpush.msrb.mxu2 %v2422_v45  ;;  %1015 = vmatpush.msrb.mxu3 %v2425_v46 }
 0x10e   : > { %955 = vmatpush.msrb.mxu0 %v2465_v55  ;;  %975 = vmatpush.msrb.mxu1 %v2468_v56 }
 0x10f   : > { %996 = vmatpush.msrb.mxu2 %v2436_v49  ;;  %1016 = vmatpush.msrb.mxu3 %v2439_v50 }
 0x110   : > { %956 = vmatpush.msrb.mxu0 %v2479_v59  ;;  %976 = vmatpush.msrb.mxu1 %v2482_v60 }
 0x111   : > { %997 = vmatpush.msrb.mxu2 %v2452_v53  ;;  %1017 = vmatpush.msrb.mxu3 %v2455_v54 }
 0x112   : > { %957 = vmatpush.msrb.mxu0 %v2495_v63  ;;  %977 = vmatpush.msrb.mxu1 %v2498_v2  ;;  %v511_v2 = vld [vmem:[%s2180_s12] sm:$0xf]  ;;  %s1316_s12 = scalar_lea.vmem [#allocation4], %s1437_s13 }
 0x113   : > { %998 = vmatpush.msrb.mxu2 %v2473_v57  ;;  %1018 = vmatpush.msrb.mxu3 %v2909_v3  ;;  %v513_v53 = vperm.slane %v511_v2, 0  ;;  %v514_v63 = vperm.slane %v511_v2, 1  ;;  %v515_v54 = vperm.slane %v511_v2, 2  ;;  %v516_v50 = vperm.slane %v511_v2, 3 }
 0x114   : > { %958 = vmatpush.msrb.mxu0 %v2508_v10  ;;  %978 = vmatpush.msrb.mxu1 %v2511_v25 }
 0x115   : > { %999 = vmatpush.msrb.mxu2 %v2487_v61  ;;  %1019 = vmatpush.msrb.mxu3 %v2490_v62 }
 0x116   : > { %959 = vmatpush.msrb.mxu0 %v2516_v42  ;;  %979 = vmatpush.msrb.mxu1 %v2519_v58 }
 0x12d   : > { %v538_v10 = vpop.f32.mrf.mxu0  ;;  %v567_v49 = vpop.f32.mrf.mxu1 }
 0x12e   : > { %v539_v25 = vadd.f32 %v538_v10, %v513_v53  ;;  %v568_v60 = vadd.f32 %v567_v49, %v514_v63 }
 0x12f   : > { %v596_v57 = vpop.f32.mrf.mxu2  ;;  %v625_v59 = vpop.f32.mrf.mxu3 }
 0x130   : > { %v597_v3 = vadd.f32 %v596_v57, %v515_v54  ;;  %v626_v46 = vadd.f32 %v625_v59, %v516_v50  ;;  %637 = vst [vmem:[#allocation4] sm:$0xff] %v539_v25 }
 0x131   : > { %638 = vst [vmem:[#allocation4 + $0x8] sm:$0xff] %v568_v60 }
 0x132   : > { %639 = vst [vmem:[#allocation4 + $0x10] sm:$0xff] %v597_v3 }
 0x133   : > { %640 = vst [vmem:[#allocation4 + $0x18] sm:$0xff] %v626_v46 }
 0x136   : > { %v541_v61 = vpop.f32.mrf.mxu0  ;;  %v570_v58 = vpop.f32.mrf.mxu1 }
 0x137   : > { %v542_v62 = vadd.f32 %v541_v61, %v513_v53  ;;  %v571_v42 = vadd.f32 %v570_v58, %v514_v63  ;;  %v599_v45 = vpop.f32.mrf.mxu2  ;;  %v628_v56 = vpop.f32.mrf.mxu3 }
 0x138   : > { %v600_v55 = vadd.f32 %v599_v45, %v515_v54  ;;  %v629_v2 = vadd.f32 %v628_v56, %v516_v50 }
 0x139   : > { %641 = vst [vmem:[#allocation4 + $0x20] sm:$0xff] %v542_v62 }
 0x13a   : > { %642 = vst [vmem:[#allocation4 + $0x28] sm:$0xff] %v571_v42 }
 0x13b   : > { %643 = vst [vmem:[#allocation4 + $0x30] sm:$0xff] %v600_v55 }
 0x13c   : > { %644 = vst [vmem:[#allocation4 + $0x38] sm:$0xff] %v629_v2 }
 0x13f   : > { %v602_v49 = vpop.f32.mrf.mxu2  ;;  %v631_v10 = vpop.f32.mrf.mxu3 }
 0x140   : > { %v544_v57 = vpop.f32.mrf.mxu0  ;;  %v573_v59 = vpop.f32.mrf.mxu1  ;;  %v603_v25 = vadd.f32 %v602_v49, %v515_v54  ;;  %v632_v46 = vadd.f32 %v631_v10, %v516_v50 }
 0x141   : > { %v545_v60 = vadd.f32 %v544_v57, %v513_v53  ;;  %v574_v3 = vadd.f32 %v573_v59, %v514_v63 }
 0x142   : > { %647 = vst [vmem:[#allocation4 + $0x50] sm:$0xff] %v603_v25 }
 0x143   : > { %645 = vst [vmem:[#allocation4 + $0x40] sm:$0xff] %v545_v60 }
 0x144   : > { %646 = vst [vmem:[#allocation4 + $0x48] sm:$0xff] %v574_v3 }
 0x145   : > { %648 = vst [vmem:[#allocation4 + $0x58] sm:$0xff] %v632_v46 }
 0x149   : > { %v605_v58 = vpop.f32.mrf.mxu2  ;;  %v634_v45 = vpop.f32.mrf.mxu3 }
 0x14a   : > { %v547_v56 = vpop.f32.mrf.mxu0  ;;  %v576_v61 = vpop.f32.mrf.mxu1  ;;  %v606_v62 = vadd.f32 %v605_v58, %v515_v54  ;;  %v635_v2 = vadd.f32 %v634_v45, %v516_v50 }
 0x14b   : > { %v548_v55 = vadd.f32 %v547_v56, %v513_v53  ;;  %v577_v42 = vadd.f32 %v576_v61, %v514_v63 }
 0x14c   : > { %651 = vst [vmem:[#allocation4 + $0x70] sm:$0xff] %v606_v62 }
 0x14d   : > { %649 = vst [vmem:[#allocation4 + $0x60] sm:$0xff] %v548_v55  ;;  %v657_v55 = vld [vmem:[%s656_s10] sm:$0xff] }
 0x14e   : > { %650 = vst [vmem:[#allocation4 + $0x68] sm:$0xff] %v577_v42 }
 0x14f   : > { %652 = vst [vmem:[#allocation4 + $0x78] sm:$0xff] %v635_v2 }
 0x154   : > { %v747_v49 = vpop.f32.mrf.mxu0  ;;  %v767_v10 = vpop.f32.mrf.mxu1 }
 0x156   : > { %v662_v57 = vld [vmem:[%s661_s7] sm:$0xff]  ;;  %v663_v59 = vld [vmem:[%s661_s7 + $0x8] sm:$0xff]  ;;  %v664_v25 = vld [vmem:[%s661_s7 + $0x10] sm:$0xff]  ;;  %v787_v60 = vpop.f32.mrf.mxu2  ;;  %v807_v54 = vpop.f32.mrf.mxu3 }
 0x157   : > { %v810_v3 = vadd.f32 %v747_v49, %v662_v57  ;;  %v811_v46 = vadd.f32 %v767_v10, %v663_v59  ;;  %v812_v53 = vadd.f32 %v787_v60, %v664_v25  ;;  %v665_v50 = vld [vmem:[%s661_s7 + $0x18] sm:$0xff] }
 0x158   : > { %v813_v63 = vadd.f32 %v807_v54, %v665_v50 }
 0x159   : > { %1580 = vtanh.f32 %v810_v3 }
 0x15a   : > { %1582 = vtanh.f32 %v811_v46 }
 0x15b   : > { %1584 = vtanh.f32 %v812_v53 }
 0x15c   : > { %1586 = vtanh.f32 %v813_v63  ;;  %v940_v63 = vld [vmem:[%s939_s30] sm:$0xff] }
 0x15f   : > { %v1581_v58 = vpop.eup %1580 }
 0x160   : > { %v1583_v45 = vpop.eup %1582  ;;  %v818_v56 = vmul.f32 0.5, %v1581_v58 }
 0x161   : > { %v820_v61 = vmul.f32 0.5, %v1583_v45  ;;  %v1585_v42 = vpop.eup %1584  ;;  %v941_v45 = vld [vmem:[%s939_s30 + $0x8] sm:$0xff] }
 0x162   : > { %v819_v62 = vadd.f32 0.5, %v818_v56  ;;  %v1587_v57 = vpop.eup %1586 }
 0x163   : > { %v821_v2 = vadd.f32 0.5, %v820_v61  ;;  %v822_v25 = vmul.f32 0.5, %v1587_v57 }
 0x164   : > { %v825_v49 = vmul.f32 %v1585_v42, %v819_v62 }
 0x165   : > { %v824_v10 = vmul.f32 %v821_v2, %v657_v55  ;;  %v823_v60 = vadd.f32 0.5, %v822_v25  ;;  %v942_v55 = vld [vmem:[%s939_s30 + $0x10] sm:$0xff] }
 0x167   : > { %v2658_v59 = vadd.f32 %v825_v49, %v824_v10  ;;  %v943_v10 = vld [vmem:[%s939_s30 + $0x18] sm:$0xff] }
 0x169   : > { %1588 = vtanh.f32 %v2658_v59 }
 0x16f   : > { %v1589_v3 = vpop.eup %1588 }
 0x170   : > { %v828_v46 = vmul.f32 %v1589_v3, %v823_v60 }
 0x172   : > { %853 = vmatmul.f32.vlgmr.msra.gmra.mxu0 %v828_v46  ;;  %873 = vmatmul.f32.vlgmr.msra.gmra.mxu1 %v828_v46 }
 0x173   : > { %893 = vmatmul.f32.vlgmr.msra.gmra.mxu2 %v828_v46  ;;  %913 = vmatmul.f32.vlgmr.msra.gmra.mxu3 %v828_v46 }
 0x174   : > { %1052 = vmatpush.msra.mxu0 %v2283_v8  ;;  %1072 = vmatpush.msra.mxu1 %v2286_v9  ;;  %v2916_v8 = vld [vmem:[#allocation33_spill] sm:$0xff]  ;;  %v2917_v9 = vld [vmem:[#allocation34_spill] sm:$0xff] }
 0x175   : > { %1092 = vmatpush.msra.mxu2 %v2259_v0  ;;  %1112 = vmatpush.msra.mxu3 %v2262_v1  ;;  %v2910_v0 = vld [vmem:[#allocation37_spill] sm:$0xff]  ;;  %v2911_v1 = vld [vmem:[#allocation38_spill] sm:$0xff] }
 0x176   : > { %1053 = vmatpush.msra.mxu0 %v2300_v13  ;;  %1073 = vmatpush.msra.mxu1 %v2303_v14  ;;  %v2920_v13 = vld [vmem:[#allocation35_spill] sm:$0xff]  ;;  %v2921_v14 = vld [vmem:[#allocation36_spill] sm:$0xff] }
 0x177   : > { %1093 = vmatpush.msra.mxu2 %v2267_v4  ;;  %1113 = vmatpush.msra.mxu3 %v2270_v5  ;;  %v2912_v4 = vld [vmem:[#allocation31_spill] sm:$0xff]  ;;  %v2913_v5 = vld [vmem:[#allocation32_spill] sm:$0xff] }
 0x178   : > { %1054 = vmatpush.msra.mxu0 %v2314_v17  ;;  %1074 = vmatpush.msra.mxu1 %v2317_v18  ;;  %v2924_v17 = vld [vmem:[#allocation39_spill] sm:$0xff]  ;;  %v2925_v18 = vld [vmem:[#allocation40_spill] sm:$0xff] }
 0x179   : > { %1094 = vmatpush.msra.mxu2 %v2275_v6  ;;  %1114 = vmatpush.msra.mxu3 %v2278_v7  ;;  %v2914_v6 = vld [vmem:[#allocation41_spill] sm:$0xff]  ;;  %v2915_v7 = vld [vmem:[#allocation42_spill] sm:$0xff] }
 0x17a   : > { %1055 = vmatpush.msra.mxu0 %v2332_v21  ;;  %1075 = vmatpush.msra.mxu1 %v2335_v22  ;;  %v2928_v21 = vld [vmem:[#allocation43_spill] sm:$0xff]  ;;  %v2929_v22 = vld [vmem:[#allocation44_spill] sm:$0xff] }
 0x17b   : > { %1095 = vmatpush.msra.mxu2 %v2292_v11  ;;  %1115 = vmatpush.msra.mxu3 %v2295_v12  ;;  %v2918_v11 = vld [vmem:[#allocation45_spill] sm:$0xff]  ;;  %v2919_v12 = vld [vmem:[#allocation46_spill] sm:$0xff] }
 0x17c   : > { %1056 = vmatpush.msra.mxu0 %v2349_v26  ;;  %1076 = vmatpush.msra.mxu1 %v2352_v27  ;;  %v1432_v26 = vld [vmem:[%s1310_s17 + $0x28] sm:$0xff] }
 0x17d   : > { %1096 = vmatpush.msra.mxu2 %v2306_v15  ;;  %1116 = vmatpush.msra.mxu3 %v2309_v16  ;;  %v2922_v15 = vld [vmem:[#allocation47_spill] sm:$0xff]  ;;  %v2923_v16 = vld [vmem:[#allocation48_spill] sm:$0xff] }
 0x17e   : > { %1057 = vmatpush.msra.mxu0 %v2363_v30  ;;  %1077 = vmatpush.msra.mxu1 %v2366_v31  ;;  %v1433_v30 = vld [vmem:[%s1310_s17 + $0x30] sm:$0xff] }
 0x17f   : > { %1097 = vmatpush.msra.mxu2 %v2322_v19  ;;  %1117 = vmatpush.msra.mxu3 %v2325_v20  ;;  %v2926_v19 = vld [vmem:[#allocation49_spill] sm:$0xff]  ;;  %v2927_v20 = vld [vmem:[#allocation50_spill] sm:$0xff] }
 0x180   : > { %1058 = vmatpush.msra.mxu0 %v2379_v34  ;;  %1078 = vmatpush.msra.mxu1 %v2382_v35  ;;  %v1434_v34 = vld [vmem:[%s1310_s17 + $0x38] sm:$0xff] }
 0x181   : > { %1098 = vmatpush.msra.mxu2 %v2340_v23  ;;  %1118 = vmatpush.msra.mxu3 %v2343_v24  ;;  %v1431_v23 = vld [vmem:[%s1310_s17 + $0x20] sm:$0xff] }
 0x182   : > { %1059 = vmatpush.msra.mxu0 %v2397_v38  ;;  %1079 = vmatpush.msra.mxu1 %v2400_v39 }
 0x183   : > { %1099 = vmatpush.msra.mxu2 %v2357_v28  ;;  %1119 = vmatpush.msra.mxu3 %v2360_v29 }
 0x184   : > { %1060 = vmatpush.msra.mxu0 %v2414_v43  ;;  %1080 = vmatpush.msra.mxu1 %v2417_v44 }
 0x185   : > { %1100 = vmatpush.msra.mxu2 %v2371_v32  ;;  %1120 = vmatpush.msra.mxu3 %v2374_v33 }
 0x186   : > { %1061 = vmatpush.msra.mxu0 %v2428_v47  ;;  %1081 = vmatpush.msra.mxu1 %v2431_v48 }
 0x187   : > { %1101 = vmatpush.msra.mxu2 %v2387_v36  ;;  %1121 = vmatpush.msra.mxu3 %v2390_v37 }
 0x188   : > { %1062 = vmatpush.msra.mxu0 %v2444_v51  ;;  %1082 = vmatpush.msra.mxu1 %v2447_v52 }
 0x189   : > { %1102 = vmatpush.msra.mxu2 %v2405_v40  ;;  %1122 = vmatpush.msra.mxu3 %v2408_v41 }
 0x18a   : > { %1063 = vmatpush.msra.mxu0 %v2910_v0  ;;  %1083 = vmatpush.msra.mxu1 %v2911_v1 }
 0x18b   : > { %1103 = vmatpush.msra.mxu2 %v2912_v4  ;;  %1123 = vmatpush.msra.mxu3 %v2913_v5 }
 0x18c   : > { %1064 = vmatpush.msra.mxu0 %v2914_v6  ;;  %1084 = vmatpush.msra.mxu1 %v2915_v7 }
 0x18d   : > { %1104 = vmatpush.msra.mxu2 %v2916_v8  ;;  %1124 = vmatpush.msra.mxu3 %v2917_v9 }
 0x18e   : > { %1065 = vmatpush.msra.mxu0 %v2918_v11  ;;  %1085 = vmatpush.msra.mxu1 %v2919_v12 }
 0x18f   : > { %1105 = vmatpush.msra.mxu2 %v2920_v13  ;;  %1125 = vmatpush.msra.mxu3 %v2921_v14  ;;  %v1438_v13 = vld [vmem:[%s1316_s12 + $0x60] sm:$0xff] }
 0x190   : > { %1066 = vmatpush.msra.mxu0 %v2922_v15  ;;  %1086 = vmatpush.msra.mxu1 %v2923_v16  ;;  %v1439_v15 = vld [vmem:[%s1316_s12 + $0x68] sm:$0xff] }
 0x191   : > { %1106 = vmatpush.msra.mxu2 %v2924_v17  ;;  %1126 = vmatpush.msra.mxu3 %v2925_v18 }
 0x192   : > { %1067 = vmatpush.msra.mxu0 %v2926_v19  ;;  %1087 = vmatpush.msra.mxu1 %v2927_v20  ;;  %v1440_v19 = vld [vmem:[%s1316_s12 + $0x70] sm:$0xff] }
 0x193   : > { %1107 = vmatpush.msra.mxu2 %v2928_v21  ;;  %1127 = vmatpush.msra.mxu3 %v2929_v22 }
 0x1ef   : > { %v854_v24 = vpop.f32.mrf.mxu0  ;;  %v874_v27 = vpop.f32.mrf.mxu1 }
 0x1f0   : > { %v917_v28 = vadd.f32 %v1431_v23, %v854_v24  ;;  %v918_v29 = vadd.f32 %v1432_v26, %v874_v27  ;;  %v1441_v23 = vld [vmem:[%s1316_s12 + $0x78] sm:$0xff] }
 0x1f2   : > { %1590 = vtanh.f32 %v917_v28 }
 0x1f3   : > { %1592 = vtanh.f32 %v918_v29 }
 0x1f6   : > { %v894_v31 = vpop.f32.mrf.mxu2  ;;  %v914_v32 = vpop.f32.mrf.mxu3 }
 0x1f7   : > { %v919_v33 = vadd.f32 %v1433_v30, %v894_v31  ;;  %v920_v36 = vadd.f32 %v1434_v34, %v914_v32 }
 0x1f8   : > { %v1591_v35 = vpop.eup %1590 }
 0x1f9   : > { %v1593_v37 = vpop.eup %1592  ;;  %1594 = vtanh.f32 %v919_v33  ;;  %v925_v38 = vmul.f32 0.5, %v1591_v35 }
 0x1fa   : > { %v927_v39 = vmul.f32 0.5, %v1593_v37  ;;  %1596 = vtanh.f32 %v920_v36 }
 0x1fb   : > { %v926_v41 = vadd.f32 0.5, %v925_v38 }
 0x1fc   : > { %v928_v40 = vadd.f32 0.5, %v927_v39 }
 0x1fe   : > { %v931_v44 = vmul.f32 %v928_v40, %v2658_v59 }
 0x1ff   : > { %v1595_v43 = vpop.eup %1594 }
 0x200   : > { %v932_v47 = vmul.f32 %v1595_v43, %v926_v41  ;;  %v1597_v48 = vpop.eup %1596 }
 0x201   : > { %v929_v52 = vmul.f32 0.5, %v1597_v48 }
 0x202   : > { %v933_v51 = vadd.f32 %v932_v47, %v931_v44 }
 0x203   : > { %v930_v53 = vadd.f32 0.5, %v929_v52 }
 0x204   : > { %1598 = vtanh.f32 %v933_v51 }
 0x20a   : > { %v1599_v50 = vpop.eup %1598 }
 0x20b   : > { %v935_v54 = vmul.f32 %v1599_v50, %v930_v53 }
 0x20d   : > { %960 = vmatmul.f32.vlgmr.msrb.gmra.mxu0 %v935_v54  ;;  %980 = vmatmul.f32.vlgmr.msrb.gmra.mxu1 %v935_v54 }
 0x20e   : > { %1000 = vmatmul.f32.vlgmr.msrb.gmra.mxu2 %v935_v54  ;;  %1020 = vmatmul.f32.vlgmr.msrb.gmra.mxu3 %v935_v54 }
 0x28a   : > { %v961_v58 = vpop.f32.mrf.mxu0  ;;  %v981_v56 = vpop.f32.mrf.mxu1 }
 0x28b   : > { %v1024_v61 = vadd.f32 %v961_v58, %v940_v63  ;;  %v1025_v62 = vadd.f32 %v981_v56, %v941_v45 }
 0x28d   : > { %1600 = vtanh.f32 %v1024_v61 }
 0x28e   : > { %1602 = vtanh.f32 %v1025_v62 }
 0x291   : > { %v1001_v42 = vpop.f32.mrf.mxu2  ;;  %v1021_v2 = vpop.f32.mrf.mxu3 }
 0x292   : > { %v1026_v49 = vadd.f32 %v1001_v42, %v942_v55  ;;  %v1027_v59 = vadd.f32 %v1021_v2, %v943_v10 }
 0x293   : > { %v1601_v57 = vpop.eup %1600 }
 0x294   : > { %v1603_v25 = vpop.eup %1602  ;;  %1604 = vtanh.f32 %v1026_v49  ;;  %v1032_v60 = vmul.f32 0.5, %v1601_v57 }
 0x295   : > { %v1034_v3 = vmul.f32 0.5, %v1603_v25  ;;  %1606 = vtanh.f32 %v1027_v59 }
 0x296   : > { %v1033_v0 = vadd.f32 0.5, %v1032_v60 }
 0x297   : > { %v1035_v46 = vadd.f32 0.5, %v1034_v3 }
 0x299   : > { %v1038_v4 = vmul.f32 %v1035_v46, %v933_v51 }
 0x29a   : > { %v1605_v1 = vpop.eup %1604 }
 0x29b   : > { %v1039_v5 = vmul.f32 %v1605_v1, %v1033_v0  ;;  %v1607_v6 = vpop.eup %1606 }
 0x29c   : > { %v1036_v8 = vmul.f32 0.5, %v1607_v6 }
 0x29d   : > { %v1040_v7 = vadd.f32 %v1039_v5, %v1038_v4 }
 0x29e   : > { %v1037_v9 = vadd.f32 0.5, %v1036_v8 }
 0x29f   : > { %1608 = vtanh.f32 %v1040_v7 }
 0x2a5   : > { %v1609_v11 = vpop.eup %1608 }
 0x2a6   : > { %v1042_v12 = vmul.f32 %v1609_v11, %v1037_v9 }
 0x2a8   : > { %1068 = vmatmul.f32.vlgmr.msra.gmra.mxu0 %v1042_v12  ;;  %1088 = vmatmul.f32.vlgmr.msra.gmra.mxu1 %v1042_v12 }
 0x2a9   : > { %1108 = vmatmul.f32.vlgmr.msra.gmra.mxu2 %v1042_v12  ;;  %1128 = vmatmul.f32.vlgmr.msra.gmra.mxu3 %v1042_v12 }
 0x325   : > { %v1069_v14 = vpop.f32.mrf.mxu0  ;;  %v1089_v16 = vpop.f32.mrf.mxu1 }
 0x326   : > { %v1132_v17 = vadd.f32 %v1438_v13, %v1069_v14  ;;  %v1133_v18 = vadd.f32 %v1439_v15, %v1089_v16 }
 0x328   : > { %1610 = vtanh.f32 %v1132_v17 }
 0x329   : > { %1612 = vtanh.f32 %v1133_v18 }
 0x32c   : > { %v1109_v20 = vpop.f32.mrf.mxu2  ;;  %v1129_v21 = vpop.f32.mrf.mxu3 }
 0x32d   : > { %v1134_v22 = vadd.f32 %v1440_v19, %v1109_v20  ;;  %v1135_v26 = vadd.f32 %v1441_v23, %v1129_v21 }
 0x32e   : > { %v1611_v24 = vpop.eup %1610 }
 0x32f   : > { %v1613_v27 = vpop.eup %1612  ;;  %1614 = vtanh.f32 %v1134_v22  ;;  %v1140_v28 = vmul.f32 0.5, %v1611_v24 }
 0x330   : > { %v1142_v29 = vmul.f32 0.5, %v1613_v27  ;;  %1616 = vtanh.f32 %v1135_v26 }
 0x331   : > { %v1141_v31 = vadd.f32 0.5, %v1140_v28 }
 0x332   : > { %v1143_v30 = vadd.f32 0.5, %v1142_v29 }
 0x334   : > { %v1146_v33 = vmul.f32 %v1143_v30, %v1040_v7 }
 0x335   : > { %v1615_v32 = vpop.eup %1614 }
 0x336   : > { %v1147_v34 = vmul.f32 %v1615_v32, %v1141_v31  ;;  %v1617_v35 = vpop.eup %1616 }
 0x337   : > { %v1144_v37 = vmul.f32 0.5, %v1617_v35 }
 0x338   : > { %v1148_v36 = vadd.f32 %v1147_v34, %v1146_v33 }
 0x339   : > { %v1145_v38 = vadd.f32 0.5, %v1144_v37 }
 0x33a   : > { %1618 = vtanh.f32 %v1148_v36  ;;  %1152 = vst [vmem:[%s656_s10] sm:$0xff] %v1148_v36 }
 0x33f   : > { %1156 = sbr.rel (%p1442_p9) target bundleno = 995 (0x3e3), region = 68 }
 0x340   : > { %v1619_v39 = vpop.eup %1618 }
 0x341   : > { %v1150_v40 = vmul.f32 %v1619_v39, %v1145_v38 }
 0x343   : > { %1151 = vst [vmem:[%s654_s25] sm:$0xff] %v1150_v40 }
 0x344   : > { %v1172_v41 = vld [vmem:[%s2188_s29 + $0x78] sm:$0xff]  ;;  %v1171_v43 = vld [vmem:[%s2188_s29 + $0x70] sm:$0xff]  ;;  %v1170_v44 = vld [vmem:[%s2188_s29 + $0x68] sm:$0xff] }
 0x345   : > { %1173 = vmatpush.msra.mxu0 %v1172_v41  ;;  %v1169_v47 = vld [vmem:[%s2188_s29 + $0x60] sm:$0xff]  ;;  %v1168_v48 = vld [vmem:[%s2188_s29 + $0x58] sm:$0xff]  ;;  %v1167_v51 = vld [vmem:[%s2188_s29 + $0x50] sm:$0xff] }
 0x346   : > { %v1166_v52 = vld [vmem:[%s2188_s29 + $0x48] sm:$0xff]  ;;  %v1165_v53 = vld [vmem:[%s2188_s29 + $0x40] sm:$0xff]  ;;  %v1164_v50 = vld [vmem:[%s2188_s29 + $0x38] sm:$0xff] }
 0x347   : > { %1174 = vmatpush.msra.mxu0 %v1171_v43  ;;  %v1163_v54 = vld [vmem:[%s2188_s29 + $0x30] sm:$0xff]  ;;  %v1162_v63 = vld [vmem:[%s2188_s29 + $0x28] sm:$0xff]  ;;  %v1161_v58 = vld [vmem:[%s2188_s29 + $0x20] sm:$0xff] }
 0x348   : > { %v1160_v45 = vld [vmem:[%s2188_s29 + $0x18] sm:$0xff]  ;;  %v1159_v56 = vld [vmem:[%s2188_s29 + $0x10] sm:$0xff]  ;;  %v1158_v61 = vld [vmem:[%s2188_s29 + $0x8] sm:$0xff] }
 0x349   : > { %1175 = vmatpush.msra.mxu0 %v1170_v44  ;;  %v1157_v62 = vld [vmem:[%s2188_s29] sm:$0xff] }
 0x34b   : > { %1176 = vmatpush.msra.mxu0 %v1169_v47 }
 0x34d   : > { %1177 = vmatpush.msra.mxu0 %v1168_v48 }
 0x34f   : > { %1178 = vmatpush.msra.mxu0 %v1167_v51 }
 0x351   : > { %1179 = vmatpush.msra.mxu0 %v1166_v52 }
 0x353   : > { %1180 = vmatpush.msra.mxu0 %v1165_v53 }
 0x355   : > { %1181 = vmatpush.msra.mxu0 %v1164_v50 }
 0x357   : > { %1182 = vmatpush.msra.mxu0 %v1163_v54 }
 0x359   : > { %1183 = vmatpush.msra.mxu0 %v1162_v63 }
 0x35b   : > { %1184 = vmatpush.msra.mxu0 %v1161_v58 }
 0x35d   : > { %1185 = vmatpush.msra.mxu0 %v1160_v45 }
 0x35f   : > { %1186 = vmatpush.msra.mxu0 %v1159_v56 }
 0x361   : > { %1187 = vmatpush.msra.mxu0 %v1158_v61 }
 0x363   : > { %1188 = vmatpush.msra.mxu0 %v1157_v62 }
 0x364   : > { %1189 = vmatmul.f32.vlgmr.msra.gmra.mxu0 %v1150_v40 }
 0x3e1   : > { %v1190_v55 = vpop.f32.mrf.mxu0 }
 0x3e2   : > { %1193 = vst [vmem:[%s2190_s9] sm:$0xff] %v1190_v55 }
 0x3e3 PF: > { %s2931_s6 = sld [smem:[#allocation55_spill]]  ;;  %s1207_s24 = sshll.u32 %s2190_s9, 4  ;;  %s1208_s24 = int_to_ptr.vmem [resolvable:$true] %s1207_s24 }
 0x3e4   : > { %s1195_s25 = scalar_lea.sflag [#allocation7], %s2168_s1 }
 0x3e9   : > { %s1205_s2 = scalar_lea.hbm %s2931_s6, %s2460_s21  ;;  %s1790_s0 = scalar_lea.hbm %s2931_s6, 16 }
 0x3ea   : > { %s1209_s26 = sshll.u32 %s1205_s2, 4  ;;  %s1210_s26 = int_to_ptr.hbm [resolvable:$true] %s1209_s26 }
 0x3eb   : > { %s1784_s29 = sshra.s32 %s1210_s26, 4  ;;  %s1785_s29 = int_to_ptr.hbm [resolvable:$true] %s1784_s29 }
 0x3ec   : > { %s1786_s16 = scalar_lea.hbm %s1785_s29, 8  ;;  %p1791_p2 = scmp.lt.s32.totalorder %s1785_s29, %s2931_s6 }
 0x3ed   : > { %p1787_p12 = scmp.ne.s32.totalorder %s1785_s29, %s1786_s16  ;;  %p1792_p3 = scmp.lt.s32.totalorder %s1790_s0, %s1786_s16 }
 0x3ef   : > { %p1788_p11 = pnand %p1787_p12, %p2009_p6  ;;  %p1793_p5 = por %p1792_p3, %p1791_p2 }
 0x3f1   : > { %p1789_p0 = pneg %p1788_p11 }
 0x3f3   : > { %p1794_p10 = pnand %p1793_p5, %p1789_p0 }
 0x3f5   : > { %1797 = shalt.err (!%p1794_p10)
}
 0x3f6   : > { %1463 = dma.vmem_to_hbm [thread:$0]  (%p2009_p6), %s1208_s24, 128, %s1210_s26, %s1195_s25  }
 0x3f7 PF: > { %s2933_s1 = sld [smem:[#allocation25_spill]]  ;;  %p1486_p13 = scmp.ge.s32.totalorder %s1900_s28, 2 }
 0x3f8   : > { %s1221_s9 = sand.u32 1, %s1860_s18  }
 0x3f9   : > { %s1222_s21 = scalar_lea.sflag [#allocation7], %s1221_s9 }
 0x3fd   : > { %p2934_p8 = scmp.ne.s32.totalorder %s2933_s1, 0 }
 0x3ff   : > { %p1482_p4 = pnand %p1486_p13, %p2934_p8 }
 0x401   : > { %p1483_p1 = pneg %p1482_p4 }
 0x403   : > { %1855 = dma.done.wait (%p1483_p1), %s1222_s21, 128  }
 0x404   : > { %1857 = vsyncadd (%p1483_p1), %s1222_s21, 4294967168  ;;  %s27_s28 = sadd.s32 1, %s1900_s28   ;;  %s2935_s21 = sld [smem:[#allocation19_spill]] }
 0x405   : > { %p24_p7 = scmp.ge.s32.totalorder %s27_s28, 6   ;;  %s2936_s11 = sld [smem:[#allocation30_spill]] }
 0x406   : > { %s2937_s24 = sld [smem:[#allocation22_spill]]  ;;  %s2940_s18 = smov %s1864_s19 }
 0x407   : > { %s2938_s26 = sld [smem:[#allocation27_spill]]  ;;  %s2941_s19 = smov %s1868_s20 }
 0x408   : > { %s2939_s30 = sld [smem:[#allocation28_spill]]  ;;  %s2942_s20 = smov %s2115_s5 }
 0x409   : > { %s2943_s22 = smov %s1880_s23  ;;  %s2945_s25 = smov %s1896_s27 }
 0x40a   :  { %26 = sbr.rel (!%p24_p7) target bundleno = 19 (0x13), region = 149 }
 0x40b   : > { %s2944_s23 = smov %s2936_s11 }
 0x40e   : > { %s2946_s27 = smov %s2939_s30 }
 0x40f   :  { %1228 = vsyncpa [#allocation6], 1 }
 0x410   :  { %1230 = vsyncpa [#allocation6 + $0x1], 1 }
 0x411   :  { %1231 = vsyncpa [#allocation9], 1 }
 0x412   :  { %1233 = vsyncpa [#allocation9 + $0x1], 1 }
 0x413   :  { %1234 = vsyncpa [#allocation12], 1 }
 0x414   :  { %1236 = vsyncpa [#allocation12 + $0x1], 1 }
 0x415   :  { %1237 = vsyncpa [#allocation7], 1 }
 0x416   :  { %1239 = vsyncpa [#allocation7 + $0x1], 1 }

</bundles_post_ra>
